<compile_context>
chip_gen: v7x
topology: tpu7x:2x2x1
jax: 0.10.0
libtpu: 0.0.40
codegen_flags: <defaults>
</compile_context>

<pallas_src>
import functools

import jax
import jax.numpy as jnp
from jax import lax
from jax.experimental import pallas as pl
from jax.experimental.pallas import tpu as pltpu

EPS = 1e-5
LANE = 128          # channel padding target (TPU lane width)
ROW_BLOCK = 1024    # target rows of M = N*H*W per grid step for 1x1 stages
MIN_STEPS = 4       # keep >= 4 grid steps so v7x megacore gets >= 2 per core


def _rup(x, m):
    return ((x + m - 1) // m) * m


def _pick_row_tile(m, target=ROW_BLOCK, min_steps=MIN_STEPS):
    """Largest multiple-of-8 divisor of m <= target, preferring >= min_steps
    grid steps (pipeline overlap + megacore sharding).  Falls back to the
    largest divisor found, then to m itself."""
    best = None
    for cand in range(min(target, m), 7, -1):
        if m % cand == 0 and cand % 8 == 0:
            if best is None:
                best = cand
            if m // cand >= min_steps:
                return cand
    if best is not None:
        return best
    # TODO(synk): pad M up to a multiple of 8 instead of one huge block.
    return m


def _vmem_limit_bytes():
    # Generation-aware: ~75% of physical VMEM, capped at 96 MiB.
    #   v5e/v6e (128 MiB physical) -> 96 MiB; v7x (64 MiB per TC) -> 48 MiB.
    cap = 128 * 1024 * 1024
    try:
        info = pltpu.get_tpu_info()
        cap = int(getattr(info, "vmem_capacity_bytes", cap) or cap)
    except Exception:
        pass
    return int(min(96 * 1024 * 1024, (cap * 3) // 4))


def _compiler_params():
    return pltpu.CompilerParams(
        dimension_semantics=("parallel",),       # independent grid steps
        vmem_limit_bytes=_vmem_limit_bytes())


# ----------------------------- Pallas kernels ------------------------------ #

def _matmul_stats_kernel(x_ref, w_ref, y_ref, sum_ref, ssq_ref):
    # Stage 1: y = x @ w1 (bf16 MXU operands, f32 accumulate).
    # Also emit per-tile channel sum / sum-of-squares for the global BN1 stats.
    y = jnp.dot(x_ref[...], w_ref[...], preferred_element_type=jnp.float32)
    y_ref[...] = y.astype(y_ref.dtype)
    sum_ref[...] = jnp.sum(y, axis=0).reshape(1, 1, -1)
    ssq_ref[...] = jnp.sum(y * y, axis=0).reshape(1, 1, -1)


def _conv3x3_kernel(y1_ref, s_ref, t_ref, w_ref, y2_ref, sum_ref, ssq_ref,
                    sl_ref, sc_ref, sr_ref, *, H, W, C):
    # Stage 2 (one image per grid step):
    #   a = relu(BN1(y1)) (fused per-channel affine),
    #   conv3x3(pad=1) as 9 MXU matmuls over three (H+2)*W flat slabs
    #   (left/center/right dx-shifted activations with an H-halo of zeros).
    # TODO(synk): for real 56x56 ResNet-50 shapes on v7x, tile rows with a
    # +/-1 halo band instead of one image per step (VMEM headroom / megacore).
    HW = H * W

    # fused BN1 + ReLU
    a = y1_ref[0].astype(jnp.float32)                        # (H, W, C)
    a = jnp.maximum(a * s_ref[...].reshape(1, 1, C)
                    + t_ref[...].reshape(1, 1, C), 0.0)
    a = a.reshape(HW, C).astype(jnp.bfloat16)

    # dx = -1 / +1 shifted copies; the w halo is folded via a per-row mask so
    # no (W+2)-padded slab or sublane-misaligned interior store is needed.
    wpos = lax.broadcasted_iota(jnp.int32, (HW, 1), 0) % W
    zrow = jnp.zeros((1, C), jnp.bfloat16)
    a_l = jnp.where(wpos >= 1,
                    jnp.concatenate([zrow, a[:HW - 1, :]], axis=0),
                    0).astype(jnp.bfloat16)                  # a[.., w-1]
    a_r = jnp.where(wpos <= W - 2,
                    jnp.concatenate([a[1:, :], zrow], axis=0),
                    0).astype(jnp.bfloat16)                  # a[.., w+1]

    # H halo: rows [0, W) and [(H+1)W, (H+2)W) are zero; the interior is fully
    # rewritten each step.  The halo is tiny (2*W rows) and is re-zeroed every
    # step (instead of only at program_id==0) so the kernel stays correct when
    # the "parallel" grid axis is sharded across TensorCores (per-core scratch).
    zhalo = jnp.zeros((W, C), jnp.bfloat16)
    for ref, val in ((sl_ref, a_l), (sc_ref, a), (sr_ref, a_r)):
        ref[pl.ds(0, W), :] = zhalo
        ref[pl.ds((H + 1) * W, W), :] = zhalo
        ref[pl.ds(W, HW), :] = val                          # sublane-aligned

    # 3x3 conv = 9 matmuls; each operand is an aligned first-dim window of a
    # slab (no im2col concat, no unaligned window copies).
    acc = jnp.zeros((HW, C), jnp.float32)
    for dy in range(3):
        for dx, slab in enumerate((sl_ref, sc_ref, sr_ref)):
            acc = acc + jnp.dot(slab[pl.ds(dy * W, HW), :], w_ref[dy, dx],
                                preferred_element_type=jnp.float32)

    y2_ref[...] = acc.reshape(1, H, W, C).astype(y2_ref.dtype)
    sum_ref[...] = jnp.sum(acc, axis=0).reshape(1, 1, C)
    ssq_ref[...] = jnp.sum(acc * acc, axis=0).reshape(1, 1, C)


def _bnrelu_matmul_stats_kernel(x_ref, s_ref, t_ref, w_ref, y_ref,
                                sum_ref, ssq_ref):
    # Stage 3: a = relu(BN2(y2)) (fused affine), y = a @ w3, plus BN3 partial
    # statistics.
    a = x_ref[...].astype(jnp.float32) * s_ref[...] + t_ref[...]
    a = jnp.maximum(a, 0.0).astype(jnp.bfloat16)
    y = jnp.dot(a, w_ref[...], preferred_element_type=jnp.float32)
    y_ref[...] = y.astype(y_ref.dtype)
    sum_ref[...] = jnp.sum(y, axis=0).reshape(1, 1, -1)
    ssq_ref[...] = jnp.sum(y * y, axis=0).reshape(1, 1, -1)


def _bn_residual_relu_kernel(y_ref, id_ref, s_ref, t_ref, o_ref):
    # Finalize: out = relu(BN3(y3) + identity)   (f32, lane-dense output).
    # NOTE: for production shapes (C3 multiple of 128) the padded channels
    # vanish; output could also be emitted bf16 to further cut HBM writes.
    y = y_ref[...].astype(jnp.float32) * s_ref[...] + t_ref[...]
    o_ref[...] = jnp.maximum(y + id_ref[...].astype(jnp.float32), 0.0)


# ------------------------------ Wrapper ------------------------------------ #

def _stats_to_affine(psum, pssq, count, gamma, beta):
    # Global training-mode BN statistics from per-tile partial sums:
    #   scale = gamma / sqrt(var + eps),  shift = beta - mean * scale
    # NOTE: var = E[x^2]-E[x]^2 in f32 can cancel for very large M with
    # |mean| >> std (clamped at 0); a per-tile-centered / compensated reduce
    # would be more robust.  Stats come from the pre-rounding f32 matmul
    # output while the next stage normalizes the bf16-rounded activations
    # (small systematic mismatch, covered by the tolerance).
    s = jnp.sum(psum, axis=0)                     # (1, C)
    ss = jnp.sum(pssq, axis=0)                    # (1, C)
    mean = s / count
    var = jnp.maximum(ss / count - mean * mean, 0.0)
    scale = gamma * lax.rsqrt(var + EPS)
    shift = beta - mean * scale
    return scale.astype(jnp.float32), shift.astype(jnp.float32)


def bottleneck_forward(x_nchw, p):
    N, Cin, H, W = x_nchw.shape
    C1 = p["w1"].shape[1]
    C3 = p["w3"].shape[1]
    assert Cin == C3, "no downsample => in_channels must equal out_channels*4"
    M = N * H * W
    Cp = _rup(Cin, LANE)        # padded in / out (expansion*out) channels
    C1p = _rup(C1, LANE)        # padded bottleneck channels
    tm = _pick_row_tile(M)
    nt = M // tm
    f32, bf16 = jnp.float32, jnp.bfloat16
    cp = _compiler_params()

    # --- channel-pad parameters (conv biases b1/b2/b3 are dropped: a constant
    #     per-channel bias is cancelled by the following training-mode BN).
    # TODO(synk): single-buffer constant-index weight operands
    # (pipeline_mode=pl.Buffered(1)) once validated on the target jax version.
    def padw(w, rt, ct):
        return jnp.pad(w, ((0, rt - w.shape[0]), (0, ct - w.shape[1])))

    w1p = padw(p["w1"], Cp, C1p).astype(bf16)
    w3p = padw(p["w3"], C1p, Cp).astype(bf16)
    w2p = jnp.pad(p["w2"], ((0, 0), (0, 0), (0, C1p - C1),
                            (0, C1p - C1))).astype(bf16)    # (3,3,C1p,C1p) HWIO

    def padg(g, t):
        return jnp.pad(g, ((0, 0), (0, t - g.shape[1])), constant_values=1.0)

    def padb(b, t):
        return jnp.pad(b, ((0, 0), (0, t - b.shape[1])))

    g1, be1 = padg(p["g1"], C1p), padb(p["be1"], C1p)
    g2, be2 = padg(p["g2"], C1p), padb(p["be2"], C1p)
    g3, be3 = padg(p["g3"], Cp), padb(p["be3"], Cp)

    # --- input: NCHW -> NHWC, channel pad, flatten rows.  Cast to bf16 here
    #     (fused with the transpose/pad) so both the stage-1 matmul operand and
    #     the finalize residual read half the HBM bytes.
    # TODO(synk): fold this transpose/pad into stage 1 (pl.ANY + in-kernel
    # transpose) to remove the extra XLA pass over x entirely.
    x_nhwc = jnp.transpose(x_nchw, (0, 2, 3, 1)).astype(bf16)
    x_flat = jnp.pad(x_nhwc, ((0, 0),) * 3 + ((0, Cp - Cin),)).reshape(M, Cp)

    # ----------------- stage 1: conv1x1 (+ BN1 partial stats) ---------------
    y1_flat, s1sum, s1ssq = pl.pallas_call(
        _matmul_stats_kernel,
        grid_spec=pltpu.PrefetchScalarGridSpec(
            num_scalar_prefetch=0, grid=(nt,),
            in_specs=[
                pl.BlockSpec((tm, Cp), lambda i: (i, 0)),
                pl.BlockSpec((Cp, C1p), lambda i: (0, 0)),
            ],
            out_specs=[
                pl.BlockSpec((tm, C1p), lambda i: (i, 0)),
                pl.BlockSpec((1, 1, C1p), lambda i: (i, 0, 0)),
                pl.BlockSpec((1, 1, C1p), lambda i: (i, 0, 0)),
            ]),
        out_shape=[
            jax.ShapeDtypeStruct((M, C1p), bf16),
            jax.ShapeDtypeStruct((nt, 1, C1p), f32),
            jax.ShapeDtypeStruct((nt, 1, C1p), f32),
        ],
        compiler_params=cp,
    )(x_flat, w1p)
    scale1, shift1 = _stats_to_affine(s1sum, s1ssq, M, g1, be1)

    # ----- stage 2: fused BN1+ReLU -> conv3x3 (halo folded in-kernel) -------
    y1_img = y1_flat.reshape(N, H, W, C1p)
    k2 = functools.partial(_conv3x3_kernel, H=H, W=W, C=C1p)
    y2_img, s2sum, s2ssq = pl.pallas_call(
        k2,
        grid_spec=pltpu.PrefetchScalarGridSpec(
            num_scalar_prefetch=0, grid=(N,),
            in_specs=[
                pl.BlockSpec((1, H, W, C1p), lambda n: (n, 0, 0, 0)),
                pl.BlockSpec((1, C1p), lambda n: (0, 0)),
                pl.BlockSpec((1, C1p), lambda n: (0, 0)),
                pl.BlockSpec((3, 3, C1p, C1p), lambda n: (0, 0, 0, 0)),
            ],
            out_specs=[
                pl.BlockSpec((1, H, W, C1p), lambda n: (n, 0, 0, 0)),
                pl.BlockSpec((1, 1, C1p), lambda n: (n, 0, 0)),
                pl.BlockSpec((1, 1, C1p), lambda n: (n, 0, 0)),
            ],
            scratch_shapes=[pltpu.VMEM(((H + 2) * W, C1p), bf16)] * 3),
        out_shape=[
            jax.ShapeDtypeStruct((N, H, W, C1p), bf16),
            jax.ShapeDtypeStruct((N, 1, C1p), f32),
            jax.ShapeDtypeStruct((N, 1, C1p), f32),
        ],
        compiler_params=cp,
    )(y1_img, scale1, shift1, w2p)
    scale2, shift2 = _stats_to_affine(s2sum, s2ssq, M, g2, be2)

    # ----- stage 3: fused BN2+ReLU -> conv1x1 (+ BN3 partial stats) ---------
    y3_flat, s3sum, s3ssq = pl.pallas_call(
        _bnrelu_matmul_stats_kernel,
        grid_spec=pltpu.PrefetchScalarGridSpec(
            num_scalar_prefetch=0, grid=(nt,),
            in_specs=[
                pl.BlockSpec((tm, C1p), lambda i: (i, 0)),
                pl.BlockSpec((1, C1p), lambda i: (0, 0)),
                pl.BlockSpec((1, C1p), lambda i: (0, 0)),
                pl.BlockSpec((C1p, Cp), lambda i: (0, 0)),
            ],
            out_specs=[
                pl.BlockSpec((tm, Cp), lambda i: (i, 0)),
                pl.BlockSpec((1, 1, Cp), lambda i: (i, 0, 0)),
                pl.BlockSpec((1, 1, Cp), lambda i: (i, 0, 0)),
            ]),
        out_shape=[
            jax.ShapeDtypeStruct((M, Cp), bf16),
            jax.ShapeDtypeStruct((nt, 1, Cp), f32),
            jax.ShapeDtypeStruct((nt, 1, Cp), f32),
        ],
        compiler_params=cp,
    )(y2_img.reshape(M, C1p), scale2, shift2, w3p)
    scale3, shift3 = _stats_to_affine(s3sum, s3ssq, M, g3, be3)

    # ----- finalize: BN3 + residual add + ReLU ------------------------------
    out_flat = pl.pallas_call(
        _bn_residual_relu_kernel,
        grid_spec=pltpu.PrefetchScalarGridSpec(
            num_scalar_prefetch=0, grid=(nt,),
            in_specs=[
                pl.BlockSpec((tm, Cp), lambda i: (i, 0)),
                pl.BlockSpec((tm, Cp), lambda i: (i, 0)),
                pl.BlockSpec((1, Cp), lambda i: (0, 0)),
                pl.BlockSpec((1, Cp), lambda i: (0, 0)),
            ],
            out_specs=pl.BlockSpec((tm, Cp), lambda i: (i, 0))),
        out_shape=jax.ShapeDtypeStruct((M, Cp), f32),
        compiler_params=cp,
    )(y3_flat, x_flat, scale3, shift3)

    out = out_flat.reshape(N, H, W, Cp)[..., :C3]
    return jnp.transpose(out, (0, 3, 1, 2))        # back to NCHW


# ---------------------- Pure-JAX reference (for checking) ------------------ #

def bottleneck_reference(x_nchw, p):
    x = jnp.transpose(x_nchw, (0, 2, 3, 1))

    def conv(x, w, b, pad):
        y = lax.conv_general_dilated(x, w, (1, 1), pad,
                                     dimension_numbers=("NHWC", "HWIO", "NHWC"))
        return y + b.reshape(1, 1, 1, -1)

    def bn(y, g, be):
        mean = jnp.mean(y, axis=(0, 1, 2), keepdims=True)
        var = jnp.mean(jnp.square(y - mean), axis=(0, 1, 2), keepdims=True)
        return ((y - mean) * lax.rsqrt(var + EPS) * g.reshape(1, 1, 1, -1)
                + be.reshape(1, 1, 1, -1))

    identity = x
    w1 = p["w1"].reshape(1, 1, *p["w1"].shape)
    w3 = p["w3"].reshape(1, 1, *p["w3"].shape)
    y = jax.nn.relu(bn(conv(x, w1, p["b1"], "VALID"), p["g1"], p["be1"]))
    y = jax.nn.relu(bn(conv(y, p["w2"], p["b2"], ((1, 1), (1, 1))),
                       p["g2"], p["be2"]))
    y = bn(conv(y, w3, p["b3"], "VALID"), p["g3"], p["be3"])
    y = jax.nn.relu(y + identity)
    return jnp.transpose(y, (0, 3, 1, 2))


# ------------------------------- Main --------------------------------------- #

if __name__ == "__main__":
    # out_channels=8, expansion=4 => in_channels = C3 = 32; M = 4*16*16 = 1024
    # so the 1x1 stages run a 4-step grid and stage 2 a 4-step grid.
    # NOTE: these demo channel counts are padded up to 128 lanes; production
    # ResNet-50 shapes (C1=64..512, C3=256..2048) need no such padding and are
    # the shapes tile sizes / VMEM limits should ultimately be tuned against.
    N, H, W = 4, 16, 16
    OUT_C = 8
    C1 = OUT_C
    CIN = C3 = OUT_C * 4  # expansion = 4

    key = jax.random.PRNGKey(0)
    ks = jax.random.split(key, 13)

    params = {
        # conv weights channels-last: 1x1 convs as (Cin, Cout), 3x3 as HWIO
        "w1": 0.1 * jax.random.normal(ks[0], (CIN, C1), jnp.float32),
        "b1": 0.1 * jax.random.normal(ks[1], (1, C1), jnp.float32),
        "g1": 1.0 + 0.1 * jax.random.normal(ks[2], (1, C1), jnp.float32),
        "be1": 0.1 * jax.random.normal(ks[3], (1, C1), jnp.float32),
        "w2": 0.1 * jax.random.normal(ks[4], (3, 3, C1, C1), jnp.float32),
        "b2": 0.1 * jax.random.normal(ks[5], (1, C1), jnp.float32),
        "g2": 1.0 + 0.1 * jax.random.normal(ks[6], (1, C1), jnp.float32),
        "be2": 0.1 * jax.random.normal(ks[7], (1, C1), jnp.float32),
        "w3": 0.1 * jax.random.normal(ks[8], (C1, C3), jnp.float32),
        "b3": 0.1 * jax.random.normal(ks[9], (1, C3), jnp.float32),
        "g3": 1.0 + 0.1 * jax.random.normal(ks[10], (1, C3), jnp.float32),
        "be3": 0.1 * jax.random.normal(ks[11], (1, C3), jnp.float32),
    }

    x = jax.random.normal(ks[12], (N, CIN, H, W), jnp.float32)  # NCHW

    fwd = jax.jit(bottleneck_forward)
    out = jax.block_until_ready(fwd(x, params))
    ref = jax.block_until_ready(bottleneck_reference(x, params))

    assert out.shape == (N, C3, H, W)
    max_abs = float(jnp.max(jnp.abs(out - ref)))
    rel_fro = float(jnp.linalg.norm(out - ref) / jnp.linalg.norm(ref))
    # bf16 MXU operands through three chained (renormalizing) BN stages, plus a
    # bf16 residual read, vs a pure-f32 reference => allow ~0.1 absolute and
    # <2% global relative error.
    assert max_abs < 1e-1 and rel_fro < 2e-2, (
        f"max abs diff {max_abs}, rel fro {rel_fro}")

    print("KERNEL_OK")
</pallas_src>

<mosaic_0001>
module attributes {stable_mosaic.version = 11 : i64} {
  func.func @_matmul_stats_kernel(%arg0: i32, %arg1: memref<256x128xbf16, #tpu.memory_space<vmem>>, %arg2: memref<128x128xbf16, #tpu.memory_space<vmem>>, %arg3: memref<256x128xbf16, #tpu.memory_space<vmem>>, %arg4: memref<1x1x128xf32, #tpu.memory_space<vmem>>, %arg5: memref<1x1x128xf32, #tpu.memory_space<vmem>>) attributes {dimension_semantics = [#tpu.dimension_semantics<parallel>], iteration_bounds = array<i64: 4>, scalar_prefetch = 0 : i64, scratch_operands = 0 : i64, tpu.core_type = #tpu.core_type<tc>, window_params = [{transform_indices = @transform_0, window_bounds = array<i64: 256, 128>}, {pipeline_mode = #tpu.pipeline_mode<synchronous>, transform_indices = @transform_1, window_bounds = array<i64: 128, 128>}, {transform_indices = @transform_2, window_bounds = array<i64: 256, 128>}, {transform_indices = @transform_3, window_bounds = array<i64: 1, 1, 128>}, {transform_indices = @transform_4, window_bounds = array<i64: 1, 1, 128>}]} {
    %c0 = arith.constant 0 : index
    %c0_0 = arith.constant 0 : index
    %0 = vector.load %arg1[%c0, %c0_0] : memref<256x128xbf16, #tpu.memory_space<vmem>>, vector<256x128xbf16>
    %c0_1 = arith.constant 0 : index
    %c0_2 = arith.constant 0 : index
    %1 = vector.load %arg2[%c0_1, %c0_2] : memref<128x128xbf16, #tpu.memory_space<vmem>>, vector<128x128xbf16>
    %cst = arith.constant dense<0.000000e+00> : vector<256x128xf32>
    %2 = tpu.matmul %0, %1, %cst {dimension_numbers = #tpu.dot_dimension_numbers<[1], [0], [0], [1], [0, 0, 1, 1], [], []>} : vector<256x128xbf16>, vector<128x128xbf16>, vector<256x128xf32> -> vector<256x128xf32>
    %3 = arith.truncf %2 : vector<256x128xf32> to vector<256x128xbf16>
    %c0_3 = arith.constant 0 : index
    %c0_4 = arith.constant 0 : index
    %4 = vector.load %arg3[%c0_3, %c0_4] : memref<256x128xbf16, #tpu.memory_space<vmem>>, vector<256x128xbf16>
    tpu.vector_store %arg3[%c0_3, %c0_4], %3 {strides = array<i32>} : memref<256x128xbf16, #tpu.memory_space<vmem>>, vector<256x128xbf16>,
    %cst_5 = arith.constant dense<0.000000e+00> : vector<128xf32>
    %5 = vector.multi_reduction <add>, %2, %cst_5 [0] : vector<256x128xf32> to vector<128xf32>
    %6 = vector.shape_cast %5 : vector<128xf32> to vector<1x1x128xf32>
    %c0_6 = arith.constant 0 : index
    %c0_7 = arith.constant 0 : index
    %c0_8 = arith.constant 0 : index
    %7 = vector.load %arg4[%c0_6, %c0_7, %c0_8] : memref<1x1x128xf32, #tpu.memory_space<vmem>>, vector<1x1x128xf32>
    tpu.vector_store %arg4[%c0_6, %c0_7, %c0_8], %6 {strides = array<i32>} : memref<1x1x128xf32, #tpu.memory_space<vmem>>, vector<1x1x128xf32>,
    %8 = arith.mulf %2, %2 : vector<256x128xf32>
    %cst_9 = arith.constant dense<0.000000e+00> : vector<128xf32>
    %9 = vector.multi_reduction <add>, %8, %cst_9 [0] : vector<256x128xf32> to vector<128xf32>
    %10 = vector.shape_cast %9 : vector<128xf32> to vector<1x1x128xf32>
    %c0_10 = arith.constant 0 : index
    %c0_11 = arith.constant 0 : index
    %c0_12 = arith.constant 0 : index
    %11 = vector.load %arg5[%c0_10, %c0_11, %c0_12] : memref<1x1x128xf32, #tpu.memory_space<vmem>>, vector<1x1x128xf32>
    tpu.vector_store %arg5[%c0_10, %c0_11, %c0_12], %10 {strides = array<i32>} : memref<1x1x128xf32, #tpu.memory_space<vmem>>, vector<1x1x128xf32>,
    return
  }
  func.func @transform_0(%arg0: i32) -> (i32, i32) {
    %c0_i32 = arith.constant 0 : i32
    %c0_i32_0 = arith.constant 0 : i32
    return %arg0, %c0_i32 : i32, i32
  }
  func.func @transform_1(%arg0: i32) -> (i32, i32) {
    %c0_i32 = arith.constant 0 : i32
    %c0_i32_0 = arith.constant 0 : i32
    %c0_i32_1 = arith.constant 0 : i32
    return %c0_i32, %c0_i32_0 : i32, i32
  }
  func.func @transform_2(%arg0: i32) -> (i32, i32) {
    %c0_i32 = arith.constant 0 : i32
    %c0_i32_0 = arith.constant 0 : i32
    return %arg0, %c0_i32 : i32, i32
  }
  func.func @transform_3(%arg0: i32) -> (i32, i32, i32) {
    %c0_i32 = arith.constant 0 : i32
    %c0_i32_0 = arith.constant 0 : i32
    %c0_i32_1 = arith.constant 0 : i32
    return %arg0, %c0_i32, %c0_i32_0 : i32, i32, i32
  }
  func.func @transform_4(%arg0: i32) -> (i32, i32, i32) {
    %c0_i32 = arith.constant 0 : i32
    %c0_i32_0 = arith.constant 0 : i32
    %c0_i32_1 = arith.constant 0 : i32
    return %arg0, %c0_i32, %c0_i32_0 : i32, i32, i32
  }
}

module attributes {stable_mosaic.version = 11 : i64} {
  func.func @_bnrelu_matmul_stats_kernel(%arg0: i32, %arg1: memref<256x128xbf16, #tpu.memory_space<vmem>>, %arg2: memref<1x128xf32, #tpu.memory_space<vmem>>, %arg3: memref<1x128xf32, #tpu.memory_space<vmem>>, %arg4: memref<128x128xbf16, #tpu.memory_space<vmem>>, %arg5: memref<256x128xbf16, #tpu.memory_space<vmem>>, %arg6: memref<1x1x128xf32, #tpu.memory_space<vmem>>, %arg7: memref<1x1x128xf32, #tpu.memory_space<vmem>>) attributes {dimension_semantics = [#tpu.dimension_semantics<parallel>], iteration_bounds = array<i64: 4>, scalar_prefetch = 0 : i64, scratch_operands = 0 : i64, tpu.core_type = #tpu.core_type<tc>, window_params = [{transform_indices = @transform_0, window_bounds = array<i64: 256, 128>}, {pipeline_mode = #tpu.pipeline_mode<synchronous>, transform_indices = @transform_1, window_bounds = array<i64: 1, 128>}, {pipeline_mode = #tpu.pipeline_mode<synchronous>, transform_indices = @transform_2, window_bounds = array<i64: 1, 128>}, {pipeline_mode = #tpu.pipeline_mode<synchronous>, transform_indices = @transform_3, window_bounds = array<i64: 128, 128>}, {transform_indices = @transform_4, window_bounds = array<i64: 256, 128>}, {transform_indices = @transform_5, window_bounds = array<i64: 1, 1, 128>}, {transform_indices = @transform_6, window_bounds = array<i64: 1, 1, 128>}]} {
    %c0 = arith.constant 0 : index
    %c0_0 = arith.constant 0 : index
    %0 = vector.load %arg1[%c0, %c0_0] : memref<256x128xbf16, #tpu.memory_space<vmem>>, vector<256x128xbf16>
    %1 = arith.extf %0 : vector<256x128xbf16> to vector<256x128xf32>
    %c0_1 = arith.constant 0 : index
    %c0_2 = arith.constant 0 : index
    %2 = vector.load %arg2[%c0_1, %c0_2] : memref<1x128xf32, #tpu.memory_space<vmem>>, vector<1x128xf32>
    %3 = vector.broadcast %2 : vector<1x128xf32> to vector<256x128xf32>
    %4 = arith.mulf %1, %3 : vector<256x128xf32>
    %c0_3 = arith.constant 0 : index
    %c0_4 = arith.constant 0 : index
    %5 = vector.load %arg3[%c0_3, %c0_4] : memref<1x128xf32, #tpu.memory_space<vmem>>, vector<1x128xf32>
    %6 = vector.broadcast %5 : vector<1x128xf32> to vector<256x128xf32>
    %7 = arith.addf %4, %6 : vector<256x128xf32>
    %cst = arith.constant 0.000000e+00 : f32
    %8 = vector.broadcast %cst : f32 to vector<256x128xf32>
    %9 = arith.maximumf %7, %8 : vector<256x128xf32>
    %10 = arith.truncf %9 : vector<256x128xf32> to vector<256x128xbf16>
    %c0_5 = arith.constant 0 : index
    %c0_6 = arith.constant 0 : index
    %11 = vector.load %arg4[%c0_5, %c0_6] : memref<128x128xbf16, #tpu.memory_space<vmem>>, vector<128x128xbf16>
    %cst_7 = arith.constant dense<0.000000e+00> : vector<256x128xf32>
    %12 = tpu.matmul %10, %11, %cst_7 {dimension_numbers = #tpu.dot_dimension_numbers<[1], [0], [0], [1], [0, 0, 1, 1], [], []>} : vector<256x128xbf16>, vector<128x128xbf16>, vector<256x128xf32> -> vector<256x128xf32>
    %13 = arith.truncf %12 : vector<256x128xf32> to vector<256x128xbf16>
    %c0_8 = arith.constant 0 : index
    %c0_9 = arith.constant 0 : index
    %14 = vector.load %arg5[%c0_8, %c0_9] : memref<256x128xbf16, #tpu.memory_space<vmem>>, vector<256x128xbf16>
    tpu.vector_store %arg5[%c0_8, %c0_9], %13 {strides = array<i32>} : memref<256x128xbf16, #tpu.memory_space<vmem>>, vector<256x128xbf16>,
    %cst_10 = arith.constant dense<0.000000e+00> : vector<128xf32>
    %15 = vector.multi_reduction <add>, %12, %cst_10 [0] : vector<256x128xf32> to vector<128xf32>
    %16 = vector.shape_cast %15 : vector<128xf32> to vector<1x1x128xf32>
    %c0_11 = arith.constant 0 : index
    %c0_12 = arith.constant 0 : index
    %c0_13 = arith.constant 0 : index
    %17 = vector.load %arg6[%c0_11, %c0_12, %c0_13] : memref<1x1x128xf32, #tpu.memory_space<vmem>>, vector<1x1x128xf32>
    tpu.vector_store %arg6[%c0_11, %c0_12, %c0_13], %16 {strides = array<i32>} : memref<1x1x128xf32, #tpu.memory_space<vmem>>, vector<1x1x128xf32>,
    %18 = arith.mulf %12, %12 : vector<256x128xf32>
    %cst_14 = arith.constant dense<0.000000e+00> : vector<128xf32>
    %19 = vector.multi_reduction <add>, %18, %cst_14 [0] : vector<256x128xf32> to vector<128xf32>
    %20 = vector.shape_cast %19 : vector<128xf32> to vector<1x1x128xf32>
    %c0_15 = arith.constant 0 : index
    %c0_16 = arith.constant 0 : index
    %c0_17 = arith.constant 0 : index
    %21 = vector.load %arg7[%c0_15, %c0_16, %c0_17] : memref<1x1x128xf32, #tpu.memory_space<vmem>>, vector<1x1x128xf32>
    tpu.vector_store %arg7[%c0_15, %c0_16, %c0_17], %20 {strides = array<i32>} : memref<1x1x128xf32, #tpu.memory_space<vmem>>, vector<1x1x128xf32>,
    return
  }
  func.func @transform_0(%arg0: i32) -> (i32, i32) {
    %c0_i32 = arith.constant 0 : i32
    %c0_i32_0 = arith.constant 0 : i32
    return %arg0, %c0_i32 : i32, i32
  }
  func.func @transform_1(%arg0: i32) -> (i32, i32) {
    %c0_i32 = arith.constant 0 : i32
    %c0_i32_0 = arith.constant 0 : i32
    %c0_i32_1 = arith.constant 0 : i32
    return %c0_i32, %c0_i32_0 : i32, i32
  }
  func.func @transform_2(%arg0: i32) -> (i32, i32) {
    %c0_i32 = arith.constant 0 : i32
    %c0_i32_0 = arith.constant 0 : i32
    %c0_i32_1 = arith.constant 0 : i32
    return %c0_i32, %c0_i32_0 : i32, i32
  }
  func.func @transform_3(%arg0: i32) -> (i32, i32) {
    %c0_i32 = arith.constant 0 : i32
    %c0_i32_0 = arith.constant 0 : i32
    %c0_i32_1 = arith.constant 0 : i32
    return %c0_i32, %c0_i32_0 : i32, i32
  }
  func.func @transform_4(%arg0: i32) -> (i32, i32) {
    %c0_i32 = arith.constant 0 : i32
    %c0_i32_0 = arith.constant 0 : i32
    return %arg0, %c0_i32 : i32, i32
  }
  func.func @transform_5(%arg0: i32) -> (i32, i32, i32) {
    %c0_i32 = arith.constant 0 : i32
    %c0_i32_0 = arith.constant 0 : i32
    %c0_i32_1 = arith.constant 0 : i32
    return %arg0, %c0_i32, %c0_i32_0 : i32, i32, i32
  }
  func.func @transform_6(%arg0: i32) -> (i32, i32, i32) {
    %c0_i32 = arith.constant 0 : i32
    %c0_i32_0 = arith.constant 0 : i32
    %c0_i32_1 = arith.constant 0 : i32
    return %arg0, %c0_i32, %c0_i32_0 : i32, i32, i32
  }
}

module attributes {stable_mosaic.version = 11 : i64} {
  func.func @_conv3x3_kernel(%arg0: i32, %arg1: memref<1x16x16x128xbf16, #tpu.memory_space<vmem>>, %arg2: memref<1x128xf32, #tpu.memory_space<vmem>>, %arg3: memref<1x128xf32, #tpu.memory_space<vmem>>, %arg4: memref<3x3x128x128xbf16, #tpu.memory_space<vmem>>, %arg5: memref<1x16x16x128xbf16, #tpu.memory_space<vmem>>, %arg6: memref<1x1x128xf32, #tpu.memory_space<vmem>>, %arg7: memref<1x1x128xf32, #tpu.memory_space<vmem>>, %arg8: memref<288x128xbf16, #tpu.memory_space<vmem>>, %arg9: memref<288x128xbf16, #tpu.memory_space<vmem>>, %arg10: memref<288x128xbf16, #tpu.memory_space<vmem>>) attributes {dimension_semantics = [#tpu.dimension_semantics<parallel>], iteration_bounds = array<i64: 4>, scalar_prefetch = 0 : i64, scratch_operands = 3 : i64, tpu.core_type = #tpu.core_type<tc>, window_params = [{transform_indices = @transform_0, window_bounds = array<i64: 1, 16, 16, 128>}, {pipeline_mode = #tpu.pipeline_mode<synchronous>, transform_indices = @transform_1, window_bounds = array<i64: 1, 128>}, {pipeline_mode = #tpu.pipeline_mode<synchronous>, transform_indices = @transform_2, window_bounds = array<i64: 1, 128>}, {pipeline_mode = #tpu.pipeline_mode<synchronous>, transform_indices = @transform_3, window_bounds = array<i64: 3, 3, 128, 128>}, {transform_indices = @transform_4, window_bounds = array<i64: 1, 16, 16, 128>}, {transform_indices = @transform_5, window_bounds = array<i64: 1, 1, 128>}, {transform_indices = @transform_6, window_bounds = array<i64: 1, 1, 128>}]} {
    %c0 = arith.constant 0 : index
    %c0_0 = arith.constant 0 : index
    %c0_1 = arith.constant 0 : index
    %c0_2 = arith.constant 0 : index
    %0 = vector.load %arg1[%c0, %c0_0, %c0_1, %c0_2] : memref<1x16x16x128xbf16, #tpu.memory_space<vmem>>, vector<1x16x16x128xbf16>
    %1 = vector.shape_cast %0 : vector<1x16x16x128xbf16> to vector<16x16x128xbf16>
    %2 = arith.extf %1 : vector<16x16x128xbf16> to vector<16x16x128xf32>
    %c0_3 = arith.constant 0 : index
    %c0_4 = arith.constant 0 : index
    %3 = vector.load %arg2[%c0_3, %c0_4] : memref<1x128xf32, #tpu.memory_space<vmem>>, vector<1x128xf32>
    %4 = vector.shape_cast %3 : vector<1x128xf32> to vector<1x1x128xf32>
    %5 = vector.broadcast %4 : vector<1x1x128xf32> to vector<16x16x128xf32>
    %6 = arith.mulf %2, %5 : vector<16x16x128xf32>
    %c0_5 = arith.constant 0 : index
    %c0_6 = arith.constant 0 : index
    %7 = vector.load %arg3[%c0_5, %c0_6] : memref<1x128xf32, #tpu.memory_space<vmem>>, vector<1x128xf32>
    %8 = vector.shape_cast %7 : vector<1x128xf32> to vector<1x1x128xf32>
    %9 = vector.broadcast %8 : vector<1x1x128xf32> to vector<16x16x128xf32>
    %10 = arith.addf %6, %9 : vector<16x16x128xf32>
    %cst = arith.constant 0.000000e+00 : f32
    %11 = vector.broadcast %cst : f32 to vector<16x16x128xf32>
    %12 = arith.maximumf %10, %11 : vector<16x16x128xf32>
    %13 = vector.shape_cast %12 : vector<16x16x128xf32> to vector<256x128xf32>
    %14 = arith.truncf %13 : vector<256x128xf32> to vector<256x128xbf16>
    %15 = tpu.iota {dimensions = array<i32: 0>} : vector<256x1xi32>
    %c16_i32 = arith.constant 16 : i32
    %c0_i32 = arith.constant 0 : i32
    %16 = arith.cmpi eq, %c16_i32, %c0_i32 : i32
    %c1_i32 = arith.constant 1 : i32
    %17 = arith.select %16, %c1_i32, %c16_i32 : i32
    %18 = vector.broadcast %17 : i32 to vector<256x1xi32>
    %19 = arith.remsi %15, %18 : vector<256x1xi32>
    %c0_i32_7 = arith.constant 0 : i32
    %20 = vector.broadcast %c0_i32_7 : i32 to vector<256x1xi32>
    %21 = arith.cmpi ne, %19, %20 : vector<256x1xi32>
    %c0_i32_8 = arith.constant 0 : i32
    %22 = vector.broadcast %c0_i32_8 : i32 to vector<256x1xi32>
    %23 = arith.cmpi slt, %19, %22 : vector<256x1xi32>
    %c0_i32_9 = arith.constant 0 : i32
    %24 = arith.cmpi slt, %17, %c0_i32_9 : i32
    %25 = vector.broadcast %24 : i1 to vector<256x1xi1>
    %26 = vector.broadcast %25 : vector<256x1xi1> to vector<256x1xi1>
    %27 = arith.xori %23, %26 : vector<256x1xi1>
    %28 = arith.andi %27, %21 : vector<256x1xi1>
    %29 = vector.broadcast %17 : i32 to vector<256x1xi32>
    %30 = arith.addi %19, %29 : vector<256x1xi32>
    %31 = arith.select %28, %30, %19 : vector<256x1xi1>, vector<256x1xi32>
    %cst_10 = arith.constant 0.000000e+00 : bf16
    %32 = vector.broadcast %cst_10 : bf16 to vector<1x128xbf16>
    %c1_i32_11 = arith.constant 1 : i32
    %33 = vector.broadcast %c1_i32_11 : i32 to vector<256x1xi32>
    %34 = arith.cmpi sge, %31, %33 : vector<256x1xi32>
    %35 = vector.extract_strided_slice %14 {offsets = [0, 0], sizes = [255, 128], strides = [1, 1]} : vector<256x128xbf16> to vector<255x128xbf16>
    %36 = tpu.concatenate %32, %35 in 0 : vector<1x128xbf16>, vector<255x128xbf16> -> vector<256x128xbf16>
    %c0_i32_12 = arith.constant 0 : i32
    %37 = arith.sitofp %c0_i32_12 : i32 to bf16
    %38 = vector.shape_cast %34 : vector<256x1xi1> to vector<256x1xi1>
    %39 = vector.broadcast %38 : vector<256x1xi1> to vector<256x128xi1>
    %40 = vector.broadcast %37 : bf16 to vector<256x128xbf16>
    %41 = arith.select %39, %36, %40 : vector<256x128xi1>, vector<256x128xbf16>
    %c14_i32 = arith.constant 14 : i32
    %42 = vector.broadcast %c14_i32 : i32 to vector<256x1xi32>
    %43 = arith.cmpi sle, %31, %42 : vector<256x1xi32>
    %44 = vector.extract_strided_slice %14 {offsets = [1, 0], sizes = [255, 128], strides = [1, 1]} : vector<256x128xbf16> to vector<255x128xbf16>
    %45 = tpu.concatenate %44, %32 in 0 : vector<255x128xbf16>, vector<1x128xbf16> -> vector<256x128xbf16>
    %c0_i32_13 = arith.constant 0 : i32
    %46 = arith.sitofp %c0_i32_13 : i32 to bf16
    %47 = vector.shape_cast %43 : vector<256x1xi1> to vector<256x1xi1>
    %48 = vector.broadcast %47 : vector<256x1xi1> to vector<256x128xi1>
    %49 = vector.broadcast %46 : bf16 to vector<256x128xbf16>
    %50 = arith.select %48, %45, %49 : vector<256x128xi1>, vector<256x128xbf16>
    %cst_14 = arith.constant 0.000000e+00 : bf16
    %51 = vector.broadcast %cst_14 : bf16 to vector<16x128xbf16>
    %c0_15 = arith.constant 0 : index
    %c0_16 = arith.constant 0 : index
    %52 = vector.load %arg8[%c0_15, %c0_16] : memref<288x128xbf16, #tpu.memory_space<vmem>>, vector<16x128xbf16>
    tpu.vector_store %arg8[%c0_15, %c0_16], %51 {strides = array<i32>} : memref<288x128xbf16, #tpu.memory_space<vmem>>, vector<16x128xbf16>,
    %c272 = arith.constant 272 : index
    %c0_17 = arith.constant 0 : index
    %53 = vector.load %arg8[%c272, %c0_17] : memref<288x128xbf16, #tpu.memory_space<vmem>>, vector<16x128xbf16>
    tpu.vector_store %arg8[%c272, %c0_17], %51 {strides = array<i32>} : memref<288x128xbf16, #tpu.memory_space<vmem>>, vector<16x128xbf16>,
    %c16 = arith.constant 16 : index
    %c0_18 = arith.constant 0 : index
    %54 = vector.load %arg8[%c16, %c0_18] : memref<288x128xbf16, #tpu.memory_space<vmem>>, vector<256x128xbf16>
    tpu.vector_store %arg8[%c16, %c0_18], %41 {strides = array<i32>} : memref<288x128xbf16, #tpu.memory_space<vmem>>, vector<256x128xbf16>,
    %c0_19 = arith.constant 0 : index
    %c0_20 = arith.constant 0 : index
    %55 = vector.load %arg9[%c0_19, %c0_20] : memref<288x128xbf16, #tpu.memory_space<vmem>>, vector<16x128xbf16>
    tpu.vector_store %arg9[%c0_19, %c0_20], %51 {strides = array<i32>} : memref<288x128xbf16, #tpu.memory_space<vmem>>, vector<16x128xbf16>,
    %c272_21 = arith.constant 272 : index
    %c0_22 = arith.constant 0 : index
    %56 = vector.load %arg9[%c272_21, %c0_22] : memref<288x128xbf16, #tpu.memory_space<vmem>>, vector<16x128xbf16>
    tpu.vector_store %arg9[%c272_21, %c0_22], %51 {strides = array<i32>} : memref<288x128xbf16, #tpu.memory_space<vmem>>, vector<16x128xbf16>,
    %c16_23 = arith.constant 16 : index
    %c0_24 = arith.constant 0 : index
    %57 = vector.load %arg9[%c16_23, %c0_24] : memref<288x128xbf16, #tpu.memory_space<vmem>>, vector<256x128xbf16>
    tpu.vector_store %arg9[%c16_23, %c0_24], %14 {strides = array<i32>} : memref<288x128xbf16, #tpu.memory_space<vmem>>, vector<256x128xbf16>,
    %c0_25 = arith.constant 0 : index
    %c0_26 = arith.constant 0 : index
    %58 = vector.load %arg10[%c0_25, %c0_26] : memref<288x128xbf16, #tpu.memory_space<vmem>>, vector<16x128xbf16>
    tpu.vector_store %arg10[%c0_25, %c0_26], %51 {strides = array<i32>} : memref<288x128xbf16, #tpu.memory_space<vmem>>, vector<16x128xbf16>,
    %c272_27 = arith.constant 272 : index
    %c0_28 = arith.constant 0 : index
    %59 = vector.load %arg10[%c272_27, %c0_28] : memref<288x128xbf16, #tpu.memory_space<vmem>>, vector<16x128xbf16>
    tpu.vector_store %arg10[%c272_27, %c0_28], %51 {strides = array<i32>} : memref<288x128xbf16, #tpu.memory_space<vmem>>, vector<16x128xbf16>,
    %c16_29 = arith.constant 16 : index
    %c0_30 = arith.constant 0 : index
    %60 = vector.load %arg10[%c16_29, %c0_30] : memref<288x128xbf16, #tpu.memory_space<vmem>>, vector<256x128xbf16>
    tpu.vector_store %arg10[%c16_29, %c0_30], %50 {strides = array<i32>} : memref<288x128xbf16, #tpu.memory_space<vmem>>, vector<256x128xbf16>,
    %cst_31 = arith.constant 0.000000e+00 : f32
    %61 = vector.broadcast %cst_31 : f32 to vector<256x128xf32>
    %c0_32 = arith.constant 0 : index
    %c0_33 = arith.constant 0 : index
    %62 = vector.load %arg8[%c0_32, %c0_33] : memref<288x128xbf16, #tpu.memory_space<vmem>>, vector<256x128xbf16>
    %c0_34 = arith.constant 0 : index
    %c0_35 = arith.constant 0 : index
    %c0_36 = arith.constant 0 : index
    %c0_37 = arith.constant 0 : index
    %63 = vector.load %arg4[%c0_34, %c0_35, %c0_36, %c0_37] : memref<3x3x128x128xbf16, #tpu.memory_space<vmem>>, vector<1x1x128x128xbf16>
    %64 = vector.shape_cast %63 : vector<1x1x128x128xbf16> to vector<128x128xbf16>
    %cst_38 = arith.constant dense<0.000000e+00> : vector<256x128xf32>
    %65 = tpu.matmul %62, %64, %cst_38 {dimension_numbers = #tpu.dot_dimension_numbers<[1], [0], [0], [1], [0, 0, 1, 1], [], []>} : vector<256x128xbf16>, vector<128x128xbf16>, vector<256x128xf32> -> vector<256x128xf32>
    %66 = arith.addf %61, %65 : vector<256x128xf32>
    %c0_39 = arith.constant 0 : index
    %c0_40 = arith.constant 0 : index
    %67 = vector.load %arg9[%c0_39, %c0_40] : memref<288x128xbf16, #tpu.memory_space<vmem>>, vector<256x128xbf16>
    %c0_41 = arith.constant 0 : index
    %c1 = arith.constant 1 : index
    %c0_42 = arith.constant 0 : index
    %c0_43 = arith.constant 0 : index
    %68 = vector.load %arg4[%c0_41, %c1, %c0_42, %c0_43] : memref<3x3x128x128xbf16, #tpu.memory_space<vmem>>, vector<1x1x128x128xbf16>
    %69 = vector.shape_cast %68 : vector<1x1x128x128xbf16> to vector<128x128xbf16>
    %cst_44 = arith.constant dense<0.000000e+00> : vector<256x128xf32>
    %70 = tpu.matmul %67, %69, %cst_44 {dimension_numbers = #tpu.dot_dimension_numbers<[1], [0], [0], [1], [0, 0, 1, 1], [], []>} : vector<256x128xbf16>, vector<128x128xbf16>, vector<256x128xf32> -> vector<256x128xf32>
    %71 = arith.addf %66, %70 : vector<256x128xf32>
    %c0_45 = arith.constant 0 : index
    %c0_46 = arith.constant 0 : index
    %72 = vector.load %arg10[%c0_45, %c0_46] : memref<288x128xbf16, #tpu.memory_space<vmem>>, vector<256x128xbf16>
    %c0_47 = arith.constant 0 : index
    %c2 = arith.constant 2 : index
    %c0_48 = arith.constant 0 : index
    %c0_49 = arith.constant 0 : index
    %73 = vector.load %arg4[%c0_47, %c2, %c0_48, %c0_49] : memref<3x3x128x128xbf16, #tpu.memory_space<vmem>>, vector<1x1x128x128xbf16>
    %74 = vector.shape_cast %73 : vector<1x1x128x128xbf16> to vector<128x128xbf16>
    %cst_50 = arith.constant dense<0.000000e+00> : vector<256x128xf32>
    %75 = tpu.matmul %72, %74, %cst_50 {dimension_numbers = #tpu.dot_dimension_numbers<[1], [0], [0], [1], [0, 0, 1, 1], [], []>} : vector<256x128xbf16>, vector<128x128xbf16>, vector<256x128xf32> -> vector<256x128xf32>
    %76 = arith.addf %71, %75 : vector<256x128xf32>
    %c16_51 = arith.constant 16 : index
    %c0_52 = arith.constant 0 : index
    %77 = vector.load %arg8[%c16_51, %c0_52] : memref<288x128xbf16, #tpu.memory_space<vmem>>, vector<256x128xbf16>
    %c1_53 = arith.constant 1 : index
    %c0_54 = arith.constant 0 : index
    %c0_55 = arith.constant 0 : index
    %c0_56 = arith.constant 0 : index
    %78 = vector.load %arg4[%c1_53, %c0_54, %c0_55, %c0_56] : memref<3x3x128x128xbf16, #tpu.memory_space<vmem>>, vector<1x1x128x128xbf16>
    %79 = vector.shape_cast %78 : vector<1x1x128x128xbf16> to vector<128x128xbf16>
    %cst_57 = arith.constant dense<0.000000e+00> : vector<256x128xf32>
    %80 = tpu.matmul %77, %79, %cst_57 {dimension_numbers = #tpu.dot_dimension_numbers<[1], [0], [0], [1], [0, 0, 1, 1], [], []>} : vector<256x128xbf16>, vector<128x128xbf16>, vector<256x128xf32> -> vector<256x128xf32>
    %81 = arith.addf %76, %80 : vector<256x128xf32>
    %c16_58 = arith.constant 16 : index
    %c0_59 = arith.constant 0 : index
    %82 = vector.load %arg9[%c16_58, %c0_59] : memref<288x128xbf16, #tpu.memory_space<vmem>>, vector<256x128xbf16>
    %c1_60 = arith.constant 1 : index
    %c1_61 = arith.constant 1 : index
    %c0_62 = arith.constant 0 : index
    %c0_63 = arith.constant 0 : index
    %83 = vector.load %arg4[%c1_60, %c1_61, %c0_62, %c0_63] : memref<3x3x128x128xbf16, #tpu.memory_space<vmem>>, vector<1x1x128x128xbf16>
    %84 = vector.shape_cast %83 : vector<1x1x128x128xbf16> to vector<128x128xbf16>
    %cst_64 = arith.constant dense<0.000000e+00> : vector<256x128xf32>
    %85 = tpu.matmul %82, %84, %cst_64 {dimension_numbers = #tpu.dot_dimension_numbers<[1], [0], [0], [1], [0, 0, 1, 1], [], []>} : vector<256x128xbf16>, vector<128x128xbf16>, vector<256x128xf32> -> vector<256x128xf32>
    %86 = arith.addf %81, %85 : vector<256x128xf32>
    %c16_65 = arith.constant 16 : index
    %c0_66 = arith.constant 0 : index
    %87 = vector.load %arg10[%c16_65, %c0_66] : memref<288x128xbf16, #tpu.memory_space<vmem>>, vector<256x128xbf16>
    %c1_67 = arith.constant 1 : index
    %c2_68 = arith.constant 2 : index
    %c0_69 = arith.constant 0 : index
    %c0_70 = arith.constant 0 : index
    %88 = vector.load %arg4[%c1_67, %c2_68, %c0_69, %c0_70] : memref<3x3x128x128xbf16, #tpu.memory_space<vmem>>, vector<1x1x128x128xbf16>
    %89 = vector.shape_cast %88 : vector<1x1x128x128xbf16> to vector<128x128xbf16>
    %cst_71 = arith.constant dense<0.000000e+00> : vector<256x128xf32>
    %90 = tpu.matmul %87, %89, %cst_71 {dimension_numbers = #tpu.dot_dimension_numbers<[1], [0], [0], [1], [0, 0, 1, 1], [], []>} : vector<256x128xbf16>, vector<128x128xbf16>, vector<256x128xf32> -> vector<256x128xf32>
    %91 = arith.addf %86, %90 : vector<256x128xf32>
    %c32 = arith.constant 32 : index
    %c0_72 = arith.constant 0 : index
    %92 = vector.load %arg8[%c32, %c0_72] : memref<288x128xbf16, #tpu.memory_space<vmem>>, vector<256x128xbf16>
    %c2_73 = arith.constant 2 : index
    %c0_74 = arith.constant 0 : index
    %c0_75 = arith.constant 0 : index
    %c0_76 = arith.constant 0 : index
    %93 = vector.load %arg4[%c2_73, %c0_74, %c0_75, %c0_76] : memref<3x3x128x128xbf16, #tpu.memory_space<vmem>>, vector<1x1x128x128xbf16>
    %94 = vector.shape_cast %93 : vector<1x1x128x128xbf16> to vector<128x128xbf16>
    %cst_77 = arith.constant dense<0.000000e+00> : vector<256x128xf32>
    %95 = tpu.matmul %92, %94, %cst_77 {dimension_numbers = #tpu.dot_dimension_numbers<[1], [0], [0], [1], [0, 0, 1, 1], [], []>} : vector<256x128xbf16>, vector<128x128xbf16>, vector<256x128xf32> -> vector<256x128xf32>
    %96 = arith.addf %91, %95 : vector<256x128xf32>
    %c32_78 = arith.constant 32 : index
    %c0_79 = arith.constant 0 : index
    %97 = vector.load %arg9[%c32_78, %c0_79] : memref<288x128xbf16, #tpu.memory_space<vmem>>, vector<256x128xbf16>
    %c2_80 = arith.constant 2 : index
    %c1_81 = arith.constant 1 : index
    %c0_82 = arith.constant 0 : index
    %c0_83 = arith.constant 0 : index
    %98 = vector.load %arg4[%c2_80, %c1_81, %c0_82, %c0_83] : memref<3x3x128x128xbf16, #tpu.memory_space<vmem>>, vector<1x1x128x128xbf16>
    %99 = vector.shape_cast %98 : vector<1x1x128x128xbf16> to vector<128x128xbf16>
    %cst_84 = arith.constant dense<0.000000e+00> : vector<256x128xf32>
    %100 = tpu.matmul %97, %99, %cst_84 {dimension_numbers = #tpu.dot_dimension_numbers<[1], [0], [0], [1], [0, 0, 1, 1], [], []>} : vector<256x128xbf16>, vector<128x128xbf16>, vector<256x128xf32> -> vector<256x128xf32>
    %101 = arith.addf %96, %100 : vector<256x128xf32>
    %c32_85 = arith.constant 32 : index
    %c0_86 = arith.constant 0 : index
    %102 = vector.load %arg10[%c32_85, %c0_86] : memref<288x128xbf16, #tpu.memory_space<vmem>>, vector<256x128xbf16>
    %c2_87 = arith.constant 2 : index
    %c2_88 = arith.constant 2 : index
    %c0_89 = arith.constant 0 : index
    %c0_90 = arith.constant 0 : index
    %103 = vector.load %arg4[%c2_87, %c2_88, %c0_89, %c0_90] : memref<3x3x128x128xbf16, #tpu.memory_space<vmem>>, vector<1x1x128x128xbf16>
    %104 = vector.shape_cast %103 : vector<1x1x128x128xbf16> to vector<128x128xbf16>
    %cst_91 = arith.constant dense<0.000000e+00> : vector<256x128xf32>
    %105 = tpu.matmul %102, %104, %cst_91 {dimension_numbers = #tpu.dot_dimension_numbers<[1], [0], [0], [1], [0, 0, 1, 1], [], []>} : vector<256x128xbf16>, vector<128x128xbf16>, vector<256x128xf32> -> vector<256x128xf32>
    %106 = arith.addf %101, %105 : vector<256x128xf32>
    %107 = vector.shape_cast %106 : vector<256x128xf32> to vector<1x16x16x128xf32>
    %108 = arith.truncf %107 : vector<1x16x16x128xf32> to vector<1x16x16x128xbf16>
    %c0_92 = arith.constant 0 : index
    %c0_93 = arith.constant 0 : index
    %c0_94 = arith.constant 0 : index
    %c0_95 = arith.constant 0 : index
    %109 = vector.load %arg5[%c0_92, %c0_93, %c0_94, %c0_95] : memref<1x16x16x128xbf16, #tpu.memory_space<vmem>>, vector<1x16x16x128xbf16>
    tpu.vector_store %arg5[%c0_92, %c0_93, %c0_94, %c0_95], %108 {strides = array<i32>} : memref<1x16x16x128xbf16, #tpu.memory_space<vmem>>, vector<1x16x16x128xbf16>,
    %cst_96 = arith.constant dense<0.000000e+00> : vector<128xf32>
    %110 = vector.multi_reduction <add>, %106, %cst_96 [0] : vector<256x128xf32> to vector<128xf32>
    %111 = vector.shape_cast %110 : vector<128xf32> to vector<1x1x128xf32>
    %c0_97 = arith.constant 0 : index
    %c0_98 = arith.constant 0 : index
    %c0_99 = arith.constant 0 : index
    %112 = vector.load %arg6[%c0_97, %c0_98, %c0_99] : memref<1x1x128xf32, #tpu.memory_space<vmem>>, vector<1x1x128xf32>
    tpu.vector_store %arg6[%c0_97, %c0_98, %c0_99], %111 {strides = array<i32>} : memref<1x1x128xf32, #tpu.memory_space<vmem>>, vector<1x1x128xf32>,
    %113 = arith.mulf %106, %106 : vector<256x128xf32>
    %cst_100 = arith.constant dense<0.000000e+00> : vector<128xf32>
    %114 = vector.multi_reduction <add>, %113, %cst_100 [0] : vector<256x128xf32> to vector<128xf32>
    %115 = vector.shape_cast %114 : vector<128xf32> to vector<1x1x128xf32>
    %c0_101 = arith.constant 0 : index
    %c0_102 = arith.constant 0 : index
    %c0_103 = arith.constant 0 : index
    %116 = vector.load %arg7[%c0_101, %c0_102, %c0_103] : memref<1x1x128xf32, #tpu.memory_space<vmem>>, vector<1x1x128xf32>
    tpu.vector_store %arg7[%c0_101, %c0_102, %c0_103], %115 {strides = array<i32>} : memref<1x1x128xf32, #tpu.memory_space<vmem>>, vector<1x1x128xf32>,
    return
  }
  func.func @transform_0(%arg0: i32) -> (i32, i32, i32, i32) {
    %c0_i32 = arith.constant 0 : i32
    %c0_i32_0 = arith.constant 0 : i32
    %c0_i32_1 = arith.constant 0 : i32
    %c0_i32_2 = arith.constant 0 : i32
    return %arg0, %c0_i32, %c0_i32_0, %c0_i32_1 : i32, i32, i32, i32
  }
  func.func @transform_1(%arg0: i32) -> (i32, i32) {
    %c0_i32 = arith.constant 0 : i32
    %c0_i32_0 = arith.constant 0 : i32
    %c0_i32_1 = arith.constant 0 : i32
    return %c0_i32, %c0_i32_0 : i32, i32
  }
  func.func @transform_2(%arg0: i32) -> (i32, i32) {
    %c0_i32 = arith.constant 0 : i32
    %c0_i32_0 = arith.constant 0 : i32
    %c0_i32_1 = arith.constant 0 : i32
    return %c0_i32, %c0_i32_0 : i32, i32
  }
  func.func @transform_3(%arg0: i32) -> (i32, i32, i32, i32) {
    %c0_i32 = arith.constant 0 : i32
    %c0_i32_0 = arith.constant 0 : i32
    %c0_i32_1 = arith.constant 0 : i32
    %c0_i32_2 = arith.constant 0 : i32
    %c0_i32_3 = arith.constant 0 : i32
    return %c0_i32, %c0_i32_0, %c0_i32_1, %c0_i32_2 : i32, i32, i32, i32
  }
  func.func @transform_4(%arg0: i32) -> (i32, i32, i32, i32) {
    %c0_i32 = arith.constant 0 : i32
    %c0_i32_0 = arith.constant 0 : i32
    %c0_i32_1 = arith.constant 0 : i32
    %c0_i32_2 = arith.constant 0 : i32
    return %arg0, %c0_i32, %c0_i32_0, %c0_i32_1 : i32, i32, i32, i32
  }
  func.func @transform_5(%arg0: i32) -> (i32, i32, i32) {
    %c0_i32 = arith.constant 0 : i32
    %c0_i32_0 = arith.constant 0 : i32
    %c0_i32_1 = arith.constant 0 : i32
    return %arg0, %c0_i32, %c0_i32_0 : i32, i32, i32
  }
  func.func @transform_6(%arg0: i32) -> (i32, i32, i32) {
    %c0_i32 = arith.constant 0 : i32
    %c0_i32_0 = arith.constant 0 : i32
    %c0_i32_1 = arith.constant 0 : i32
    return %arg0, %c0_i32, %c0_i32_0 : i32, i32, i32
  }
}

module attributes {stable_mosaic.version = 11 : i64} {
  func.func @_bn_residual_relu_kernel(%arg0: i32, %arg1: memref<256x128xbf16, #tpu.memory_space<vmem>>, %arg2: memref<256x128xbf16, #tpu.memory_space<vmem>>, %arg3: memref<1x128xf32, #tpu.memory_space<vmem>>, %arg4: memref<1x128xf32, #tpu.memory_space<vmem>>, %arg5: memref<256x128xf32, #tpu.memory_space<vmem>>) attributes {dimension_semantics = [#tpu.dimension_semantics<parallel>], iteration_bounds = array<i64: 4>, scalar_prefetch = 0 : i64, scratch_operands = 0 : i64, tpu.core_type = #tpu.core_type<tc>, window_params = [{transform_indices = @transform_0, window_bounds = array<i64: 256, 128>}, {transform_indices = @transform_1, window_bounds = array<i64: 256, 128>}, {pipeline_mode = #tpu.pipeline_mode<synchronous>, transform_indices = @transform_2, window_bounds = array<i64: 1, 128>}, {pipeline_mode = #tpu.pipeline_mode<synchronous>, transform_indices = @transform_3, window_bounds = array<i64: 1, 128>}, {transform_indices = @transform_4, window_bounds = array<i64: 256, 128>}]} {
    %c0 = arith.constant 0 : index
    %c0_0 = arith.constant 0 : index
    %0 = vector.load %arg1[%c0, %c0_0] : memref<256x128xbf16, #tpu.memory_space<vmem>>, vector<256x128xbf16>
    %1 = arith.extf %0 : vector<256x128xbf16> to vector<256x128xf32>
    %c0_1 = arith.constant 0 : index
    %c0_2 = arith.constant 0 : index
    %2 = vector.load %arg3[%c0_1, %c0_2] : memref<1x128xf32, #tpu.memory_space<vmem>>, vector<1x128xf32>
    %3 = vector.broadcast %2 : vector<1x128xf32> to vector<256x128xf32>
    %4 = arith.mulf %1, %3 : vector<256x128xf32>
    %c0_3 = arith.constant 0 : index
    %c0_4 = arith.constant 0 : index
    %5 = vector.load %arg4[%c0_3, %c0_4] : memref<1x128xf32, #tpu.memory_space<vmem>>, vector<1x128xf32>
    %6 = vector.broadcast %5 : vector<1x128xf32> to vector<256x128xf32>
    %7 = arith.addf %4, %6 : vector<256x128xf32>
    %c0_5 = arith.constant 0 : index
    %c0_6 = arith.constant 0 : index
    %8 = vector.load %arg2[%c0_5, %c0_6] : memref<256x128xbf16, #tpu.memory_space<vmem>>, vector<256x128xbf16>
    %9 = arith.extf %8 : vector<256x128xbf16> to vector<256x128xf32>
    %10 = arith.addf %7, %9 : vector<256x128xf32>
    %cst = arith.constant 0.000000e+00 : f32
    %11 = vector.broadcast %cst : f32 to vector<256x128xf32>
    %12 = arith.maximumf %10, %11 : vector<256x128xf32>
    %c0_7 = arith.constant 0 : index
    %c0_8 = arith.constant 0 : index
    %13 = vector.load %arg5[%c0_7, %c0_8] : memref<256x128xf32, #tpu.memory_space<vmem>>, vector<256x128xf32>
    tpu.vector_store %arg5[%c0_7, %c0_8], %12 {strides = array<i32>} : memref<256x128xf32, #tpu.memory_space<vmem>>, vector<256x128xf32>,
    return
  }
  func.func @transform_0(%arg0: i32) -> (i32, i32) {
    %c0_i32 = arith.constant 0 : i32
    %c0_i32_0 = arith.constant 0 : i32
    return %arg0, %c0_i32 : i32, i32
  }
  func.func @transform_1(%arg0: i32) -> (i32, i32) {
    %c0_i32 = arith.constant 0 : i32
    %c0_i32_0 = arith.constant 0 : i32
    return %arg0, %c0_i32 : i32, i32
  }
  func.func @transform_2(%arg0: i32) -> (i32, i32) {
    %c0_i32 = arith.constant 0 : i32
    %c0_i32_0 = arith.constant 0 : i32
    %c0_i32_1 = arith.constant 0 : i32
    return %c0_i32, %c0_i32_0 : i32, i32
  }
  func.func @transform_3(%arg0: i32) -> (i32, i32) {
    %c0_i32 = arith.constant 0 : i32
    %c0_i32_0 = arith.constant 0 : i32
    %c0_i32_1 = arith.constant 0 : i32
    return %c0_i32, %c0_i32_0 : i32, i32
  }
  func.func @transform_4(%arg0: i32) -> (i32, i32) {
    %c0_i32 = arith.constant 0 : i32
    %c0_i32_0 = arith.constant 0 : i32
    return %arg0, %c0_i32 : i32, i32
  }
}

</mosaic_0001>

<bundles_post_ra>
// kernel: bottleneck_forward.7
= control target key start
LH: loop header
LB: loop body
LE: loop exit
PB: predicated region body
PF: predicated region fallthrough
CT: control target
= control target key end

     0   :  { %s1633_s0 = inlined_call_operand.hbm [shape: bf16[1024,128], index: 0, kind: input, shape index: {}]   ;;  %s1634_s1 = inlined_call_operand.hbm [shape: bf16[1024,128], index: 1, kind: input, shape index: {}]   ;;  %s1635_s2 = inlined_call_operand.hbm [shape: f32[1,128], index: 2, kind: input, shape index: {}]   ;;  %s1636_s3 = inlined_call_operand.hbm [shape: f32[1,128], index: 3, kind: input, shape index: {}]   ;;  %s1637_s4 = inlined_call_operand.hbm [shape: f32[1024,128], index: 4, kind: output, shape index: {}]  }
   0x1   :  { %1643 = sst [smem:[#allocation16_spill]] %s1633_s0 }
   0x2   :  { %9 = vsyncpa [#allocation3], 0 }
   0x3   :  { %11 = vsyncpa [#allocation3 + $0x1], 0 }
   0x4   :  { %12 = vsyncpa [#allocation6], 0 }
   0x5   :  { %14 = vsyncpa [#allocation6 + $0x1], 0 }
   0x6   :  { %15 = vsyncpa [#allocation9], 0 }
   0x7   :  { %16 = vsyncpa [#allocation4], 0 }
   0x8   :  { %18 = vsyncpa [#allocation4 + $0x1], 0  ;;  %s1206_s15 = smov 0   ;;  %s1208_s16 = smov 0  }
   0x9   :  { %s1210_s17 = smov 0   ;;  %s1212_s18 = smov 0  }
   0xa LB: > { %s1227_s19 = sadd.s32 4294967295, %s1170_s18   ;;  %s715_s20 = sadd.s32 4294967294, %s1170_s18   ;;  %s1170_s18 = sphi %s1212_s18, %s1664_s18   ;;  %s1166_s17 = sphi %s1210_s17, %s1663_s17   ;;  %s1162_s16 = sphi %s1208_s16, %s1662_s16   ;;  %s1158_s15 = sphi %s1206_s15, %s1661_s15  }
   0xb   : > { %s1231_s21 = sadd.s32 1, %s1170_s18   ;;  %s31_s22 = sadd.s32 1, %s1166_s17 }
   0xc   : > { %s28_s23 = ssub.s32 %s1170_s18, %s1231_s21  ;;  %p38_p0 = scmp.ne.s32.totalorder %s1166_s17, %s1162_s16 }
   0xd   : > { %p29_p1 = scmp.eq.s32.totalorder %s28_s23, 0  ;;  %p39_p2 = scmp.eq.s32.totalorder %s1170_s18, 0 }
   0xe   : > { %p44_p3 = scmp.ne.s32.totalorder %s1162_s16, %s1158_s15  ;;  %p1638_p4 = scmp.eq.s32.totalorder %s1227_s19, 0 }
   0xf   : > { %s1243_s24 = scalar_select %p29_p1, %s1166_s17, %s31_s22  }
  0x10   : > { %p1245_p5 = por %p39_p2, %p38_p0  ;;  %p1251_p6 = por %p1638_p4, %p44_p3 }
  0x11   : > { %p136_p7 = scmp.eq.s32.totalorder %s1227_s19, 3  ;;  %p142_p8 = scmp.eq.s32.totalorder %s715_s20, 3 }
  0x12   : > { %s1645_s26 = scalar_select %p1251_p6, 1, 0 }
  0x13   : > { %p716_p9 = scmp.ge.s32.totalorder %s1170_s18, 1  ;;  %p149_p10 = scmp.lt.s32.totalorder %s1170_s18, 5 }
  0x14   : > { %p1258_p11 = por %p136_p7, %p38_p0  ;;  %p1262_p12 = por %p142_p8, %p44_p3 }
  0x15   : > { %p1266_p13 = pnand %p716_p9, %p149_p10  ;;  %s1172_s30 = smov [#allocation7]  }
  0x16   : > { %s1646_s27 = scalar_select %p1258_p11, 1, 0 }
  0x17   : > { %s1647_s28 = scalar_select %p1262_p12, 1, 0 }
  0x18   : > { %s1648_s29 = scalar_select %p1266_p13, 1, 0 }
  0x19   : > { %p914_p1 = pneg %p1266_p13  ;;  %s162_s5 = sshll.u32 %s1172_s30, 4  ;;  %s163_s5 = int_to_ptr.vmem [resolvable:$true] %s162_s5 }
  0x1a   : > { %p934_p2 = scmp.lt.s32.totalorder %s1170_s18, 4  ;;  %s1173_s8 = smov [#allocation8]  }
  0x1b   : > { %p1275_p0 = pnand %p914_p1, %p1638_p4  ;;  %s173_s9 = sshll.u32 %s1173_s8, 4  ;;  %s1285_s9 = int_to_ptr.vmem [resolvable:$true] %s173_s9 }
  0x1c   : > { %p1281_p3 = pnand %p934_p2, %p1245_p5  ;;  %s976_s12 = scalar_lea.hbm %s1635_s2, 16 }
  0x1d   : > { %p977_p7 = scmp.ne.s32.totalorder %s1635_s2, %s976_s12  ;;  %p978_p8 = pneg %p1275_p0 }
  0x1e   : > { %s1650_s7 = scalar_select %p1281_p3, 1, 0 }
  0x1f   : > { %p979_p5 = pnand %p978_p8, %p977_p7  ;;  %p983_p10 = scmp.lt.u32.totalorder %s976_s12, %s1635_s2 }
  0x21   : > { %p980_p9 = pneg %p979_p5 }
  0x23   : > { %p985_p1 = pnand %p983_p10, %p980_p9 }
  0x25   : > { %988 = shalt.err (!%p985_p1)
}
  0x26   : > { %s989_s23 = scalar_lea.vmem %s163_s5, 16  ;;  %s996_s25 = scalar_lea.vmem %s163_s5, 32 }
  0x27   : > { %p990_p2 = scmp.ne.s32.totalorder %s163_s5, %s989_s23  ;;  %p997_p11 = scmp.lt.s32.totalorder %s163_s5, %s163_s5 }
  0x28   : > { %p998_p6 = scmp.lt.s32.totalorder %s996_s25, %s989_s23 }
  0x29   : > { %p992_p4 = pnand %p990_p2, %p978_p8 }
  0x2a   : > { %p999_p13 = por %p998_p6, %p997_p11 }
  0x2b   : > { %p993_p12 = pneg %p992_p4 }
  0x2d   : > { %p1000_p3 = pnand %p999_p13, %p993_p12 }
  0x2f   : > { %1003 = shalt.err (!%p1000_p3)
}
  0x30   : > { %917 = dma.hbm_to_vmem [thread:$0]  (!%p1275_p0), %s1635_s2, 16, %s163_s5, [#allocation6]  }
  0x31   : > { %s184_s10 = sand.u32 1, %s1166_s17   ;;  %s1004_s13 = scalar_lea.hbm %s1636_s3, 16 }
  0x32   : > { %p1005_p4 = scmp.ne.s32.totalorder %s1636_s3, %s1004_s13  ;;  %p1011_p12 = scmp.lt.u32.totalorder %s1004_s13, %s1636_s3 }
  0x34   : > { %p1007_p6 = pnand %p1005_p4, %p978_p8 }
  0x36   : > { %p1008_p11 = pneg %p1007_p6 }
  0x38   : > { %p1013_p13 = pnand %p1011_p12, %p1008_p11 }
  0x3a   : > { %1016 = shalt.err (!%p1013_p13)
}
  0x3b   : > { %s1017_s5 = scalar_lea.vmem %s1285_s9, 16  ;;  %s1024_s25 = scalar_lea.vmem %s1285_s9, 32 }
  0x3c   : > { %p1018_p3 = scmp.ne.s32.totalorder %s1285_s9, %s1017_s5  ;;  %p1025_p9 = scmp.lt.s32.totalorder %s1285_s9, %s1285_s9 }
  0x3d   : > { %p1026_p10 = scmp.lt.s32.totalorder %s1024_s25, %s1017_s5 }
  0x3e   : > { %p1020_p7 = pnand %p1018_p3, %p978_p8 }
  0x3f   : > { %p1027_p1 = por %p1026_p10, %p1025_p9 }
  0x40   : > { %p1021_p5 = pneg %p1020_p7 }
  0x42   : > { %p1028_p2 = pnand %p1027_p1, %p1021_p5 }
  0x44   : > { %1031 = shalt.err (!%p1028_p2)
}
  0x45   : > { %920 = dma.hbm_to_vmem [thread:$0]  (!%p1275_p0), %s1636_s3, 16, %s1285_s9, [#allocation9]  }
  0x46   : > { %s1336_s11 = sshll.u32 %s184_s10, 7  ;;  %s739_s12 = sshll.u32 %s1170_s18, 11 }
  0x47   : > { %s1651_s0 = sld [smem:[#allocation16_spill]]  ;;  %s188_s6 = scalar_lea.vmem [#allocation2], %s1336_s11 }
  0x48   : > { %s195_s22 = sshll.u32 %s188_s6, 4  ;;  %s1349_s23 = scalar_lea.sflag [#allocation3], %s184_s10  ;;  %s1347_s22 = int_to_ptr.vmem [resolvable:$true] %s195_s22 }
  0x49   : > { %p1652_p8 = scmp.ne.s32.totalorder %s1650_s7, 0 }
  0x4b   : > { %p1034_p4 = pneg %p1652_p8 }
  0x4d   : > { %s1344_s20 = scalar_lea.hbm %s1651_s0, %s739_s12  ;;  %s1037_s30 = scalar_lea.hbm %s1651_s0, 8192 }
  0x4e   : > { %s1032_s9 = scalar_lea.hbm %s1344_s20, 2048  ;;  %p1038_p12 = scmp.lt.u32.totalorder %s1344_s20, %s1651_s0 }
  0x4f   : > { %p1033_p0 = scmp.ne.s32.totalorder %s1344_s20, %s1032_s9  ;;  %p1039_p13 = scmp.lt.u32.totalorder %s1037_s30, %s1032_s9 }
  0x50   : > { %p1041_p7 = scmp.lt.u32.totalorder %s1032_s9, %s1344_s20 }
  0x51   : > { %p1035_p6 = pnand %p1034_p4, %p1033_p0  ;;  %p1040_p3 = por %p1039_p13, %p1038_p12 }
  0x53   : > { %p1036_p11 = pneg %p1035_p6  ;;  %p1042_p5 = por %p1041_p7, %p1040_p3 }
  0x55   : > { %p1043_p9 = pnand %p1042_p5, %p1036_p11 }
  0x57   : > { %1046 = shalt.err (!%p1043_p9)
}
  0x58   : > { %s1047_s10 = scalar_lea.vmem %s1347_s22, 2048  ;;  %s1174_s14 = smov [#allocation2]  }
  0x59   : > { %p1048_p10 = scmp.ne.s32.totalorder %s1347_s22, %s1047_s10  ;;  %s1052_s6 = sshll.u32 %s1174_s14, 4  ;;  %s1053_s6 = int_to_ptr.vmem [resolvable:$false] %s1052_s6 }
  0x5a   : > { %s1054_s5 = scalar_lea.vmem %s1053_s6, 4096  ;;  %p1055_p0 = scmp.lt.s32.totalorder %s1347_s22, %s1053_s6 }
  0x5b   : > { %p1050_p1 = pnand %p1048_p10, %p1034_p4  ;;  %p1056_p6 = scmp.lt.s32.totalorder %s1054_s5, %s1047_s10 }
  0x5d   : > { %p1051_p2 = pneg %p1050_p1  ;;  %p1057_p12 = por %p1056_p6, %p1055_p0 }
  0x5f   : > { %p1058_p13 = pnand %p1057_p12, %p1051_p2 }
  0x61   : > { %1061 = shalt.err (!%p1058_p13)
}
  0x62   : > { %s1175_s9 = smov 64   ;;  %s1176_s25 = smov 4  }
  0x63   : > { %924 = dma.hbm_to_vmem [thread:$0]  (!%p1652_p8), %s1344_s20, 2048, %s1347_s22, %s1349_s23, %s1175_s9, %s1175_s9, %s1176_s25  }
  0x64   : > { %s1385_s13 = scalar_lea.hbm %s1634_s1, %s739_s12  ;;  %s209_s10 = scalar_lea.vmem [#allocation5], %s1336_s11 }
  0x65   : > { %s216_s14 = sshll.u32 %s209_s10, 4  ;;  %s205_s6 = sand.u32 1, %s1170_s18   ;;  %s1388_s14 = int_to_ptr.vmem [resolvable:$true] %s216_s14 }
  0x66   : > { %s1391_s5 = scalar_lea.sflag [#allocation6], %s205_s6  ;;  %s1062_s0 = scalar_lea.hbm %s1385_s13, 2048 }
  0x67   : > { %p1063_p11 = scmp.ne.s32.totalorder %s1385_s13, %s1062_s0  ;;  %s1067_s22 = scalar_lea.hbm %s1634_s1, 8192 }
  0x68   : > { %p1068_p5 = scmp.lt.u32.totalorder %s1385_s13, %s1634_s1  ;;  %p1069_p9 = scmp.lt.u32.totalorder %s1067_s22, %s1062_s0 }
  0x69   : > { %p1065_p3 = pnand %p1063_p11, %p1034_p4  ;;  %p1071_p1 = scmp.lt.u32.totalorder %s1062_s0, %s1385_s13 }
  0x6a   : > { %p1070_p10 = por %p1069_p9, %p1068_p5 }
  0x6b   : > { %p1066_p7 = pneg %p1065_p3 }
  0x6c   : > { %p1072_p2 = por %p1071_p1, %p1070_p10 }
  0x6e   : > { %p1073_p0 = pnand %p1072_p2, %p1066_p7 }
  0x70   : > { %1076 = shalt.err (!%p1073_p0)
}
  0x71   : > { %s1077_s11 = scalar_lea.vmem %s1388_s14, 2048  ;;  %s1177_s8 = smov [#allocation5]  }
  0x72   : > { %p1078_p6 = scmp.ne.s32.totalorder %s1388_s14, %s1077_s11  ;;  %s1082_s10 = sshll.u32 %s1177_s8, 4  ;;  %s1083_s10 = int_to_ptr.vmem [resolvable:$false] %s1082_s10 }
  0x73   : > { %s1084_s6 = scalar_lea.vmem %s1083_s10, 4096  ;;  %p1085_p11 = scmp.lt.s32.totalorder %s1388_s14, %s1083_s10 }
  0x74   : > { %p1080_p12 = pnand %p1078_p6, %p1034_p4  ;;  %p1086_p3 = scmp.lt.s32.totalorder %s1084_s6, %s1077_s11 }
  0x76   : > { %p1081_p13 = pneg %p1080_p12  ;;  %p1087_p5 = por %p1086_p3, %p1085_p11 }
  0x78   : > { %p1088_p9 = pnand %p1087_p5, %p1081_p13 }
  0x7a   : > { %1091 = shalt.err (!%p1088_p9)
}
  0x7b   : > { %927 = dma.hbm_to_vmem [thread:$0]  (!%p1652_p8), %s1385_s13, 2048, %s1388_s14, %s1391_s5, %s1175_s9, %s1175_s9, %s1176_s25  }
  0x7c   : > { %p1653_p4 = scmp.ne.s32.totalorder %s1648_s29, 0 }
  0x7d   : > { %s1423_s0 = sand.u32 (!%p1653_p4), 1, %s1162_s16   ;;  %p1654_p7 = scmp.ne.s32.totalorder (!%p1653_p4), %s1645_s26, 0 }
  0x7e   : > { %228 = sbr.rel (%p1653_p4) target bundleno = 212 (0xd4), region = 36  ;;  %s727_s20 = sshll.u32 (!%p1653_p4), %s1423_s0, 7 }
  0x7f   : > { %s231_s12 = scalar_lea.sflag (!%p1653_p4), [#allocation3], %s1423_s0  ;;  %s1427_s22 = scalar_lea.vmem (!%p1653_p4), [#allocation2], %s727_s20 }
  0x85   : > { %1137 = dma.done.wait (%p1654_p7), %s231_s12, 2048  }
  0x86   : > { %1139 = vsyncadd (%p1654_p7), %s231_s12, 4294965248  ;;  %s239_s7 = sand.u32 1, %s1227_s19   ;;  %s1434_s9 = scalar_lea.vmem [#allocation5], %s727_s20 }
  0x87   : > { %s240_s29 = scalar_lea.sflag [#allocation6], %s239_s7 }
  0x88   : > { %1141 = dma.done.wait (%p1654_p7), %s240_s29, 2048  }
  0x89   : > { %1143 = vsyncadd (%p1654_p7), %s240_s29, 4294965248  ;;  %p1655_p8 = scmp.eq.s32.totalorder %s1227_s19, 0 }
  0x8b   : > { %1145 = dma.done.wait (%p1655_p8), [#allocation6], 16   ;;  %p1656_p10 = pmov %p1655_p8 }
  0x8c   : > { %p1657_p1 = pmov %p1655_p8 }
  0x8d   : > { %1147 = vsyncadd (%p1656_p10), [#allocation6], 4294967280 }
  0x8e   : > { %1149 = dma.done.wait (%p1657_p1), [#allocation9], 16   ;;  %p1658_p2 = pmov %p1657_p1 }
  0x8f   : > { %v743_v0 = vld [vmem:[%s1427_s22] sm:$0xff]   ;;  %v870_v5 = vld [vmem:[%s1427_s22 + $0x8] sm:$0xff]   ;;  %v871_v12 = vld [vmem:[%s1427_s22 + $0x10] sm:$0xff]   ;;  %s731_s26 = sshll.u32 %s1423_s0, 8  ;;  %s741_s13 = sshll.u32 %s1227_s19, 12 }
  0x90   : > { %1151 = vsyncadd (%p1658_p2), [#allocation9], 4294967280  ;;  %v1449_v1 = vld [vmem:[#allocation7] ss:$0 sm:$0xff]  ;;  %v744_v2 = vunpack.c.l.bf16 %v743_v0  ;;  %v745_v4 = vunpack.c.h.bf16 %v743_v0  ;;  %v885_v6 = vld [vmem:[%s1434_s9 + $0x8] sm:$0xff]   ;;  %v748_v10 = vunpack.c.l.bf16 %v870_v5  ;;  %v749_v16 = vunpack.c.h.bf16 %v870_v5  ;;  %s1477_s25 = scalar_lea.vmem [#allocation10], %s731_s26  ;;  %s1586_s30 = scalar_lea.hbm %s1637_s4, %s741_s13 }
  0x91   : > { %v807_v3 = vld [vmem:[%s1434_s9] sm:$0xff]   ;;  %v812_v11 = vunpack.c.l.bf16 %v885_v6  ;;  %v886_v13 = vld [vmem:[%s1434_s9 + $0x10] sm:$0xff]   ;;  %v813_v17 = vunpack.c.h.bf16 %v885_v6  ;;  %v872_v18 = vld [vmem:[%s1427_s22 + $0x18] sm:$0xff]   ;;  %v752_v20 = vunpack.c.l.bf16 %v871_v12  ;;  %v753_v22 = vunpack.c.h.bf16 %v871_v12  ;;  %s600_s14 = sshll.u32 %s1477_s25, 4  ;;  %s587_s11 = scalar_lea.sflag [#allocation4], %s1423_s0  ;;  %s1588_s14 = int_to_ptr.vmem [resolvable:$true] %s600_s14 }
  0x92   : > { %v1454_v7 = vld [vmem:[#allocation8] ss:$0 sm:$0xff]  ;;  %v808_v8 = vunpack.c.l.bf16 %v807_v3  ;;  %v809_v9 = vunpack.c.h.bf16 %v807_v3  ;;  %v355_v14 = vmul.f32 %v744_v2, %v1449_v1  ;;  %v356_v15 = vmul.f32 %v745_v4, %v1449_v1  ;;  %v887_v23 = vld [vmem:[%s1434_s9 + $0x18] sm:$0xff]   ;;  %v874_v54 = vld [vmem:[%s1427_s22 + $0x28] sm:$0xff]   ;;  %s1092_s19 = scalar_lea.vmem %s1588_s14, 4096  ;;  %p1659_p6 = scmp.ne.s32.totalorder %s1646_s27, 0 }
  0x93   : > { %v357_v19 = vmul.f32 %v748_v10, %v1449_v1  ;;  %v816_v21 = vunpack.c.l.bf16 %v886_v13  ;;  %v358_v26 = vmul.f32 %v749_v16, %v1449_v1  ;;  %v817_v27 = vunpack.c.h.bf16 %v886_v13  ;;  %v873_v40 = vld [vmem:[%s1427_s22 + $0x20] sm:$0xff]   ;;  %v889_v55 = vld [vmem:[%s1434_s9 + $0x28] sm:$0xff]   ;;  %v875_v0 = vld [vmem:[%s1427_s22 + $0x30] sm:$0xff]   ;;  %p1093_p0 = scmp.ne.s32.totalorder %s1588_s14, %s1092_s19  ;;  %s1178_s8 = smov [#allocation10]  }
  0x94   : > { %v394_v24 = vadd.f32 %v1454_v7, %v355_v14  ;;  %v395_v25 = vadd.f32 %v1454_v7, %v356_v15  ;;  %v359_v29 = vmul.f32 %v752_v20, %v1449_v1  ;;  %v360_v30 = vmul.f32 %v753_v22, %v1449_v1  ;;  %v888_v45 = vld [vmem:[%s1434_s9 + $0x20] sm:$0xff]   ;;  %v890_v2 = vld [vmem:[%s1434_s9 + $0x30] sm:$0xff]   ;;  %v876_v16 = vld [vmem:[%s1427_s22 + $0x38] sm:$0xff]   ;;  %s1096_s10 = sshll.u32 %s1178_s8, 4  ;;  %s1097_s10 = int_to_ptr.vmem [resolvable:$false] %s1096_s10 }
  0x95   : > { %v396_v28 = vadd.f32 %v1454_v7, %v357_v19  ;;  %v756_v31 = vunpack.c.l.bf16 %v872_v18  ;;  %v397_v34 = vadd.f32 %v1454_v7, %v358_v26  ;;  %v820_v35 = vunpack.c.l.bf16 %v887_v23  ;;  %p1094_p12 = pnand %p1093_p0, %p1659_p6  ;;  %s1098_s6 = scalar_lea.vmem %s1097_s10, 8192 }
  0x96   : > { %v490_v32 = vadd.f32 %v808_v8, %v394_v24  ;;  %v491_v33 = vadd.f32 %v809_v9, %v395_v25  ;;  %v398_v37 = vadd.f32 %v1454_v7, %v359_v29  ;;  %v399_v38 = vadd.f32 %v1454_v7, %v360_v30  ;;  %p1099_p11 = scmp.lt.s32.totalorder %s1588_s14, %s1097_s10  ;;  %p1100_p3 = scmp.lt.s32.totalorder %s1098_s6, %s1092_s19 }
  0x97   : > { %v492_v36 = vadd.f32 %v812_v11, %v396_v28  ;;  %v361_v39 = vmul.f32 %v756_v31, %v1449_v1  ;;  %v493_v43 = vadd.f32 %v813_v17, %v397_v34  ;;  %v757_v44 = vunpack.c.h.bf16 %v872_v18  ;;  %v877_v34 = vld [vmem:[%s1427_s22 + $0x40] sm:$0xff]   ;;  %p1095_p13 = pneg %p1094_p12 }
  0x98   : > { %v522_v41 = vmax.f32 %v490_v32, 0.0  ;;  %v523_v42 = vmax.f32 %v491_v33, 0.0  ;;  %v494_v47 = vadd.f32 %v816_v21, %v398_v37  ;;  %v495_v48 = vadd.f32 %v817_v27, %v399_v38  ;;  %v891_v21 = vld [vmem:[%s1434_s9 + $0x38] sm:$0xff]   ;;  %p1101_p5 = por %p1100_p3, %p1099_p11 }
  0x99   : > { %v524_v46 = vmax.f32 %v492_v36, 0.0  ;;  %v400_v49 = vadd.f32 %v1454_v7, %v361_v39  ;;  %v525_v50 = vmax.f32 %v493_v43, 0.0  ;;  %v362_v51 = vmul.f32 %v757_v44, %v1449_v1  ;;  %v892_v39 = vld [vmem:[%s1434_s9 + $0x40] sm:$0xff]  }
  0x9a   : > { %554 = vst [vmem:[%s1477_s25] sm:$0xff] %v522_v41  ;;  %555 = vst [vmem:[%s1477_s25 + $0x8] sm:$0xff] %v523_v42  ;;  %v821_v52 = vunpack.c.h.bf16 %v887_v23  ;;  %v760_v53 = vunpack.c.l.bf16 %v873_v40  ;;  %v526_v56 = vmax.f32 %v494_v47, 0.0  ;;  %v527_v57 = vmax.f32 %v495_v48, 0.0  ;;  %v878_v48 = vld [vmem:[%s1427_s22 + $0x48] sm:$0xff]   ;;  %p1102_p9 = pnand %p1101_p5, %p1095_p13 }
  0x9b   : > { %556 = vst [vmem:[%s1477_s25 + $0x10] sm:$0xff] %v524_v46  ;;  %v496_v58 = vadd.f32 %v820_v35, %v400_v49  ;;  %v824_v59 = vunpack.c.l.bf16 %v888_v45  ;;  %557 = vst [vmem:[%s1477_s25 + $0x18] sm:$0xff] %v525_v50  ;;  %v401_v60 = vadd.f32 %v1454_v7, %v362_v51  ;;  %v761_v62 = vunpack.c.h.bf16 %v873_v40  ;;  %v893_v49 = vld [vmem:[%s1434_s9 + $0x48] sm:$0xff]  }
  0x9c   : > { %v363_v61 = vmul.f32 %v760_v53, %v1449_v1  ;;  %v825_v63 = vunpack.c.h.bf16 %v888_v45  ;;  %558 = vst [vmem:[%s1477_s25 + $0x20] sm:$0xff] %v526_v56  ;;  %559 = vst [vmem:[%s1477_s25 + $0x28] sm:$0xff] %v527_v57  ;;  %v764_v4 = vunpack.c.l.bf16 %v874_v54  ;;  %v828_v5 = vunpack.c.l.bf16 %v889_v55 }
  0x9d   : > { %v528_v3 = vmax.f32 %v496_v58, 0.0  ;;  %v765_v6 = vunpack.c.h.bf16 %v874_v54  ;;  %v497_v8 = vadd.f32 %v821_v52, %v401_v60  ;;  %v364_v10 = vmul.f32 %v761_v62, %v1449_v1  ;;  %v879_v58 = vld [vmem:[%s1427_s22 + $0x50] sm:$0xff]  }
  0x9e   : > { %v402_v9 = vadd.f32 %v1454_v7, %v363_v61  ;;  %v829_v11 = vunpack.c.h.bf16 %v889_v55  ;;  %v365_v12 = vmul.f32 %v764_v4, %v1449_v1  ;;  %v768_v14 = vunpack.c.l.bf16 %v875_v0 }
  0x9f   : > { %560 = vst [vmem:[%s1477_s25 + $0x30] sm:$0xff] %v528_v3  ;;  %v366_v13 = vmul.f32 %v765_v6, %v1449_v1  ;;  %v832_v15 = vunpack.c.l.bf16 %v890_v2  ;;  %v529_v17 = vmax.f32 %v497_v8, 0.0  ;;  %v403_v19 = vadd.f32 %v1454_v7, %v364_v10  ;;  %v880_v10 = vld [vmem:[%s1427_s22 + $0x58] sm:$0xff]  }
  0xa0   : > { %v498_v18 = vadd.f32 %v824_v59, %v402_v9  ;;  %v769_v20 = vunpack.c.h.bf16 %v875_v0  ;;  %v404_v22 = vadd.f32 %v1454_v7, %v365_v12  ;;  %v367_v24 = vmul.f32 %v768_v14, %v1449_v1 }
  0xa1   : > { %v405_v23 = vadd.f32 %v1454_v7, %v366_v13  ;;  %v833_v25 = vunpack.c.h.bf16 %v890_v2  ;;  %561 = vst [vmem:[%s1477_s25 + $0x38] sm:$0xff] %v529_v17  ;;  %v499_v27 = vadd.f32 %v825_v63, %v403_v19  ;;  %v772_v29 = vunpack.c.l.bf16 %v876_v16  ;;  %v894_v63 = vld [vmem:[%s1434_s9 + $0x50] sm:$0xff]   ;;  %v895_v19 = vld [vmem:[%s1434_s9 + $0x58] sm:$0xff]  }
  0xa2   : > { %v530_v26 = vmax.f32 %v498_v18, 0.0  ;;  %v368_v28 = vmul.f32 %v769_v20, %v1449_v1  ;;  %v500_v30 = vadd.f32 %v828_v5, %v404_v22  ;;  %v406_v32 = vadd.f32 %v1454_v7, %v367_v24 }
  0xa3   : > { %v501_v31 = vadd.f32 %v829_v11, %v405_v23  ;;  %v836_v33 = vunpack.c.l.bf16 %v891_v21  ;;  %v531_v35 = vmax.f32 %v499_v27, 0.0  ;;  %v369_v37 = vmul.f32 %v772_v29, %v1449_v1 }
  0xa4   : > { %562 = vst [vmem:[%s1477_s25 + $0x40] sm:$0xff] %v530_v26  ;;  %v407_v36 = vadd.f32 %v1454_v7, %v368_v28  ;;  %v773_v38 = vunpack.c.h.bf16 %v876_v16  ;;  %v532_v40 = vmax.f32 %v500_v30, 0.0  ;;  %v502_v42 = vadd.f32 %v832_v15, %v406_v32  ;;  %v881_v28 = vld [vmem:[%s1427_s22 + $0x60] sm:$0xff]  }
  0xa5   : > { %v533_v41 = vmax.f32 %v501_v31, 0.0  ;;  %v837_v43 = vunpack.c.h.bf16 %v891_v21  ;;  %563 = vst [vmem:[%s1477_s25 + $0x48] sm:$0xff] %v531_v35  ;;  %v408_v45 = vadd.f32 %v1454_v7, %v369_v37  ;;  %v776_v47 = vunpack.c.l.bf16 %v877_v34 }
  0xa6   : > { %v503_v44 = vadd.f32 %v833_v25, %v407_v36  ;;  %v370_v46 = vmul.f32 %v773_v38, %v1449_v1  ;;  %564 = vst [vmem:[%s1477_s25 + $0x50] sm:$0xff] %v532_v40  ;;  %v534_v50 = vmax.f32 %v502_v42, 0.0  ;;  %v840_v51 = vunpack.c.l.bf16 %v892_v39  ;;  %v882_v42 = vld [vmem:[%s1427_s22 + $0x68] sm:$0xff]  }
  0xa7   : > { %565 = vst [vmem:[%s1477_s25 + $0x58] sm:$0xff] %v533_v41  ;;  %v777_v52 = vunpack.c.h.bf16 %v877_v34  ;;  %v841_v53 = vunpack.c.h.bf16 %v892_v39  ;;  %v504_v55 = vadd.f32 %v836_v33, %v408_v45  ;;  %v371_v57 = vmul.f32 %v776_v47, %v1449_v1  ;;  %v896_v33 = vld [vmem:[%s1434_s9 + $0x60] sm:$0xff]  }
  0xa8   : > { %v535_v54 = vmax.f32 %v503_v44, 0.0  ;;  %v409_v56 = vadd.f32 %v1454_v7, %v370_v46  ;;  %566 = vst [vmem:[%s1477_s25 + $0x60] sm:$0xff] %v534_v50  ;;  %v780_v60 = vunpack.c.l.bf16 %v878_v48  ;;  %v844_v61 = vunpack.c.l.bf16 %v893_v49 }
  0xa9   : > { %v372_v59 = vmul.f32 %v777_v52, %v1449_v1  ;;  %v781_v62 = vunpack.c.h.bf16 %v878_v48  ;;  %v536_v0 = vmax.f32 %v504_v55, 0.0  ;;  %v410_v3 = vadd.f32 %v1454_v7, %v371_v57  ;;  %v883_v52 = vld [vmem:[%s1427_s22 + $0x70] sm:$0xff]  }
  0xaa   : > { %567 = vst [vmem:[%s1477_s25 + $0x68] sm:$0xff] %v535_v54  ;;  %v505_v2 = vadd.f32 %v837_v43, %v409_v56  ;;  %v845_v4 = vunpack.c.h.bf16 %v893_v49  ;;  %v373_v6 = vmul.f32 %v780_v60, %v1449_v1  ;;  %v784_v9 = vunpack.c.l.bf16 %v879_v58  ;;  %v897_v43 = vld [vmem:[%s1434_s9 + $0x68] sm:$0xff]   ;;  %v898_v57 = vld [vmem:[%s1434_s9 + $0x70] sm:$0xff]  }
  0xab   : > { %v411_v5 = vadd.f32 %v1454_v7, %v372_v59  ;;  %v374_v8 = vmul.f32 %v781_v62, %v1449_v1  ;;  %568 = vst [vmem:[%s1477_s25 + $0x70] sm:$0xff] %v536_v0  ;;  %v506_v12 = vadd.f32 %v840_v51, %v410_v3  ;;  %v848_v13 = vunpack.c.l.bf16 %v894_v63  ;;  %v884_v3 = vld [vmem:[%s1427_s22 + $0x78] sm:$0xff]  }
  0xac   : > { %v537_v11 = vmax.f32 %v505_v2, 0.0  ;;  %v785_v14 = vunpack.c.h.bf16 %v879_v58  ;;  %v412_v16 = vadd.f32 %v1454_v7, %v373_v6  ;;  %v375_v18 = vmul.f32 %v784_v9, %v1449_v1 }
  0xad   : > { %v507_v15 = vadd.f32 %v841_v53, %v411_v5  ;;  %v413_v17 = vadd.f32 %v1454_v7, %v374_v8  ;;  %v538_v20 = vmax.f32 %v506_v12, 0.0  ;;  %v849_v22 = vunpack.c.h.bf16 %v894_v63 }
  0xae   : > { %569 = vst [vmem:[%s1477_s25 + $0x78] sm:$0xff] %v537_v11  ;;  %v376_v21 = vmul.f32 %v785_v14, %v1449_v1  ;;  %v788_v23 = vunpack.c.l.bf16 %v880_v10  ;;  %v508_v25 = vadd.f32 %v844_v61, %v412_v16  ;;  %v414_v27 = vadd.f32 %v1454_v7, %v375_v18 }
  0xaf   : > { %v539_v24 = vmax.f32 %v507_v15, 0.0  ;;  %v509_v26 = vadd.f32 %v845_v4, %v413_v17  ;;  %570 = vst [vmem:[%s1477_s25 + $0x80] sm:$0xff] %v538_v20  ;;  %v852_v31 = vunpack.c.l.bf16 %v895_v19  ;;  %v789_v32 = vunpack.c.h.bf16 %v880_v10 }
  0xb0   : > { %v415_v29 = vadd.f32 %v1454_v7, %v376_v21  ;;  %v377_v30 = vmul.f32 %v788_v23, %v1449_v1  ;;  %v540_v34 = vmax.f32 %v508_v25, 0.0  ;;  %v510_v36 = vadd.f32 %v848_v13, %v414_v27  ;;  %v899_v13 = vld [vmem:[%s1434_s9 + $0x78] sm:$0xff]  }
  0xb1   : > { %571 = vst [vmem:[%s1477_s25 + $0x88] sm:$0xff] %v539_v24  ;;  %v541_v35 = vmax.f32 %v509_v26, 0.0  ;;  %v853_v37 = vunpack.c.h.bf16 %v895_v19  ;;  %v378_v40 = vmul.f32 %v789_v32, %v1449_v1  ;;  %v792_v41 = vunpack.c.l.bf16 %v881_v28 }
  0xb2   : > { %v511_v38 = vadd.f32 %v849_v22, %v415_v29  ;;  %v416_v39 = vadd.f32 %v1454_v7, %v377_v30  ;;  %572 = vst [vmem:[%s1477_s25 + $0x90] sm:$0xff] %v540_v34  ;;  %v542_v44 = vmax.f32 %v510_v36, 0.0  ;;  %v856_v45 = vunpack.c.l.bf16 %v896_v33 }
  0xb3   : > { %573 = vst [vmem:[%s1477_s25 + $0x98] sm:$0xff] %v541_v35  ;;  %v793_v46 = vunpack.c.h.bf16 %v881_v28  ;;  %v857_v47 = vunpack.c.h.bf16 %v896_v33  ;;  %v417_v50 = vadd.f32 %v1454_v7, %v378_v40  ;;  %v379_v51 = vmul.f32 %v792_v41, %v1449_v1 }
  0xb4   : > { %v543_v48 = vmax.f32 %v511_v38, 0.0  ;;  %v512_v49 = vadd.f32 %v852_v31, %v416_v39  ;;  %574 = vst [vmem:[%s1477_s25 + $0xa0] sm:$0xff] %v542_v44  ;;  %v796_v54 = vunpack.c.l.bf16 %v882_v42  ;;  %v860_v55 = vunpack.c.l.bf16 %v897_v43 }
  0xb5   : > { %v380_v53 = vmul.f32 %v793_v46, %v1449_v1  ;;  %v797_v56 = vunpack.c.h.bf16 %v882_v42  ;;  %v513_v59 = vadd.f32 %v853_v37, %v417_v50  ;;  %v418_v60 = vadd.f32 %v1454_v7, %v379_v51 }
  0xb6   : > { %575 = vst [vmem:[%s1477_s25 + $0xa8] sm:$0xff] %v543_v48  ;;  %v544_v58 = vmax.f32 %v512_v49, 0.0  ;;  %v861_v61 = vunpack.c.h.bf16 %v897_v43  ;;  %v381_v63 = vmul.f32 %v796_v54, %v1449_v1  ;;  %v800_v2 = vunpack.c.l.bf16 %v883_v52 }
  0xb7   : > { %v419_v62 = vadd.f32 %v1454_v7, %v380_v53  ;;  %v382_v0 = vmul.f32 %v797_v56, %v1449_v1  ;;  %v545_v4 = vmax.f32 %v513_v59, 0.0  ;;  %v514_v5 = vadd.f32 %v856_v45, %v418_v60 }
  0xb8   : > { %576 = vst [vmem:[%s1477_s25 + $0xb0] sm:$0xff] %v544_v58  ;;  %v864_v6 = vunpack.c.l.bf16 %v898_v57  ;;  %v801_v8 = vunpack.c.h.bf16 %v883_v52  ;;  %v420_v10 = vadd.f32 %v1454_v7, %v381_v63  ;;  %v383_v12 = vmul.f32 %v800_v2, %v1449_v1 }
  0xb9   : > { %v515_v9 = vadd.f32 %v857_v47, %v419_v62  ;;  %v421_v11 = vadd.f32 %v1454_v7, %v382_v0  ;;  %577 = vst [vmem:[%s1477_s25 + $0xb8] sm:$0xff] %v545_v4  ;;  %v546_v14 = vmax.f32 %v514_v5, 0.0  ;;  %v865_v16 = vunpack.c.h.bf16 %v898_v57 }
  0xba   : > { %v384_v15 = vmul.f32 %v801_v8, %v1449_v1  ;;  %v804_v17 = vunpack.c.l.bf16 %v884_v3  ;;  %v516_v19 = vadd.f32 %v860_v55, %v420_v10  ;;  %v422_v21 = vadd.f32 %v1454_v7, %v383_v12 }
  0xbb   : > { %v547_v18 = vmax.f32 %v515_v9, 0.0  ;;  %v517_v20 = vadd.f32 %v861_v61, %v421_v11  ;;  %578 = vst [vmem:[%s1477_s25 + $0xc0] sm:$0xff] %v546_v14  ;;  %v868_v24 = vunpack.c.l.bf16 %v899_v13  ;;  %v805_v25 = vunpack.c.h.bf16 %v884_v3 }
  0xbc   : > { %v423_v22 = vadd.f32 %v1454_v7, %v384_v15  ;;  %v385_v23 = vmul.f32 %v804_v17, %v1449_v1  ;;  %v548_v26 = vmax.f32 %v516_v19, 0.0  ;;  %v518_v28 = vadd.f32 %v864_v6, %v422_v21 }
  0xbd   : > { %579 = vst [vmem:[%s1477_s25 + $0xc8] sm:$0xff] %v547_v18  ;;  %v549_v27 = vmax.f32 %v517_v20, 0.0  ;;  %v386_v31 = vmul.f32 %v805_v25, %v1449_v1  ;;  %v869_v32 = vunpack.c.h.bf16 %v899_v13 }
  0xbe   : > { %v519_v29 = vadd.f32 %v865_v16, %v423_v22  ;;  %v424_v30 = vadd.f32 %v1454_v7, %v385_v23  ;;  %580 = vst [vmem:[%s1477_s25 + $0xd0] sm:$0xff] %v548_v26  ;;  %v550_v33 = vmax.f32 %v518_v28, 0.0 }
  0xbf   : > { %581 = vst [vmem:[%s1477_s25 + $0xd8] sm:$0xff] %v549_v27  ;;  %v425_v36 = vadd.f32 %v1454_v7, %v386_v31 }
  0xc0   : > { %v551_v34 = vmax.f32 %v519_v29, 0.0  ;;  %v520_v35 = vadd.f32 %v868_v24, %v424_v30  ;;  %582 = vst [vmem:[%s1477_s25 + $0xe0] sm:$0xff] %v550_v33 }
  0xc1   : > { %v521_v38 = vadd.f32 %v869_v32, %v425_v36 }
  0xc2   : > { %583 = vst [vmem:[%s1477_s25 + $0xe8] sm:$0xff] %v551_v34  ;;  %v552_v37 = vmax.f32 %v520_v35, 0.0 }
  0xc3   : > { %v553_v1 = vmax.f32 %v521_v38, 0.0 }
  0xc4   : > { %584 = vst [vmem:[%s1477_s25 + $0xf0] sm:$0xff] %v552_v37 }
  0xc5   : > { %585 = vst [vmem:[%s1477_s25 + $0xf8] sm:$0xff] %v553_v1 }
  0xc6   : > { %1105 = shalt.err (!%p1102_p9)
}
  0xc7   : > { %s1106_s20 = scalar_lea.hbm %s1586_s30, 4096  ;;  %s1110_s7 = scalar_lea.hbm %s1637_s4, 16384 }
  0xc8   : > { %p1107_p4 = scmp.ne.s32.totalorder %s1586_s30, %s1106_s20  ;;  %p1111_p10 = scmp.lt.u32.totalorder %s1586_s30, %s1637_s4 }
  0xc9   : > { %p1112_p1 = scmp.lt.u32.totalorder %s1110_s7, %s1106_s20  ;;  %p1114_p0 = scmp.lt.u32.totalorder %s1106_s20, %s1586_s30 }
  0xca   : > { %p1108_p7 = pnand %p1107_p4, %p1659_p6 }
  0xcb   : > { %p1113_p2 = por %p1112_p1, %p1111_p10 }
  0xcc   : > { %p1109_p8 = pneg %p1108_p7 }
  0xcd   : > { %p1115_p12 = por %p1114_p0, %p1113_p2 }
  0xcf   : > { %p1116_p13 = pnand %p1115_p12, %p1109_p8 }
  0xd1   : > { %1119 = shalt.err (!%p1116_p13)
}
  0xd2   : > { %s1179_s26 = smov 128   ;;  %s1180_s25 = smov 8  }
  0xd3   : > { %912 = dma.vmem_to_hbm [thread:$0]  (%p1659_p6), %s1588_s14, 4096, %s1586_s30, %s587_s11, %s1179_s26, %s1179_s26, %s1180_s25  }
  0xd4 PF: > { %p937_p11 = scmp.ge.s32.totalorder %s1170_s18, 2  ;;  %s615_s13 = sand.u32 1, %s1158_s15  }
  0xd5   : > { %p1660_p3 = scmp.ne.s32.totalorder %s1647_s28, 0  ;;  %s616_s5 = scalar_lea.sflag [#allocation4], %s615_s13 }
  0xd7   : > { %p929_p5 = pnand %p937_p11, %p1660_p3 }
  0xd9   : > { %1153 = dma.done.wait (!%p929_p5), %s616_s5, 4096  }
  0xda   : > { %1155 = vsyncadd (!%p929_p5), %s616_s5, 4294963200  ;;  %p21_p9 = scmp.ge.s32.totalorder %s1231_s21, 6   ;;  %s1661_s15 = smov %s1162_s16 }
  0xdb   : > { %s1662_s16 = smov %s1166_s17  ;;  %s1663_s17 = smov %s1243_s24 }
  0xdc   : > { %s1664_s18 = smov %s1231_s21  ;;  %23 = sbr.rel (!%p21_p9) target bundleno = 10 (0xa), region = 102 }
  0xe3   :  { %621 = vsyncpa [#allocation3], 1 }
  0xe4   :  { %623 = vsyncpa [#allocation3 + $0x1], 1 }
  0xe5   :  { %624 = vsyncpa [#allocation6], 1 }
  0xe6   :  { %626 = vsyncpa [#allocation6 + $0x1], 1 }
  0xe7   :  { %627 = vsyncpa [#allocation9], 1 }
  0xe8   :  { %628 = vsyncpa [#allocation4], 1 }
  0xe9   :  { %630 = vsyncpa [#allocation4 + $0x1], 1 }

// kernel: bottleneck_forward.6
= control target key start
LH: loop header
LB: loop body
LE: loop exit
PB: predicated region body
PF: predicated region fallthrough
CT: control target
= control target key end

     0   :  { %12 = vsyncpa [#allocation3], 0  ;;  %s2538_s0 = inlined_call_operand.hbm [shape: bf16[1024,128], index: 0, kind: input, shape index: {}]   ;;  %s2539_s1 = inlined_call_operand.hbm [shape: f32[1,128], index: 1, kind: input, shape index: {}]   ;;  %s2540_s2 = inlined_call_operand.hbm [shape: f32[1,128], index: 2, kind: input, shape index: {}]   ;;  %s2541_s3 = inlined_call_operand.hbm [shape: bf16[128,128], index: 3, kind: input, shape index: {}]   ;;  %s2542_s4 = inlined_call_operand.hbm [shape: bf16[1024,128], index: 4, kind: output, shape index: {0}]   ;;  %s2543_s5 = inlined_call_operand.hbm [shape: f32[4,1,128], index: 5, kind: output, shape index: {1}]   ;;  %s2544_s6 = inlined_call_operand.hbm [shape: f32[4,1,128], index: 6, kind: output, shape index: {2}]  }
   0x1   :  { %14 = vsyncpa [#allocation3 + $0x1], 0 }
   0x2   :  { %15 = vsyncpa [#allocation6], 0 }
   0x3   :  { %16 = vsyncpa [#allocation9], 0 }
   0x4   :  { %17 = vsyncpa [#allocation4], 0 }
   0x5   :  { %19 = vsyncpa [#allocation4 + $0x1], 0 }
   0x6   :  { %20 = vsyncpa [#allocation12], 0 }
   0x7   :  { %22 = vsyncpa [#allocation12 + $0x1], 0  ;;  %s1970_s21 = smov 0   ;;  %s1972_s22 = smov 0  }
   0x8   :  { %s1974_s23 = smov 0   ;;  %s1976_s24 = smov 0  }
   0x9 LB: > { %s1991_s25 = sadd.s32 4294967295, %s1922_s24   ;;  %s2548_s26 = sadd.s32 4294967294, %s1922_s24   ;;  %s1922_s24 = sphi %s1976_s24, %s2568_s24   ;;  %s1918_s23 = sphi %s1974_s23, %s2567_s23   ;;  %s1914_s22 = sphi %s1972_s22, %s2566_s22   ;;  %s1910_s21 = sphi %s1970_s21, %s2565_s21  }
   0xa   : > { %p48_p0 = scmp.ne.s32.totalorder %s1914_s22, %s1910_s21  ;;  %p2545_p1 = scmp.eq.s32.totalorder %s1991_s25, 0 }
   0xb   : > { %p141_p3 = scmp.eq.s32.totalorder %s2548_s26, 3  ;;  %p1216_p5 = scmp.ge.s32.totalorder %s1922_s24, 1 }
   0xc   : > { %p2002_p4 = por %p2545_p1, %p48_p0  ;;  %p200_p7 = scmp.lt.s32.totalorder %s1922_s24, 5 }
   0xd   : > { %p2007_p6 = por %p141_p3, %p48_p0  ;;  %s1924_s30 = smov [#allocation5]  }
   0xe   : > { %s2549_s27 = scalar_select %p2002_p4, 1, 0 }
   0xf   : > { %s2550_s28 = scalar_select %p2007_p6, 1, 0 }
  0x10   : > { %p2012_p8 = pnand %p1216_p5, %p200_p7  ;;  %s213_s7 = sshll.u32 %s1924_s30, 4  ;;  %s214_s7 = int_to_ptr.vmem [resolvable:$true] %s213_s7 }
  0x11   : > { %s1925_s8 = smov [#allocation7]   ;;  %s1926_s11 = smov [#allocation8]  }
  0x12   : > { %s2551_s29 = scalar_select %p2012_p8, 1, 0 }
  0x13   : > { %p1595_p9 = pneg %p2012_p8  ;;  %s224_s9 = sshll.u32 %s1925_s8, 4  ;;  %s2024_s9 = int_to_ptr.vmem [resolvable:$true] %s224_s9 }
  0x14   : > { %s234_s12 = sshll.u32 %s1926_s11, 4  ;;  %s1674_s15 = scalar_lea.hbm %s2539_s1, 16  ;;  %s2026_s12 = int_to_ptr.vmem [resolvable:$true] %s234_s12 }
  0x15   : > { %p2020_p10 = pnand %p1595_p9, %p2545_p1  ;;  %p1675_p11 = scmp.ne.s32.totalorder %s2539_s1, %s1674_s15 }
  0x16   : > { %p1681_p3 = scmp.lt.u32.totalorder %s1674_s15, %s2539_s1 }
  0x17   : > { %p2036_p12 = pneg %p2020_p10 }
  0x19   : > { %p1677_p13 = pnand %p2036_p12, %p1675_p11 }
  0x1b   : > { %p1678_p0 = pneg %p1677_p13 }
  0x1d   : > { %p1683_p5 = pnand %p1681_p3, %p1678_p0 }
  0x1f   : > { %1686 = shalt.err (!%p1683_p5)
}
  0x20   : > { %s1687_s30 = scalar_lea.vmem %s214_s7, 16  ;;  %s1694_s8 = scalar_lea.vmem %s214_s7, 32 }
  0x21   : > { %p1688_p7 = scmp.ne.s32.totalorder %s214_s7, %s1687_s30  ;;  %p1695_p2 = scmp.lt.s32.totalorder %s214_s7, %s214_s7 }
  0x22   : > { %p1696_p6 = scmp.lt.s32.totalorder %s1694_s8, %s1687_s30 }
  0x23   : > { %p1690_p9 = pnand %p1688_p7, %p2036_p12 }
  0x24   : > { %p1697_p4 = por %p1696_p6, %p1695_p2 }
  0x25   : > { %p1691_p1 = pneg %p1690_p9 }
  0x27   : > { %p1698_p8 = pnand %p1697_p4, %p1691_p1 }
  0x29   : > { %1701 = shalt.err (!%p1698_p8)
}
  0x2a   : > { %1598 = dma.hbm_to_vmem [thread:$0]  (!%p2020_p10), %s2539_s1, 16, %s214_s7, [#allocation6]  }
  0x2b   : > { %s1702_s16 = scalar_lea.hbm %s2540_s2, 16 }
  0x2c   : > { %p1703_p11 = scmp.ne.s32.totalorder %s2540_s2, %s1702_s16  ;;  %p1709_p1 = scmp.lt.u32.totalorder %s1702_s16, %s2540_s2 }
  0x2e   : > { %p1705_p13 = pnand %p1703_p11, %p2036_p12 }
  0x30   : > { %p1706_p2 = pneg %p1705_p13 }
  0x32   : > { %p1711_p4 = pnand %p1709_p1, %p1706_p2 }
  0x34   : > { %1714 = shalt.err (!%p1711_p4)
}
  0x35   : > { %s1715_s7 = scalar_lea.vmem %s2024_s9, 16  ;;  %s1722_s8 = scalar_lea.vmem %s2024_s9, 32 }
  0x36   : > { %p1716_p6 = scmp.ne.s32.totalorder %s2024_s9, %s1715_s7  ;;  %p1723_p3 = scmp.lt.s32.totalorder %s2024_s9, %s2024_s9 }
  0x37   : > { %p1724_p5 = scmp.lt.s32.totalorder %s1722_s8, %s1715_s7 }
  0x38   : > { %p1718_p8 = pnand %p1716_p6, %p2036_p12 }
  0x39   : > { %p1725_p7 = por %p1724_p5, %p1723_p3 }
  0x3a   : > { %p1719_p0 = pneg %p1718_p8 }
  0x3c   : > { %p1726_p9 = pnand %p1725_p7, %p1719_p0 }
  0x3e   : > { %1729 = shalt.err (!%p1726_p9)
}
  0x3f   : > { %1601 = dma.hbm_to_vmem [thread:$0]  (!%p2020_p10), %s2540_s2, 16, %s2024_s9, [#allocation6]  }
  0x40   : > { %s1730_s16 = scalar_lea.hbm %s2541_s3, 1024 }
  0x41   : > { %p1731_p11 = scmp.ne.s32.totalorder %s2541_s3, %s1730_s16  ;;  %p1737_p1 = scmp.lt.u32.totalorder %s1730_s16, %s2541_s3 }
  0x43   : > { %p1733_p13 = pnand %p1731_p11, %p2036_p12 }
  0x45   : > { %p1734_p2 = pneg %p1733_p13 }
  0x47   : > { %p1739_p4 = pnand %p1737_p1, %p1734_p2 }
  0x49   : > { %1742 = shalt.err (!%p1739_p4)
}
  0x4a   : > { %s1743_s9 = scalar_lea.vmem %s2026_s12, 1024  ;;  %p1751_p3 = scmp.lt.s32.totalorder %s2026_s12, %s2026_s12 }
  0x4b   : > { %p1744_p6 = scmp.ne.s32.totalorder %s2026_s12, %s1743_s9  ;;  %p1752_p5 = scmp.lt.s32.totalorder %s1743_s9, %s1743_s9 }
  0x4d   : > { %p1746_p8 = pnand %p1744_p6, %p2036_p12  ;;  %p1753_p7 = por %p1752_p5, %p1751_p3 }
  0x4f   : > { %p1747_p0 = pneg %p1746_p8 }
  0x51   : > { %p1754_p9 = pnand %p1753_p7, %p1747_p0 }
  0x53   : > { %1757 = shalt.err (!%p1754_p9)
}
  0x54   : > { %s1927_s7 = smov 64   ;;  %s1928_s18 = smov 4  }
  0x55   : > { %1604 = dma.hbm_to_vmem [thread:$0]  (!%p2020_p10), %s2541_s3, 1024, %s2026_s12, [#allocation9], %s1927_s7, %s1927_s7, %s1928_s18  }
  0x56   : > { %s2103_s13 = sadd.s32 1, %s1922_s24   ;;  %s35_s15 = sadd.s32 1, %s1918_s23 }
  0x57   : > { %s32_s14 = ssub.s32 %s1922_s24, %s2103_s13  ;;  %p42_p11 = scmp.ne.s32.totalorder %s1918_s23, %s1914_s22 }
  0x58   : > { %p33_p12 = scmp.eq.s32.totalorder %s32_s14, 0  ;;  %p43_p13 = scmp.eq.s32.totalorder %s1922_s24, 0 }
  0x59   : > { %p1622_p2 = scmp.lt.s32.totalorder %s1922_s24, 4  ;;  %p2554_p4 = scmp.eq.s32.totalorder %s1991_s25, 3 }
  0x5a   : > { %s2113_s16 = scalar_select %p33_p12, %s1918_s23, %s35_s15  }
  0x5b   : > { %p44_p1 = por %p43_p13, %p42_p11  ;;  %p2117_p6 = por %p2554_p4, %p42_p11 }
  0x5c   : > { %s248_s17 = sand.u32 1, %s1918_s23   ;;  %s1279_s19 = sshll.u32 %s1922_s24, 11 }
  0x5d   : > { %s1221_s12 = sshll.u32 %s248_s17, 7  ;;  %s2126_s9 = scalar_lea.hbm %s2538_s0, %s1279_s19 }
  0x5e   : > { %s252_s8 = scalar_lea.vmem [#allocation2], %s1221_s12  ;;  %p2128_p10 = pnand %p1622_p2, %p44_p1 }
  0x5f   : > { %s259_s11 = sshll.u32 %s252_s8, 4  ;;  %s2134_s15 = scalar_lea.sflag [#allocation3], %s248_s17  ;;  %s2132_s11 = int_to_ptr.vmem [resolvable:$true] %s259_s11 }
  0x60   : > { %s1758_s26 = scalar_lea.hbm %s2126_s9, 2048  ;;  %p1760_p0 = pneg %p2128_p10 }
  0x61   : > { %p1759_p8 = scmp.ne.s32.totalorder %s2126_s9, %s1758_s26  ;;  %s1763_s20 = scalar_lea.hbm %s2538_s0, 8192 }
  0x62   : > { %p1764_p7 = scmp.lt.u32.totalorder %s2126_s9, %s2538_s0  ;;  %p1765_p9 = scmp.lt.u32.totalorder %s1763_s20, %s1758_s26 }
  0x63   : > { %p1761_p3 = pnand %p1760_p0, %p1759_p8  ;;  %p1767_p11 = scmp.lt.u32.totalorder %s1758_s26, %s2126_s9 }
  0x64   : > { %p1766_p12 = por %p1765_p9, %p1764_p7 }
  0x65   : > { %p1762_p5 = pneg %p1761_p3 }
  0x66   : > { %p1768_p13 = por %p1767_p11, %p1766_p12 }
  0x68   : > { %p1769_p2 = pnand %p1768_p13, %p1762_p5 }
  0x6a   : > { %1772 = shalt.err (!%p1769_p2)
}
  0x6b   : > { %s1773_s17 = scalar_lea.vmem %s2132_s11, 2048  ;;  %s1929_s19 = smov [#allocation2]  }
  0x6c   : > { %p1774_p1 = scmp.ne.s32.totalorder %s2132_s11, %s1773_s17  ;;  %s1778_s12 = sshll.u32 %s1929_s19, 4  ;;  %s1779_s12 = int_to_ptr.vmem [resolvable:$false] %s1778_s12 }
  0x6d   : > { %s1780_s30 = scalar_lea.vmem %s1779_s12, 4096  ;;  %p1781_p3 = scmp.lt.s32.totalorder %s2132_s11, %s1779_s12 }
  0x6e   : > { %p1776_p4 = pnand %p1774_p1, %p1760_p0  ;;  %p1782_p7 = scmp.lt.s32.totalorder %s1780_s30, %s1773_s17 }
  0x70   : > { %p1777_p8 = pneg %p1776_p4  ;;  %p1783_p9 = por %p1782_p7, %p1781_p3 }
  0x72   : > { %p1784_p12 = pnand %p1783_p9, %p1777_p8 }
  0x74   : > { %1787 = shalt.err (!%p1784_p12)
}
  0x75   : > { %1608 = dma.hbm_to_vmem [thread:$0]  (!%p2128_p10), %s2126_s9, 2048, %s2132_s11, %s2134_s15, %s1927_s7, %s1927_s7, %s1928_s18  }
  0x76   : > { %p2557_p0 = scmp.ne.s32.totalorder %s2551_s29, 0 }
  0x77   : > { %s2168_s26 = sand.u32 (!%p2557_p0), 1, %s1914_s22   ;;  %p2558_p5 = scmp.ne.s32.totalorder (!%p2557_p0), %s2549_s27, 0 }
  0x78   : > { %271 = sbr.rel (%p2557_p0) target bundleno = 503 (0x1f7), region = 36  ;;  %s1225_s20 = sshll.u32 (!%p2557_p0), %s2168_s26, 7 }
  0x79   : > { %s274_s8 = scalar_lea.sflag (!%p2557_p0), [#allocation3], %s2168_s26  ;;  %s2174_s14 = scalar_lea.vmem (!%p2557_p0), [#allocation2], %s1225_s20 }
  0x7f   : > { %1889 = dma.done.wait (%p2558_p5), %s274_s8, 2048  }
  0x80   : > { %1891 = vsyncadd (%p2558_p5), %s274_s8, 4294965248  ;;  %p2559_p10 = scmp.eq.s32.totalorder %s1991_s25, 0 }
  0x82   : > { %1893 = dma.done.wait (%p2559_p10), [#allocation6], 32   ;;  %p2560_p11 = pmov %p2559_p10 }
  0x83   : > { %p2561_p13 = pmov %p2559_p10 }
  0x84   : > { %1895 = vsyncadd (%p2560_p11), [#allocation6], 4294967264 }
  0x85   : > { %1897 = dma.done.wait (%p2561_p13), [#allocation9], 1024   ;;  %p2562_p2 = pmov %p2559_p10 }
  0x86   : > { %v1666_v0 = vld [vmem:[#allocation8] sm:$0xff]   ;;  %v1667_v1 = vld [vmem:[#allocation8 + $0x8] sm:$0xff]   ;;  %v1668_v2 = vld [vmem:[#allocation8 + $0x10] sm:$0xff]   ;;  %s2306_s27 = scalar_lea.vmem [#allocation10], %s1225_s20  ;;  %s1312_s29 = sshll.u32 %s1991_s25, 11 }
  0x87   : > { %1899 = vsyncadd (%p2562_p2), [#allocation9], 4294966272  ;;  %1511 = vmatprep.subr.bf16.mxu0 %v1666_v0  ;;  %1559 = vmatprep.subr.bf16.mxu1 %v1666_v0  ;;  %v1669_v3 = vld [vmem:[#allocation8 + $0x18] sm:$0xff]   ;;  %v1457_v8 = vld [vmem:[%s2174_s14 + $0x8] sm:$0xff]   ;;  %s1034_s7 = sshll.u32 %s2306_s27, 4  ;;  %s2373_s11 = scalar_lea.hbm %s2542_s4, %s1312_s29  ;;  %s2375_s7 = int_to_ptr.vmem [resolvable:$true] %s1034_s7 }
  0x88   : > { %1512 = vmatpush3.bf16.msra.mxu0 %v1666_v0  ;;  %1567 = vmatpush3.bf16.msra.mxu1 %v1666_v0  ;;  %v1314_v4 = vld [vmem:[%s2174_s14] sm:$0xff]   ;;  %v1458_v9 = vld [vmem:[%s2174_s14 + $0x10] sm:$0xff]   ;;  %v1459_v10 = vld [vmem:[%s2174_s14 + $0x18] sm:$0xff]   ;;  %v1319_v12 = vunpack.c.l.bf16 %v1457_v8  ;;  %v1320_v13 = vunpack.c.h.bf16 %v1457_v8  ;;  %s1013_s15 = scalar_lea.sflag [#allocation4], %s2168_s26  ;;  %s1788_s17 = scalar_lea.vmem %s2375_s7, 2048 }
  0x89   : > { %1513 = vmatprep.subr.bf16.mxu0 %v1667_v1  ;;  %1560 = vmatprep.subr.bf16.mxu1 %v1667_v1  ;;  %v2189_v5 = vld [vmem:[#allocation5] ss:$0 sm:$0xff]  ;;  %v1315_v6 = vunpack.c.l.bf16 %v1314_v4  ;;  %v1316_v7 = vunpack.c.h.bf16 %v1314_v4  ;;  %v2194_v11 = vld [vmem:[#allocation7] ss:$0 sm:$0xff]  ;;  %v1323_v14 = vunpack.c.l.bf16 %v1458_v9  ;;  %v1324_v15 = vunpack.c.h.bf16 %v1458_v9  ;;  %v1670_v20 = vld [vmem:[#allocation8 + $0x20] sm:$0xff]   ;;  %p1789_p1 = scmp.ne.s32.totalorder %s2375_s7, %s1788_s17  ;;  %s1930_s19 = smov [#allocation10]  }
  0x8a   : > { %v1327_v18 = vunpack.c.l.bf16 %v1459_v10  ;;  %v1328_v19 = vunpack.c.h.bf16 %v1459_v10  ;;  %v402_v21 = vmul.f32 %v1319_v12, %v2189_v5  ;;  %v403_v22 = vmul.f32 %v1320_v13, %v2189_v5  ;;  %v1460_v29 = vld [vmem:[%s2174_s14 + $0x20] sm:$0xff]   ;;  %v1461_v33 = vld [vmem:[%s2174_s14 + $0x28] sm:$0xff]   ;;  %v1462_v42 = vld [vmem:[%s2174_s14 + $0x30] sm:$0xff]   ;;  %s1792_s12 = sshll.u32 %s1930_s19, 4  ;;  %s1793_s12 = int_to_ptr.vmem [resolvable:$false] %s1792_s12 }
  0x8b   : > { %v400_v16 = vmul.f32 %v1315_v6, %v2189_v5  ;;  %v401_v17 = vmul.f32 %v1316_v7, %v2189_v5  ;;  %v404_v23 = vmul.f32 %v1323_v14, %v2189_v5  ;;  %v405_v24 = vmul.f32 %v1324_v15, %v2189_v5  ;;  %v1671_v34 = vld [vmem:[#allocation8 + $0x28] sm:$0xff]   ;;  %v2217_v48 = vld [vmem:[%s2174_s14 + $0x38] sm:$0xff]   ;;  %v1464_v60 = vld [vmem:[%s2174_s14 + $0x40] sm:$0xff]   ;;  %p1790_p4 = pnand %p1789_p1, %p2117_p6  ;;  %s1794_s30 = scalar_lea.vmem %s1793_s12, 4096 }
  0x8c   : > { %1514 = vmatpush3.bf16.msra.mxu0 %v1667_v1  ;;  %1568 = vmatpush3.bf16.msra.mxu1 %v1667_v1  ;;  %v406_v27 = vmul.f32 %v1327_v18, %v2189_v5  ;;  %v407_v28 = vmul.f32 %v1328_v19, %v2189_v5  ;;  %v441_v32 = vadd.f32 %v2194_v11, %v402_v21  ;;  %v1331_v41 = vunpack.c.l.bf16 %v1460_v29  ;;  %v1672_v49 = vld [vmem:[#allocation8 + $0x30] sm:$0xff]   ;;  %v1673_v63 = vld [vmem:[#allocation8 + $0x38] sm:$0xff]   ;;  %p1795_p3 = scmp.lt.s32.totalorder %s2375_s7, %s1793_s12  ;;  %p1796_p7 = scmp.lt.s32.totalorder %s1794_s30, %s1788_s17 }
  0x8d   : > { %1515 = vmatprep.subr.bf16.mxu0 %v1668_v2  ;;  %1561 = vmatprep.subr.bf16.mxu1 %v1668_v2  ;;  %v439_v25 = vadd.f32 %v2194_v11, %v400_v16  ;;  %v440_v26 = vadd.f32 %v2194_v11, %v401_v17  ;;  %v442_v35 = vadd.f32 %v2194_v11, %v403_v22  ;;  %v1332_v43 = vunpack.c.h.bf16 %v1460_v29  ;;  %v1466_v9 = vld [vmem:[%s2174_s14 + $0x50] sm:$0xff]   ;;  %v1467_v19 = vld [vmem:[%s2174_s14 + $0x58] sm:$0xff]   ;;  %p1791_p8 = pneg %p1790_p4 }
  0x8e   : > { %v443_v36 = vadd.f32 %v2194_v11, %v404_v23  ;;  %v444_v37 = vadd.f32 %v2194_v11, %v405_v24  ;;  %v445_v39 = vadd.f32 %v2194_v11, %v406_v27  ;;  %v446_v40 = vadd.f32 %v2194_v11, %v407_v28  ;;  %p1797_p9 = por %p1796_p7, %p1795_p3 }
  0x8f   : > { %v471_v30 = vmax.f32 %v439_v25, 0.0  ;;  %v472_v31 = vmax.f32 %v440_v26, 0.0  ;;  %v1335_v44 = vunpack.c.l.bf16 %v1461_v33  ;;  %v473_v45 = vmax.f32 %v441_v32, 0.0  ;;  %v1468_v32 = vld [vmem:[%s2174_s14 + $0x60] sm:$0xff]  }
  0x90   : > { %1516 = vmatpush3.bf16.msra.mxu0 %v1668_v2  ;;  %1569 = vmatpush3.bf16.msra.mxu1 %v1668_v2  ;;  %v408_v46 = vmul.f32 %v1331_v41, %v2189_v5  ;;  %v1336_v47 = vunpack.c.h.bf16 %v1461_v33  ;;  %v474_v50 = vmax.f32 %v442_v35, 0.0  ;;  %v475_v51 = vmax.f32 %v443_v36, 0.0  ;;  %p1798_p12 = pnand %p1797_p9, %p1791_p8 }
  0x91   : > { %1517 = vmatprep.subr.bf16.mxu0 %v1669_v3  ;;  %1562 = vmatprep.subr.bf16.mxu1 %v1669_v3  ;;  %v503_v38 = vpack.c.bf16 %v472_v31, %v471_v30  ;;  %v476_v52 = vmax.f32 %v444_v37, 0.0  ;;  %v1339_v53 = vunpack.c.l.bf16 %v1462_v42  ;;  %v477_v54 = vmax.f32 %v445_v39, 0.0 }
  0x92   : > { %v478_v55 = vmax.f32 %v446_v40, 0.0  ;;  %v409_v56 = vmul.f32 %v1332_v43, %v2189_v5  ;;  %v410_v57 = vmul.f32 %v1335_v44, %v2189_v5  ;;  %v1340_v58 = vunpack.c.h.bf16 %v1462_v42 }
  0x93   : > { %1527 = vmatprep.mubr.bf16.mxu0 %v503_v38  ;;  %v1343_v59 = vunpack.c.l.bf16 %v2217_v48  ;;  %v2224_v61 = vadd.f32 %v2194_v11, %v408_v46  ;;  %v411_v62 = vmul.f32 %v1336_v47, %v2189_v5  ;;  %v504_v0 = vpack.c.bf16 %v474_v50, %v473_v45  ;;  %v1469_v45 = vld [vmem:[%s2174_s14 + $0x68] sm:$0xff]  }
  0x94   : > { %1518 = vmatpush3.bf16.msra.mxu0 %v1669_v3  ;;  %1570 = vmatpush3.bf16.msra.mxu1 %v1669_v3  ;;  %v505_v1 = vpack.c.bf16 %v476_v52, %v475_v51  ;;  %v412_v2 = vmul.f32 %v1339_v53, %v2189_v5  ;;  %v1465_v3 = vld [vmem:[%s2174_s14 + $0x48] sm:$0xff]   ;;  %v2229_v4 = vpack.c.bf16 %v478_v55, %v477_v54  ;;  %v1344_v7 = vunpack.c.h.bf16 %v2217_v48  ;;  %v1470_v55 = vld [vmem:[%s2174_s14 + $0x70] sm:$0xff]  }
  0x95   : > { %1519 = vmatprep.subr.bf16.mxu0 %v1670_v20  ;;  %1563 = vmatprep.subr.bf16.mxu1 %v1670_v20  ;;  %v2232_v6 = vadd.f32 %v2194_v11, %v409_v56  ;;  %v1347_v8 = vunpack.c.l.bf16 %v1464_v60  ;;  %v2237_v10 = vadd.f32 %v2194_v11, %v410_v57  ;;  %v2240_v12 = vmul.f32 %v1340_v58, %v2189_v5 }
  0x96   : > { %v2243_v13 = vmul.f32 %v1343_v59, %v2189_v5  ;;  %v1348_v14 = vunpack.c.h.bf16 %v1464_v60  ;;  %v479_v15 = vmax.f32 %v2224_v61, 0.0  ;;  %v2247_v16 = vadd.f32 %v2194_v11, %v411_v62 }
  0x97   : > { %v416_v17 = vmul.f32 %v1347_v8, %v2189_v5  ;;  %v1351_v18 = vunpack.c.l.bf16 %v1465_v3  ;;  %v1352_v22 = vunpack.c.h.bf16 %v1465_v3  ;;  %v1355_v23 = vunpack.c.l.bf16 %v1466_v9 }
  0x98   : > { %1520 = vmatpush3.bf16.msra.mxu0 %v1670_v20  ;;  %1571 = vmatpush3.bf16.msra.mxu1 %v1670_v20  ;;  %v2252_v20 = vadd.f32 %v2194_v11, %v412_v2  ;;  %v417_v21 = vmul.f32 %v1348_v14, %v2189_v5  ;;  %v480_v24 = vmax.f32 %v2232_v6, 0.0  ;;  %v1356_v27 = vunpack.c.h.bf16 %v1466_v9 }
  0x99   : > { %1521 = vmatprep.subr.bf16.mxu0 %v1671_v34  ;;  %1564 = vmatprep.subr.bf16.mxu1 %v1671_v34  ;;  %v455_v25 = vadd.f32 %v2194_v11, %v416_v17  ;;  %v418_v26 = vmul.f32 %v1351_v18, %v2189_v5  ;;  %v419_v29 = vmul.f32 %v1352_v22, %v2189_v5  ;;  %v1359_v31 = vunpack.c.l.bf16 %v1467_v19  ;;  %v1471_v17 = vld [vmem:[%s2174_s14 + $0x78] sm:$0xff]  }
  0x9a   : > { %v456_v28 = vadd.f32 %v2194_v11, %v417_v21  ;;  %v420_v30 = vmul.f32 %v1355_v23, %v2189_v5  ;;  %v421_v35 = vmul.f32 %v1356_v27, %v2189_v5  ;;  %v1360_v36 = vunpack.c.h.bf16 %v1467_v19 }
  0x9b   : > { %v487_v33 = vmax.f32 %v455_v25, 0.0  ;;  %v458_v38 = vadd.f32 %v2194_v11, %v419_v29  ;;  %v422_v40 = vmul.f32 %v1359_v31, %v2189_v5  ;;  %v1363_v44 = vunpack.c.l.bf16 %v1468_v32 }
  0x9c   : > { %1522 = vmatpush3.bf16.msra.mxu0 %v1671_v34  ;;  %1572 = vmatpush3.bf16.msra.mxu1 %v1671_v34  ;;  %v457_v34 = vadd.f32 %v2194_v11, %v418_v26  ;;  %v488_v37 = vmax.f32 %v456_v28, 0.0  ;;  %v459_v39 = vadd.f32 %v2194_v11, %v420_v30  ;;  %v460_v42 = vadd.f32 %v2194_v11, %v421_v35 }
  0x9d   : > { %1523 = vmatprep.subr.bf16.mxu0 %v1672_v49  ;;  %1565 = vmatprep.subr.bf16.mxu1 %v1672_v49  ;;  %v423_v43 = vmul.f32 %v1360_v36, %v2189_v5  ;;  %v490_v47 = vmax.f32 %v458_v38, 0.0  ;;  %v461_v50 = vadd.f32 %v2194_v11, %v422_v40  ;;  %v1364_v53 = vunpack.c.h.bf16 %v1468_v32 }
  0x9e   : > { %v489_v41 = vmax.f32 %v457_v34, 0.0  ;;  %v511_v46 = vpack.c.bf16 %v488_v37, %v487_v33  ;;  %v492_v51 = vmax.f32 %v460_v42, 0.0  ;;  %v424_v54 = vmul.f32 %v1363_v44, %v2189_v5 }
  0x9f   : > { %v462_v52 = vadd.f32 %v2194_v11, %v423_v43  ;;  %v493_v57 = vmax.f32 %v461_v50, 0.0  ;;  %v1367_v58 = vunpack.c.l.bf16 %v1469_v45  ;;  %v1368_v59 = vunpack.c.h.bf16 %v1469_v45 }
  0xa0   : > { %1524 = vmatpush3.bf16.msra.mxu0 %v1672_v49  ;;  %1573 = vmatpush3.bf16.msra.mxu1 %v1672_v49  ;;  %v491_v49 = vmax.f32 %v459_v39, 0.0  ;;  %v512_v56 = vpack.c.bf16 %v490_v47, %v489_v41  ;;  %v425_v62 = vmul.f32 %v1364_v53, %v2189_v5  ;;  %v1371_v2 = vunpack.c.l.bf16 %v1470_v55 }
  0xa1   : > { %1525 = vmatprep.subr.bf16.mxu0 %v1673_v63  ;;  %1566 = vmatprep.subr.bf16.mxu1 %v1673_v63  ;;  %v494_v61 = vmax.f32 %v462_v52, 0.0  ;;  %v1372_v3 = vunpack.c.h.bf16 %v1470_v55  ;;  %v507_v6 = vpack.c.bf16 %v480_v24, %v479_v15  ;;  %v452_v8 = vadd.f32 %v2194_v11, %v2240_v12 }
  0xa2   : > { %1543 = vmatprep.mubr.bf16.mxu1 %v511_v46  ;;  %v513_v60 = vpack.c.bf16 %v492_v51, %v491_v49  ;;  %v464_v9 = vadd.f32 %v2194_v11, %v425_v62  ;;  %v481_v18 = vmax.f32 %v2237_v10, 0.0  ;;  %v415_v19 = vmul.f32 %v1344_v7, %v2189_v5 }
  0xa3   : > { %v428_v21 = vmul.f32 %v1371_v2, %v2189_v5  ;;  %v429_v22 = vmul.f32 %v1372_v3, %v2189_v5  ;;  %v482_v15 = vmax.f32 %v2247_v16, 0.0  ;;  %v483_v23 = vmax.f32 %v2252_v20, 0.0 }
  0xa4   : > { %1526 = vmatpush3.bf16.msra.mxu0 %v1673_v63  ;;  %1574 = vmatpush3.bf16.msra.mxu1 %v1673_v63  ;;  %v463_v63 = vadd.f32 %v2194_v11, %v424_v54  ;;  %v514_v12 = vpack.c.bf16 %v494_v61, %v493_v57  ;;  %v496_v24 = vmax.f32 %v464_v9, 0.0  ;;  %v1375_v26 = vunpack.c.l.bf16 %v1471_v17 }
  0xa5   : > { %v1376_v27 = vunpack.c.h.bf16 %v1471_v17  ;;  %v484_v48 = vmax.f32 %v452_v8, 0.0  ;;  %v467_v28 = vadd.f32 %v2194_v11, %v428_v21  ;;  %v468_v29 = vadd.f32 %v2194_v11, %v429_v22 }
  0xa6   : > { %v495_v14 = vmax.f32 %v463_v63, 0.0  ;;  %v508_v16 = vpack.c.bf16 %v482_v15, %v481_v18  ;;  %v453_v20 = vadd.f32 %v2194_v11, %v2243_v13  ;;  %v454_v30 = vadd.f32 %v2194_v11, %v415_v19 }
  0xa7   : > { %1528 = vmatmul.mubr.bf16.vlgmr.msra.gmra.mrb[0].mxu0 %v504_v0  ;;  %1544 = vmatmul.mubr.bf16.vlgmr.msra.gmra.mrb[0].mxu1 %v512_v56  ;;  %v426_v0 = vmul.f32 %v1367_v58, %v2189_v5  ;;  %v430_v32 = vmul.f32 %v1375_v26, %v2189_v5  ;;  %v431_v33 = vmul.f32 %v1376_v27, %v2189_v5  ;;  %v499_v35 = vmax.f32 %v467_v28, 0.0 }
  0xa8   : > { %1531 = vmatprep.mubr.bf16.mxu0 %v505_v1  ;;  %v427_v1 = vmul.f32 %v1368_v59, %v2189_v5  ;;  %1547 = vmatprep.mubr.bf16.mxu1 %v513_v60  ;;  %v515_v7 = vpack.c.bf16 %v496_v24, %v495_v14  ;;  %v509_v34 = vpack.c.bf16 %v484_v48, %v483_v23  ;;  %v500_v36 = vmax.f32 %v468_v29, 0.0 }
  0xa9   : > { %v465_v25 = vadd.f32 %v2194_v11, %v426_v0  ;;  %v485_v37 = vmax.f32 %v453_v20, 0.0  ;;  %v486_v38 = vmax.f32 %v454_v30, 0.0  ;;  %v469_v40 = vadd.f32 %v2194_v11, %v430_v32 }
  0xaa   : > { %v466_v10 = vadd.f32 %v2194_v11, %v427_v1  ;;  %v470_v13 = vadd.f32 %v2194_v11, %v431_v33  ;;  %v517_v41 = vpack.c.bf16 %v500_v36, %v499_v35 }
  0xab   : > { %v510_v42 = vpack.c.bf16 %v486_v38, %v485_v37  ;;  %v501_v43 = vmax.f32 %v469_v40, 0.0 }
  0xac   : > { %v498_v31 = vmax.f32 %v466_v10, 0.0  ;;  %v502_v44 = vmax.f32 %v470_v13, 0.0 }
  0xae   : > { %v518_v5 = vpack.c.bf16 %v502_v44, %v501_v43 }
  0xaf   : > { %1532 = vmatmul.mubr.bf16.gmra.mrb[4].mxu0 %v2229_v4  ;;  %1548 = vmatmul.mubr.bf16.gmra.mrb[4].mxu1 %v514_v12  ;;  %v497_v4 = vmax.f32 %v465_v25, 0.0 }
  0xb0   : > { %1535 = vmatprep.mubr.bf16.mxu0 %v507_v6  ;;  %1551 = vmatprep.mubr.bf16.mxu1 %v515_v7 }
  0xb1   : > { %v516_v39 = vpack.c.bf16 %v498_v31, %v497_v4 }
  0xb7   : > { %1536 = vmatmul.mubr.bf16.gmra.mrb[8].mxu0 %v508_v16  ;;  %1552 = vmatmul.mubr.bf16.gmra.mrb[8].mxu1 %v516_v39 }
  0xb8   : > { %1539 = vmatprep.mubr.bf16.mxu0 %v509_v34  ;;  %1555 = vmatprep.mubr.bf16.mxu1 %v517_v41 }
  0xbf   : > { %1540 = vmatmul.mubr.bf16.gmra.mrb[12].mxu0 %v510_v42  ;;  %1556 = vmatmul.mubr.bf16.gmra.mrb[12].mxu1 %v518_v5 }
 0x17a   : > { %v1529_v45 = vpop.f32.mrb[0].mxu0  ;;  %v2302_v54 = vpop.f32.mrb[0].mxu1 }
 0x17b   : > { %v617_v46 = vpop.f32.mrb[1].mxu0  ;;  %v2309_v55 = vpop.f32.mrb[1].mxu1  ;;  %v944_v56 = vmul.f32 %v1529_v45, %v1529_v45 }
 0x17c   : > { %v1530_v47 = vpop.f32.mrb[2].mxu0  ;;  %v942_v51 = vmul.f32 %v617_v46, %v617_v46  ;;  %v2312_v59 = vpop.f32.mrb[2].mxu1 }
 0x17d   : > { %v1385_v49 = vpack.c.bf16 %v1530_v47, %v1529_v45  ;;  %v620_v50 = vpop.f32.mrb[3].mxu0  ;;  %v1425_v60 = vpack.c.bf16 %v2312_v59, %v2302_v54  ;;  %v2316_v61 = vpop.f32.mrb[3].mxu1  ;;  %v945_v62 = vmul.f32 %v1530_v47, %v1530_v47 }
 0x17e   : > { %v1380_v52 = vpack.c.bf16 %v620_v50, %v617_v46  ;;  %v904_v53 = vadd.f32 %v620_v50, %v617_v46  ;;  %v943_v11 = vmul.f32 %v620_v50, %v620_v50  ;;  %v1420_v2 = vpack.c.bf16 %v2316_v61, %v2309_v55 }
 0x17f   : > { %1472 = vst [vmem:[%s2306_s27 + $0x8] sm:$0xff] %v1385_v49   ;;  %1480 = vst [vmem:[%s2306_s27 + $0x48] sm:$0xff] %v1425_v60  }
 0x180   : > { %1381 = vst [vmem:[%s2306_s27] sm:$0xff] %v1380_v52   ;;  %v905_v57 = vadd.f32 %v1529_v45, %v904_v53  ;;  %v974_v58 = vadd.f32 %v943_v11, %v942_v51  ;;  %1479 = vst [vmem:[%s2306_s27 + $0x40] sm:$0xff] %v1420_v2  }
 0x182   : > { %v975_v63 = vadd.f32 %v974_v58, %v944_v56  ;;  %v1533_v0 = vpop.f32.mrb[4].mxu0  ;;  %v906_v1 = vadd.f32 %v1530_v47, %v905_v57  ;;  %v2322_v23 = vpop.f32.mrb[4].mxu1 }
 0x183   : > { %v633_v3 = vpop.f32.mrb[5].mxu0  ;;  %v2325_v12 = vpop.f32.mrb[5].mxu1  ;;  %v948_v24 = vmul.f32 %v1533_v0, %v1533_v0 }
 0x184   : > { %v907_v6 = vadd.f32 %v906_v1, %v633_v3  ;;  %v946_v8 = vmul.f32 %v633_v3, %v633_v3  ;;  %v976_v9 = vadd.f32 %v975_v63, %v945_v62  ;;  %v1534_v14 = vpop.f32.mrb[6].mxu0  ;;  %v2328_v26 = vpop.f32.mrb[6].mxu1 }
 0x185   : > { %v1395_v17 = vpack.c.bf16 %v1534_v14, %v1533_v0  ;;  %v636_v18 = vpop.f32.mrb[7].mxu0  ;;  %v1435_v27 = vpack.c.bf16 %v2328_v26, %v2322_v23  ;;  %v2332_v48 = vpop.f32.mrb[7].mxu1  ;;  %v949_v7 = vmul.f32 %v1534_v14, %v1534_v14 }
 0x186   : > { %v977_v19 = vadd.f32 %v976_v9, %v946_v8  ;;  %v1390_v21 = vpack.c.bf16 %v636_v18, %v633_v3  ;;  %v908_v22 = vadd.f32 %v907_v6, %v636_v18  ;;  %v947_v15 = vmul.f32 %v636_v18, %v636_v18 }
 0x187   : > { %1474 = vst [vmem:[%s2306_s27 + $0x18] sm:$0xff] %v1395_v17   ;;  %v1430_v20 = vpack.c.bf16 %v2332_v48, %v2325_v12  ;;  %1482 = vst [vmem:[%s2306_s27 + $0x58] sm:$0xff] %v1435_v27   ;;  %v958_v17 = vmul.f32 %v2309_v55, %v2309_v55 }
 0x188   : > { %1473 = vst [vmem:[%s2306_s27 + $0x10] sm:$0xff] %v1390_v21   ;;  %v909_v25 = vadd.f32 %v1533_v0, %v908_v22  ;;  %v978_v10 = vadd.f32 %v977_v19, %v947_v15 }
 0x189   : > { %1481 = vst [vmem:[%s2306_s27 + $0x50] sm:$0xff] %v1430_v20  }
 0x18a   : > { %v979_v28 = vadd.f32 %v978_v10, %v948_v24  ;;  %v1537_v29 = vpop.f32.mrb[8].mxu0  ;;  %v910_v16 = vadd.f32 %v1534_v14, %v909_v25  ;;  %v2338_v40 = vpop.f32.mrb[8].mxu1 }
 0x18b   : > { %v649_v30 = vpop.f32.mrb[9].mxu0  ;;  %v2341_v13 = vpop.f32.mrb[9].mxu1  ;;  %v952_v41 = vmul.f32 %v1537_v29, %v1537_v29 }
 0x18c   : > { %v911_v4 = vadd.f32 %v910_v16, %v649_v30  ;;  %v950_v31 = vmul.f32 %v649_v30, %v649_v30  ;;  %v980_v32 = vadd.f32 %v979_v28, %v949_v7  ;;  %v1538_v33 = vpop.f32.mrb[10].mxu0  ;;  %v2344_v44 = vpop.f32.mrb[10].mxu1 }
 0x18d   : > { %v1405_v34 = vpack.c.bf16 %v1538_v33, %v1537_v29  ;;  %v652_v35 = vpop.f32.mrb[11].mxu0  ;;  %v1445_v5 = vpack.c.bf16 %v2344_v44, %v2338_v40  ;;  %v2348_v45 = vpop.f32.mrb[11].mxu1  ;;  %v953_v46 = vmul.f32 %v1538_v33, %v1538_v33 }
 0x18e   : > { %v981_v36 = vadd.f32 %v980_v32, %v950_v31  ;;  %v1400_v37 = vpack.c.bf16 %v652_v35, %v649_v30  ;;  %v912_v38 = vadd.f32 %v911_v4, %v652_v35  ;;  %v951_v39 = vmul.f32 %v652_v35, %v652_v35 }
 0x18f   : > { %1476 = vst [vmem:[%s2306_s27 + $0x28] sm:$0xff] %v1405_v34   ;;  %v1440_v51 = vpack.c.bf16 %v2348_v45, %v2341_v13  ;;  %1484 = vst [vmem:[%s2306_s27 + $0x68] sm:$0xff] %v1445_v5  }
 0x190   : > { %1475 = vst [vmem:[%s2306_s27 + $0x20] sm:$0xff] %v1400_v37   ;;  %v913_v42 = vadd.f32 %v1537_v29, %v912_v38  ;;  %v982_v43 = vadd.f32 %v981_v36, %v951_v39 }
 0x191   : > { %1483 = vst [vmem:[%s2306_s27 + $0x60] sm:$0xff] %v1440_v51  }
 0x192   : > { %v983_v47 = vadd.f32 %v982_v43, %v952_v41  ;;  %v1541_v49 = vpop.f32.mrb[12].mxu0  ;;  %v914_v50 = vadd.f32 %v1538_v33, %v913_v42  ;;  %v2354_v2 = vpop.f32.mrb[12].mxu1 }
 0x193   : > { %v665_v52 = vpop.f32.mrb[13].mxu0  ;;  %v2359_v3 = vpop.f32.mrb[13].mxu1  ;;  %v956_v6 = vmul.f32 %v1541_v49, %v1541_v49 }
 0x194   : > { %v915_v53 = vadd.f32 %v914_v50, %v665_v52  ;;  %v954_v11 = vmul.f32 %v665_v52, %v665_v52  ;;  %v984_v56 = vadd.f32 %v983_v47, %v953_v46  ;;  %v1542_v57 = vpop.f32.mrb[14].mxu0  ;;  %v2362_v14 = vpop.f32.mrb[14].mxu1 }
 0x195   : > { %v1415_v58 = vpack.c.bf16 %v1542_v57, %v1541_v49  ;;  %v668_v60 = vpop.f32.mrb[15].mxu0  ;;  %v1455_v18 = vpack.c.bf16 %v2362_v14, %v2354_v2  ;;  %v2368_v19 = vpop.f32.mrb[15].mxu1  ;;  %v957_v21 = vmul.f32 %v1542_v57, %v1542_v57 }
 0x196   : > { %v985_v62 = vadd.f32 %v984_v56, %v954_v11  ;;  %v1410_v63 = vpack.c.bf16 %v668_v60, %v665_v52  ;;  %v916_v0 = vadd.f32 %v915_v53, %v668_v60  ;;  %v955_v1 = vmul.f32 %v668_v60, %v668_v60 }
 0x197   : > { %1478 = vst [vmem:[%s2306_s27 + $0x38] sm:$0xff] %v1415_v58   ;;  %v1450_v24 = vpack.c.bf16 %v2368_v19, %v2359_v3  ;;  %1486 = vst [vmem:[%s2306_s27 + $0x78] sm:$0xff] %v1455_v18  }
 0x198   : > { %1477 = vst [vmem:[%s2306_s27 + $0x30] sm:$0xff] %v1410_v63   ;;  %v917_v8 = vadd.f32 %v1541_v49, %v916_v0  ;;  %v986_v9 = vadd.f32 %v985_v62, %v955_v1 }
 0x199   : > { %1485 = vst [vmem:[%s2306_s27 + $0x70] sm:$0xff] %v1450_v24  }
 0x19a   : > { %v987_v22 = vadd.f32 %v986_v9, %v956_v6  ;;  %v918_v15 = vadd.f32 %v1542_v57, %v917_v8 }
 0x19c   : > { %v919_v25 = vadd.f32 %v918_v15, %v2309_v55  ;;  %v988_v10 = vadd.f32 %v987_v22, %v957_v21 }
 0x19d   : > { %1801 = shalt.err (!%p1798_p12)
}
 0x19e   : > { %s1802_s20 = scalar_lea.hbm %s2373_s11, 2048  ;;  %s1806_s27 = scalar_lea.hbm %s2542_s4, 8192 }
 0x19f   : > { %p1803_p0 = scmp.ne.s32.totalorder %s2373_s11, %s1802_s20  ;;  %p1807_p11 = scmp.lt.u32.totalorder %s2373_s11, %s2542_s4 }
 0x1a0   : > { %p1808_p13 = scmp.lt.u32.totalorder %s1806_s27, %s1802_s20  ;;  %p1810_p1 = scmp.lt.u32.totalorder %s1802_s20, %s2373_s11 }
 0x1a1   : > { %p1804_p5 = pnand %p1803_p0, %p2117_p6 }
 0x1a2   : > { %p1809_p2 = por %p1808_p13, %p1807_p11 }
 0x1a3   : > { %p1805_p10 = pneg %p1804_p5 }
 0x1a4   : > { %p1811_p4 = por %p1810_p1, %p1809_p2 }
 0x1a6   : > { %p1812_p8 = pnand %p1811_p4, %p1805_p10 }
 0x1a8   : > { %1815 = shalt.err (!%p1812_p8)
}
 0x1a9   : > { %s1931_s9 = smov 64   ;;  %s1932_s17 = smov 4   ;;  %v989_v55 = vadd.f32 %v988_v10, %v958_v17  ;;  %v920_v27 = vadd.f32 %v919_v25, %v2316_v61  ;;  %v959_v7 = vmul.f32 %v2316_v61, %v2316_v61  ;;  %v960_v28 = vmul.f32 %v2302_v54, %v2302_v54 }
 0x1aa   : > { %1589 = dma.vmem_to_hbm [thread:$0]  (%p2117_p6), %s2375_s7, 2048, %s2373_s11, %s1013_s15, %s1931_s9, %s1931_s9, %s1932_s17   ;;  %v961_v20 = vmul.f32 %v2312_v59, %v2312_v59  ;;  %v962_v31 = vmul.f32 %v2325_v12, %v2325_v12  ;;  %v963_v35 = vmul.f32 %v2332_v48, %v2332_v48  ;;  %v967_v5 = vmul.f32 %v2348_v45, %v2348_v45 }
 0x1ab   : > { %v921_v29 = vadd.f32 %v2302_v54, %v920_v27  ;;  %v990_v16 = vadd.f32 %v989_v55, %v959_v7  ;;  %v964_v54 = vmul.f32 %v2322_v23, %v2322_v23  ;;  %v972_v11 = vmul.f32 %v2354_v2, %v2354_v2  ;;  %s1017_s7 = sand.u32 1, %s1991_s25   ;;  %s1275_s11 = sshll.u32 %s1991_s25, 4 }
 0x1ac   : > { %v973_v57 = vmul.f32 %v2362_v14, %v2362_v14  ;;  %s319_s15 = scalar_lea.vmem [#allocation11], %s2168_s26  ;;  %s325_s12 = scalar_lea.vmem [#allocation13], %s2168_s26 }
 0x1ad   : > { %v991_v30 = vadd.f32 %v990_v16, %v960_v28  ;;  %v922_v4 = vadd.f32 %v2312_v59, %v921_v29  ;;  %v965_v59 = vmul.f32 %v2328_v26, %v2328_v26  ;;  %s1050_s19 = sshll.u32 %s319_s15, 4  ;;  %s1063_s30 = sshll.u32 %s325_s12, 4  ;;  %s2462_s19 = int_to_ptr.vmem [resolvable:$true] %s1050_s19  ;;  %s2469_s30 = int_to_ptr.vmem [resolvable:$true] %s1063_s30 }
 0x1ae   : > { %s2460_s14 = scalar_lea.hbm %s2543_s5, %s1275_s11  ;;  %s2467_s29 = scalar_lea.hbm %s2544_s6, %s1275_s11 }
 0x1af   : > { %v923_v32 = vadd.f32 %v922_v4, %v2325_v12  ;;  %v992_v33 = vadd.f32 %v991_v30, %v961_v20  ;;  %v966_v12 = vmul.f32 %v2341_v13, %v2341_v13  ;;  %s2471_s18 = scalar_lea.sflag [#allocation12], %s1017_s7  ;;  %s1816_s9 = scalar_lea.vmem %s2462_s19, 16 }
 0x1b0   : > { %p1817_p3 = scmp.ne.s32.totalorder %s2462_s19, %s1816_s9  ;;  %s1933_s17 = smov [#allocation11]  }
 0x1b1   : > { %v993_v34 = vadd.f32 %v992_v33, %v962_v31  ;;  %v924_v61 = vadd.f32 %v923_v32, %v2332_v48  ;;  %s1820_s20 = sshll.u32 %s1933_s17, 4  ;;  %s1821_s20 = int_to_ptr.vmem [resolvable:$false] %s1820_s20 }
 0x1b2   : > { %p1818_p7 = pnand %p1817_p3, %p2117_p6  ;;  %s1822_s8 = scalar_lea.vmem %s1821_s20, 32 }
 0x1b3   : > { %v925_v36 = vadd.f32 %v2322_v23, %v924_v61  ;;  %v994_v37 = vadd.f32 %v993_v34, %v963_v35  ;;  %v968_v23 = vmul.f32 %v2338_v40, %v2338_v40  ;;  %p1823_p12 = scmp.lt.s32.totalorder %s2462_s19, %s1821_s20  ;;  %p1824_p0 = scmp.lt.s32.totalorder %s1822_s8, %s1816_s9 }
 0x1b4   : > { %p1819_p9 = pneg %p1818_p7 }
 0x1b5   : > { %v995_v38 = vadd.f32 %v994_v37, %v964_v54  ;;  %v926_v39 = vadd.f32 %v2328_v26, %v925_v36  ;;  %v969_v26 = vmul.f32 %v2344_v44, %v2344_v44  ;;  %p1825_p5 = por %p1824_p0, %p1823_p12 }
 0x1b7   : > { %v927_v41 = vadd.f32 %v926_v39, %v2341_v13  ;;  %v996_v42 = vadd.f32 %v995_v38, %v965_v59  ;;  %v970_v13 = vmul.f32 %v2359_v3, %v2359_v3  ;;  %p1826_p10 = pnand %p1825_p5, %p1819_p9 }
 0x1b9   : > { %v997_v43 = vadd.f32 %v996_v42, %v966_v12  ;;  %v928_v48 = vadd.f32 %v927_v41, %v2348_v45 }
 0x1bb   : > { %v929_v46 = vadd.f32 %v2338_v40, %v928_v48  ;;  %v998_v47 = vadd.f32 %v997_v43, %v967_v5  ;;  %v971_v40 = vmul.f32 %v2368_v19, %v2368_v19 }
 0x1bd   : > { %v999_v49 = vadd.f32 %v998_v47, %v968_v23  ;;  %v930_v50 = vadd.f32 %v2344_v44, %v929_v46 }
 0x1bf   : > { %v931_v51 = vadd.f32 %v930_v50, %v2359_v3  ;;  %v1000_v52 = vadd.f32 %v999_v49, %v969_v26 }
 0x1c1   : > { %v1001_v53 = vadd.f32 %v1000_v52, %v970_v13  ;;  %v932_v45 = vadd.f32 %v931_v51, %v2368_v19 }
 0x1c3   : > { %v933_v44 = vadd.f32 %v2354_v2, %v932_v45  ;;  %v1002_v56 = vadd.f32 %v1001_v53, %v971_v40 }
 0x1c5   : > { %v934_v58 = vadd.f32 %v2362_v14, %v933_v44  ;;  %v1003_v60 = vadd.f32 %v1002_v56, %v972_v11 }
 0x1c7   : > { %v935_v62 = vrot.slane %v934_v58, 4  ;;  %v1004_v63 = vadd.f32 %v1003_v60, %v973_v57 }
 0x1c9   : > { %v936_v0 = vadd.f32 %v935_v62, %v934_v58  ;;  %v1005_v1 = vrot.slane %v1004_v63, 4 }
 0x1cb   : > { %v937_v3 = vrot.slane %v936_v0, 2  ;;  %v1006_v6 = vadd.f32 %v1005_v1, %v1004_v63 }
 0x1cd   : > { %v938_v8 = vadd.f32 %v937_v3, %v936_v0  ;;  %v1007_v9 = vrot.slane %v1006_v6, 2 }
 0x1cf   : > { %v939_v2 = vrot.slane %v938_v8, 1  ;;  %v1008_v17 = vadd.f32 %v1007_v9, %v1006_v6 }
 0x1d1   : > { %v1009_v14 = vrot.slane %v1008_v17, 1  ;;  %v940_v18 = vadd.f32 %v939_v2, %v938_v8 }
 0x1d3   : > { %941 = vst [vmem:[%s319_s15] sm:$0x1] %v940_v18  ;;  %v1010_v19 = vadd.f32 %v1009_v14, %v1008_v17 }
 0x1d4   : > { %1829 = shalt.err (!%p1826_p10)
}
 0x1d5   : > { %s1830_s7 = scalar_lea.hbm %s2460_s14, 16  ;;  %s1834_s25 = scalar_lea.hbm %s2543_s5, 64 }
 0x1d6   : > { %p1831_p11 = scmp.ne.s32.totalorder %s2460_s14, %s1830_s7  ;;  %p1835_p1 = scmp.lt.u32.totalorder %s2460_s14, %s2543_s5 }
 0x1d7   : > { %p1836_p4 = scmp.lt.u32.totalorder %s1834_s25, %s1830_s7  ;;  %p1838_p3 = scmp.lt.u32.totalorder %s1830_s7, %s2460_s14 }
 0x1d8   : > { %p1832_p13 = pnand %p1831_p11, %p2117_p6 }
 0x1d9   : > { %p1837_p8 = por %p1836_p4, %p1835_p1 }
 0x1da   : > { %p1833_p2 = pneg %p1832_p13 }
 0x1db   : > { %p1839_p7 = por %p1838_p3, %p1837_p8 }
 0x1dd   : > { %p1840_p9 = pnand %p1839_p7, %p1833_p2 }
 0x1df   : > { %1843 = shalt.err (!%p1840_p9)
}
 0x1e0   : > { %1590 = dma.vmem_to_hbm [thread:$0]  (%p2117_p6), %s2462_s19, 16, %s2460_s14, %s2471_s18   ;;  %1011 = vst [vmem:[%s325_s12] sm:$0x1] %v1010_v19 }
 0x1e1   : > { %s1844_s9 = scalar_lea.vmem %s2469_s30, 16  ;;  %s1934_s20 = smov [#allocation13]  }
 0x1e2   : > { %p1845_p12 = scmp.ne.s32.totalorder %s2469_s30, %s1844_s9  ;;  %s1848_s8 = sshll.u32 %s1934_s20, 4  ;;  %s1849_s8 = int_to_ptr.vmem [resolvable:$false] %s1848_s8 }
 0x1e3   : > { %s1850_s7 = scalar_lea.vmem %s1849_s8, 32  ;;  %p1851_p10 = scmp.lt.s32.totalorder %s2469_s30, %s1849_s8 }
 0x1e4   : > { %p1846_p0 = pnand %p1845_p12, %p2117_p6  ;;  %p1852_p11 = scmp.lt.s32.totalorder %s1850_s7, %s1844_s9 }
 0x1e6   : > { %p1847_p5 = pneg %p1846_p0  ;;  %p1853_p13 = por %p1852_p11, %p1851_p10 }
 0x1e8   : > { %p1854_p2 = pnand %p1853_p13, %p1847_p5 }
 0x1ea   : > { %1857 = shalt.err (!%p1854_p2)
}
 0x1eb   : > { %s1858_s26 = scalar_lea.hbm %s2467_s29, 16  ;;  %s1862_s14 = scalar_lea.hbm %s2544_s6, 64 }
 0x1ec   : > { %p1859_p1 = scmp.ne.s32.totalorder %s2467_s29, %s1858_s26  ;;  %p1863_p3 = scmp.lt.u32.totalorder %s2467_s29, %s2544_s6 }
 0x1ed   : > { %p1864_p7 = scmp.lt.u32.totalorder %s1862_s14, %s1858_s26  ;;  %p1866_p12 = scmp.lt.u32.totalorder %s1858_s26, %s2467_s29 }
 0x1ee   : > { %p1860_p4 = pnand %p1859_p1, %p2117_p6 }
 0x1ef   : > { %p1865_p9 = por %p1864_p7, %p1863_p3 }
 0x1f0   : > { %p1861_p8 = pneg %p1860_p4 }
 0x1f1   : > { %p1867_p0 = por %p1866_p12, %p1865_p9 }
 0x1f3   : > { %p1868_p5 = pnand %p1867_p0, %p1861_p8 }
 0x1f5   : > { %1871 = shalt.err (!%p1868_p5)
}
 0x1f6   : > { %1591 = dma.vmem_to_hbm [thread:$0]  (%p2117_p6), %s2469_s30, 16, %s2467_s29, %s2471_s18  }
 0x1f7 PF: > { %p1626_p10 = scmp.ge.s32.totalorder %s1922_s24, 2  ;;  %s1075_s25 = sand.u32 1, %s1910_s21  }
 0x1f8   : > { %p2563_p11 = scmp.ne.s32.totalorder %s2550_s28, 0  ;;  %s1076_s27 = scalar_lea.sflag [#allocation4], %s1075_s25 }
 0x1fa   : > { %p1610_p13 = pnand %p1626_p10, %p2563_p11 }
 0x1fc   : > { %1901 = dma.done.wait (!%p1610_p13), %s1076_s27, 2048  }
 0x1fd   : > { %1903 = vsyncadd (!%p1610_p13), %s1076_s27, 4294965248  ;;  %s2564_s17 = sadd.s32 4294967294, %s1922_s24  }
 0x1fe   : > { %s1084_s9 = sand.u32 1, %s2564_s17  }
 0x1ff   : > { %s1085_s20 = scalar_lea.sflag [#allocation12], %s1084_s9 }
 0x200   : > { %1905 = dma.done.wait (!%p1610_p13), %s1085_s20, 32  }
 0x201   : > { %1907 = vsyncadd (!%p1610_p13), %s1085_s20, 4294967264  ;;  %p25_p6 = scmp.ge.s32.totalorder %s2103_s13, 6   ;;  %s2565_s21 = smov %s1914_s22 }
 0x202   : > { %s2566_s22 = smov %s1918_s23  ;;  %s2567_s23 = smov %s2113_s16 }
 0x203   : > { %s2568_s24 = smov %s2103_s13  ;;  %27 = sbr.rel (!%p25_p6) target bundleno = 9 (0x9), region = 125 }
 0x20a   :  { %1097 = vsyncpa [#allocation3], 1 }
 0x20b   :  { %1099 = vsyncpa [#allocation3 + $0x1], 1 }
 0x20c   :  { %1100 = vsyncpa [#allocation6], 1 }
 0x20d   :  { %1101 = vsyncpa [#allocation9], 1 }
 0x20e   :  { %1102 = vsyncpa [#allocation4], 1 }
 0x20f   :  { %1104 = vsyncpa [#allocation4 + $0x1], 1 }
 0x210   :  { %1105 = vsyncpa [#allocation12], 1 }
 0x211   :  { %1107 = vsyncpa [#allocation12 + $0x1], 1 }

// kernel: bottleneck_forward.4
= control target key start
LH: loop header
LB: loop body
LE: loop exit
PB: predicated region body
PF: predicated region fallthrough
CT: control target
= control target key end

     0   :  { %10 = vsyncpa [#allocation3], 0  ;;  %s2072_s0 = inlined_call_operand.hbm [shape: bf16[1024,128], index: 0, kind: input, shape index: {}]   ;;  %s2073_s1 = inlined_call_operand.hbm [shape: bf16[128,128], index: 1, kind: input, shape index: {}]   ;;  %s2074_s2 = inlined_call_operand.hbm [shape: bf16[1024,128], index: 2, kind: output, shape index: {0}]   ;;  %s2075_s3 = inlined_call_operand.hbm [shape: f32[4,1,128], index: 3, kind: output, shape index: {1}]   ;;  %s2076_s4 = inlined_call_operand.hbm [shape: f32[4,1,128], index: 4, kind: output, shape index: {2}]  }
   0x1   :  { %12 = vsyncpa [#allocation3 + $0x1], 0 }
   0x2   :  { %13 = vsyncpa [#allocation6], 0 }
   0x3   :  { %14 = vsyncpa [#allocation4], 0 }
   0x4   :  { %16 = vsyncpa [#allocation4 + $0x1], 0 }
   0x5   :  { %17 = vsyncpa [#allocation9], 0 }
   0x6   :  { %19 = vsyncpa [#allocation9 + $0x1], 0  ;;  %s1665_s15 = smov 0   ;;  %s1667_s16 = smov 0  }
   0x7   :  { %s1669_s17 = smov 0   ;;  %s1671_s18 = smov 0  }
   0x8 LB: > { %s1686_s19 = sadd.s32 4294967295, %s1629_s18   ;;  %s1055_s20 = sadd.s32 4294967294, %s1629_s18   ;;  %s1629_s18 = sphi %s1671_s18, %s2095_s18   ;;  %s1625_s17 = sphi %s1669_s17, %s2094_s17   ;;  %s1621_s16 = sphi %s1667_s16, %s2093_s16   ;;  %s1617_s15 = sphi %s1665_s15, %s2092_s15  }
   0x9   : > { %p45_p0 = scmp.ne.s32.totalorder %s1621_s16, %s1617_s15  ;;  %p2077_p1 = scmp.eq.s32.totalorder %s1686_s19, 0 }
   0xa   : > { %p96_p3 = scmp.eq.s32.totalorder %s1055_s20, 3  ;;  %p1056_p5 = scmp.ge.s32.totalorder %s1629_s18, 1 }
   0xb   : > { %p1697_p4 = por %p2077_p1, %p45_p0  ;;  %p155_p7 = scmp.lt.s32.totalorder %s1629_s18, 5 }
   0xc   : > { %p1702_p6 = por %p96_p3, %p45_p0  ;;  %s1631_s24 = smov [#allocation5]  }
   0xd   : > { %s2080_s21 = scalar_select %p1697_p4, 1, 0 }
   0xe   : > { %s2081_s22 = scalar_select %p1702_p6, 1, 0 }
   0xf   : > { %p1707_p8 = pnand %p1056_p5, %p155_p7  ;;  %s167_s25 = sshll.u32 %s1631_s24, 4  ;;  %s168_s25 = int_to_ptr.vmem [resolvable:$true] %s167_s25 }
  0x10   : > { %s1720_s27 = sadd.s32 1, %s1629_s18   ;;  %s32_s28 = sadd.s32 1, %s1625_s17 }
  0x11   : > { %s2082_s23 = scalar_select %p1707_p8, 1, 0 }
  0x12   : > { %p1358_p9 = pneg %p1707_p8  ;;  %s29_s29 = ssub.s32 %s1629_s18, %s1720_s27 }
  0x13   : > { %s1441_s6 = scalar_lea.hbm %s2073_s1, 1024 }
  0x14   : > { %p1715_p10 = pnand %p1358_p9, %p2077_p1  ;;  %p1442_p11 = scmp.ne.s32.totalorder %s2073_s1, %s1441_s6 }
  0x15   : > { %p1448_p3 = scmp.lt.u32.totalorder %s1441_s6, %s2073_s1 }
  0x16   : > { %p1443_p12 = pneg %p1715_p10 }
  0x18   : > { %p1444_p13 = pnand %p1443_p12, %p1442_p11 }
  0x1a   : > { %p1445_p0 = pneg %p1444_p13 }
  0x1c   : > { %p1450_p5 = pnand %p1448_p3, %p1445_p0 }
  0x1e   : > { %1453 = shalt.err (!%p1450_p5)
}
  0x1f   : > { %s1454_s11 = scalar_lea.vmem %s168_s25, 1024  ;;  %p1462_p2 = scmp.lt.s32.totalorder %s168_s25, %s168_s25 }
  0x20   : > { %p1455_p7 = scmp.ne.s32.totalorder %s168_s25, %s1454_s11  ;;  %p1463_p6 = scmp.lt.s32.totalorder %s1454_s11, %s1454_s11 }
  0x22   : > { %p1457_p9 = pnand %p1455_p7, %p1443_p12  ;;  %p1464_p4 = por %p1463_p6, %p1462_p2 }
  0x24   : > { %p1458_p1 = pneg %p1457_p9 }
  0x26   : > { %p1465_p8 = pnand %p1464_p4, %p1458_p1 }
  0x28   : > { %1468 = shalt.err (!%p1465_p8)
}
  0x29   : > { %s1632_s12 = smov 64   ;;  %s1633_s13 = smov 4  }
  0x2a   : > { %1361 = dma.hbm_to_vmem [thread:$0]  (!%p1715_p10), %s2073_s1, 1024, %s168_s25, [#allocation6], %s1632_s12, %s1632_s12, %s1633_s13  }
  0x2b   : > { %p30_p1 = scmp.eq.s32.totalorder %s29_s29, 0  ;;  %p39_p2 = scmp.ne.s32.totalorder %s1625_s17, %s1621_s16 }
  0x2c   : > { %p40_p4 = scmp.eq.s32.totalorder %s1629_s18, 0  ;;  %p1377_p6 = scmp.lt.s32.totalorder %s1629_s18, 4 }
  0x2d   : > { %s1749_s30 = scalar_select %p30_p1, %s1625_s17, %s32_s28  }
  0x2e   : > { %p41_p8 = por %p40_p4, %p39_p2  ;;  %p2084_p11 = scmp.eq.s32.totalorder %s1686_s19, 3 }
  0x2f   : > { %s181_s26 = sand.u32 1, %s1625_s17   ;;  %s1129_s6 = sshll.u32 %s1629_s18, 11 }
  0x30   : > { %p1753_p12 = por %p2084_p11, %p39_p2  ;;  %s1059_s7 = sshll.u32 %s181_s26, 7 }
  0x31   : > { %s1762_s10 = scalar_lea.hbm %s2072_s0, %s1129_s6  ;;  %s185_s25 = scalar_lea.vmem [#allocation2], %s1059_s7 }
  0x32   : > { %s192_s28 = sshll.u32 %s185_s25, 4  ;;  %p1764_p10 = pnand %p1377_p6, %p41_p8  ;;  %s1768_s28 = int_to_ptr.vmem [resolvable:$true] %s192_s28 }
  0x33   : > { %s1770_s11 = scalar_lea.sflag [#allocation3], %s181_s26  ;;  %s1469_s14 = scalar_lea.hbm %s1762_s10, 2048 }
  0x34   : > { %p1470_p13 = scmp.ne.s32.totalorder %s1762_s10, %s1469_s14  ;;  %p1471_p0 = pneg %p1764_p10 }
  0x35   : > { %s1474_s7 = scalar_lea.hbm %s2072_s0, 8192  ;;  %p1475_p7 = scmp.lt.u32.totalorder %s1762_s10, %s2072_s0 }
  0x36   : > { %p1472_p3 = pnand %p1471_p0, %p1470_p13  ;;  %p1476_p9 = scmp.lt.u32.totalorder %s1474_s7, %s1469_s14 }
  0x37   : > { %p1478_p2 = scmp.lt.u32.totalorder %s1469_s14, %s1762_s10 }
  0x38   : > { %p1473_p5 = pneg %p1472_p3  ;;  %p1477_p1 = por %p1476_p9, %p1475_p7 }
  0x3a   : > { %p1479_p4 = por %p1478_p2, %p1477_p1 }
  0x3c   : > { %p1480_p6 = pnand %p1479_p4, %p1473_p5 }
  0x3e   : > { %1483 = shalt.err (!%p1480_p6)
}
  0x3f   : > { %s1484_s26 = scalar_lea.vmem %s1768_s28, 2048  ;;  %s1634_s25 = smov [#allocation2]  }
  0x40   : > { %p1485_p8 = scmp.ne.s32.totalorder %s1768_s28, %s1484_s26  ;;  %s1489_s24 = sshll.u32 %s1634_s25, 4  ;;  %s1490_s24 = int_to_ptr.vmem [resolvable:$false] %s1489_s24 }
  0x41   : > { %s1491_s6 = scalar_lea.vmem %s1490_s24, 4096  ;;  %p1492_p3 = scmp.lt.s32.totalorder %s1768_s28, %s1490_s24 }
  0x42   : > { %p1487_p11 = pnand %p1485_p8, %p1471_p0  ;;  %p1493_p7 = scmp.lt.s32.totalorder %s1491_s6, %s1484_s26 }
  0x44   : > { %p1488_p13 = pneg %p1487_p11  ;;  %p1494_p9 = por %p1493_p7, %p1492_p3 }
  0x46   : > { %p1495_p1 = pnand %p1494_p9, %p1488_p13 }
  0x48   : > { %1498 = shalt.err (!%p1495_p1)
}
  0x49   : > { %1365 = dma.hbm_to_vmem [thread:$0]  (!%p1764_p10), %s1762_s10, 2048, %s1768_s28, %s1770_s11, %s1632_s12, %s1632_s12, %s1633_s13  }
  0x4a   : > { %p2087_p0 = scmp.ne.s32.totalorder %s2082_s23, 0 }
  0x4b   : > { %s1804_s14 = sand.u32 (!%p2087_p0), 1, %s1621_s16   ;;  %p2088_p5 = scmp.ne.s32.totalorder (!%p2087_p0), %s2080_s21, 0 }
  0x4c   : > { %204 = sbr.rel (%p2087_p0) target bundleno = 456 (0x1c8), region = 28  ;;  %s1063_s7 = sshll.u32 (!%p2087_p0), %s1804_s14, 7 }
  0x4d   : > { %s207_s8 = scalar_lea.sflag (!%p2087_p0), [#allocation3], %s1804_s14  ;;  %s1810_s29 = scalar_lea.vmem (!%p2087_p0), [#allocation2], %s1063_s7 }
  0x53   : > { %1600 = dma.done.wait (%p2088_p5), %s207_s8, 2048  }
  0x54   : > { %1602 = vsyncadd (%p2088_p5), %s207_s8, 4294965248  ;;  %p2089_p10 = scmp.eq.s32.totalorder %s1686_s19, 0 }
  0x56   : > { %1604 = dma.done.wait (%p2089_p10), [#allocation6], 1024   ;;  %p2090_p2 = pmov %p2089_p10 }
  0x57   : > { %v1417_v0 = vld [vmem:[#allocation5] sm:$0xff]   ;;  %v1418_v1 = vld [vmem:[#allocation5 + $0x8] sm:$0xff]   ;;  %v1419_v2 = vld [vmem:[#allocation5 + $0x10] sm:$0xff]   ;;  %s1850_s21 = scalar_lea.vmem [#allocation7], %s1063_s7  ;;  %s1162_s23 = sshll.u32 %s1686_s19, 11 }
  0x58   : > { %1606 = vsyncadd (%p2090_p2), [#allocation6], 4294966272  ;;  %1282 = vmatprep.subr.bf16.mxu0 %v1417_v0  ;;  %1330 = vmatprep.subr.bf16.mxu1 %v1417_v0  ;;  %v1420_v3 = vld [vmem:[#allocation5 + $0x18] sm:$0xff]   ;;  %v1425_v4 = vld [vmem:[%s1810_s29] sm:$0xff]   ;;  %s893_s12 = sshll.u32 %s1850_s21, 4  ;;  %s1903_s28 = scalar_lea.hbm %s2074_s2, %s1162_s23  ;;  %s1905_s12 = int_to_ptr.vmem [resolvable:$true] %s893_s12 }
  0x59   : > { %1283 = vmatpush3.bf16.msra.mxu0 %v1417_v0  ;;  %1338 = vmatpush3.bf16.msra.mxu1 %v1417_v0  ;;  %v1421_v5 = vld [vmem:[#allocation5 + $0x20] sm:$0xff]   ;;  %v1422_v6 = vld [vmem:[#allocation5 + $0x28] sm:$0xff]   ;;  %v1423_v8 = vld [vmem:[#allocation5 + $0x30] sm:$0xff]   ;;  %s872_s11 = scalar_lea.sflag [#allocation4], %s1804_s14  ;;  %s1499_s9 = scalar_lea.vmem %s1905_s12, 2048 }
  0x5a   : > { %1284 = vmatprep.subr.bf16.mxu0 %v1418_v1  ;;  %1331 = vmatprep.subr.bf16.mxu1 %v1418_v1  ;;  %v1433_v7 = vld [vmem:[%s1810_s29 + $0x40] sm:$0xff]   ;;  %v1424_v9 = vld [vmem:[#allocation5 + $0x38] sm:$0xff]   ;;  %v1426_v10 = vld [vmem:[%s1810_s29 + $0x8] sm:$0xff]   ;;  %p1500_p4 = scmp.ne.s32.totalorder %s1905_s12, %s1499_s9  ;;  %s1635_s26 = smov [#allocation7]  }
  0x5b   : > { %1298 = vmatprep.mubr.bf16.mxu0 %v1425_v4  ;;  %1314 = vmatprep.mubr.bf16.mxu1 %v1433_v7  ;;  %v1434_v11 = vld [vmem:[%s1810_s29 + $0x48] sm:$0xff]   ;;  %v1427_v12 = vld [vmem:[%s1810_s29 + $0x10] sm:$0xff]   ;;  %v1428_v14 = vld [vmem:[%s1810_s29 + $0x18] sm:$0xff]   ;;  %s1503_s25 = sshll.u32 %s1635_s26, 4  ;;  %s1504_s25 = int_to_ptr.vmem [resolvable:$false] %s1503_s25 }
  0x5c   : > { %v1435_v13 = vld [vmem:[%s1810_s29 + $0x50] sm:$0xff]   ;;  %v1436_v15 = vld [vmem:[%s1810_s29 + $0x58] sm:$0xff]   ;;  %v1429_v16 = vld [vmem:[%s1810_s29 + $0x20] sm:$0xff]   ;;  %p1501_p6 = pnand %p1500_p4, %p1753_p12  ;;  %s1505_s24 = scalar_lea.vmem %s1504_s25, 4096 }
  0x5d   : > { %1285 = vmatpush3.bf16.msra.mxu0 %v1418_v1  ;;  %1339 = vmatpush3.bf16.msra.mxu1 %v1418_v1  ;;  %v1437_v17 = vld [vmem:[%s1810_s29 + $0x60] sm:$0xff]   ;;  %v1430_v18 = vld [vmem:[%s1810_s29 + $0x28] sm:$0xff]   ;;  %v1431_v20 = vld [vmem:[%s1810_s29 + $0x30] sm:$0xff]   ;;  %p1506_p11 = scmp.lt.s32.totalorder %s1905_s12, %s1504_s25  ;;  %p1507_p13 = scmp.lt.s32.totalorder %s1505_s24, %s1499_s9 }
  0x5e   : > { %1286 = vmatprep.subr.bf16.mxu0 %v1419_v2  ;;  %1332 = vmatprep.subr.bf16.mxu1 %v1419_v2  ;;  %v1438_v19 = vld [vmem:[%s1810_s29 + $0x68] sm:$0xff]   ;;  %v1439_v21 = vld [vmem:[%s1810_s29 + $0x70] sm:$0xff]   ;;  %v1432_v22 = vld [vmem:[%s1810_s29 + $0x38] sm:$0xff]   ;;  %p1502_p8 = pneg %p1501_p6 }
  0x5f   : > { %v1440_v23 = vld [vmem:[%s1810_s29 + $0x78] sm:$0xff]   ;;  %p1508_p3 = por %p1507_p13, %p1506_p11 }
  0x61   : > { %1287 = vmatpush3.bf16.msra.mxu0 %v1419_v2  ;;  %1340 = vmatpush3.bf16.msra.mxu1 %v1419_v2  ;;  %p1509_p7 = pnand %p1508_p3, %p1502_p8 }
  0x62   : > { %1288 = vmatprep.subr.bf16.mxu0 %v1420_v3  ;;  %1333 = vmatprep.subr.bf16.mxu1 %v1420_v3 }
  0x65   : > { %1289 = vmatpush3.bf16.msra.mxu0 %v1420_v3  ;;  %1341 = vmatpush3.bf16.msra.mxu1 %v1420_v3 }
  0x66   : > { %1290 = vmatprep.subr.bf16.mxu0 %v1421_v5  ;;  %1334 = vmatprep.subr.bf16.mxu1 %v1421_v5 }
  0x69   : > { %1291 = vmatpush3.bf16.msra.mxu0 %v1421_v5  ;;  %1342 = vmatpush3.bf16.msra.mxu1 %v1421_v5 }
  0x6a   : > { %1292 = vmatprep.subr.bf16.mxu0 %v1422_v6  ;;  %1335 = vmatprep.subr.bf16.mxu1 %v1422_v6 }
  0x6d   : > { %1293 = vmatpush3.bf16.msra.mxu0 %v1422_v6  ;;  %1343 = vmatpush3.bf16.msra.mxu1 %v1422_v6 }
  0x6e   : > { %1294 = vmatprep.subr.bf16.mxu0 %v1423_v8  ;;  %1336 = vmatprep.subr.bf16.mxu1 %v1423_v8 }
  0x71   : > { %1295 = vmatpush3.bf16.msra.mxu0 %v1423_v8  ;;  %1344 = vmatpush3.bf16.msra.mxu1 %v1423_v8 }
  0x72   : > { %1296 = vmatprep.subr.bf16.mxu0 %v1424_v9  ;;  %1337 = vmatprep.subr.bf16.mxu1 %v1424_v9 }
  0x75   : > { %1297 = vmatpush3.bf16.msra.mxu0 %v1424_v9  ;;  %1345 = vmatpush3.bf16.msra.mxu1 %v1424_v9 }
  0x78   : > { %1299 = vmatmul.mubr.bf16.vlgmr.msra.gmra.mrb[0].mxu0 %v1426_v10  ;;  %1315 = vmatmul.mubr.bf16.vlgmr.msra.gmra.mrb[0].mxu1 %v1434_v11 }
  0x79   : > { %1302 = vmatprep.mubr.bf16.mxu0 %v1427_v12  ;;  %1318 = vmatprep.mubr.bf16.mxu1 %v1435_v13 }
  0x80   : > { %1303 = vmatmul.mubr.bf16.gmra.mrb[4].mxu0 %v1428_v14  ;;  %1319 = vmatmul.mubr.bf16.gmra.mrb[4].mxu1 %v1436_v15 }
  0x81   : > { %1306 = vmatprep.mubr.bf16.mxu0 %v1429_v16  ;;  %1322 = vmatprep.mubr.bf16.mxu1 %v1437_v17 }
  0x88   : > { %1307 = vmatmul.mubr.bf16.gmra.mrb[8].mxu0 %v1430_v18  ;;  %1323 = vmatmul.mubr.bf16.gmra.mrb[8].mxu1 %v1438_v19 }
  0x89   : > { %1310 = vmatprep.mubr.bf16.mxu0 %v1431_v20  ;;  %1326 = vmatprep.mubr.bf16.mxu1 %v1439_v21 }
  0x90   : > { %1311 = vmatmul.mubr.bf16.gmra.mrb[12].mxu0 %v1432_v22  ;;  %1327 = vmatmul.mubr.bf16.gmra.mrb[12].mxu1 %v1440_v23 }
 0x14b   : > { %v1300_v24 = vpop.f32.mrb[0].mxu0  ;;  %v1836_v25 = vpop.f32.mrb[0].mxu1 }
 0x14c   : > { %v476_v26 = vpop.f32.mrb[1].mxu0  ;;  %v1838_v27 = vpop.f32.mrb[1].mxu1  ;;  %v803_v39 = vmul.f32 %v1300_v24, %v1300_v24 }
 0x14d   : > { %v1301_v28 = vpop.f32.mrb[2].mxu0  ;;  %v1840_v29 = vpop.f32.mrb[2].mxu1  ;;  %v801_v30 = vmul.f32 %v476_v26, %v476_v26 }
 0x14e   : > { %v1171_v31 = vpack.c.bf16 %v1301_v28, %v1300_v24  ;;  %v479_v32 = vpop.f32.mrb[3].mxu0  ;;  %v1211_v33 = vpack.c.bf16 %v1840_v29, %v1836_v25  ;;  %v1844_v34 = vpop.f32.mrb[3].mxu1  ;;  %v804_v42 = vmul.f32 %v1301_v28, %v1301_v28 }
 0x14f   : > { %v1166_v35 = vpack.c.bf16 %v479_v32, %v476_v26  ;;  %v763_v36 = vadd.f32 %v479_v32, %v476_v26  ;;  %v802_v37 = vmul.f32 %v479_v32, %v479_v32  ;;  %v1206_v38 = vpack.c.bf16 %v1844_v34, %v1838_v27 }
 0x150   : > { %1243 = vst [vmem:[%s1850_s21 + $0x8] sm:$0xff] %v1171_v31   ;;  %1251 = vst [vmem:[%s1850_s21 + $0x48] sm:$0xff] %v1211_v33  }
 0x151   : > { %1167 = vst [vmem:[%s1850_s21] sm:$0xff] %v1166_v35   ;;  %v764_v40 = vadd.f32 %v1300_v24, %v763_v36  ;;  %v833_v41 = vadd.f32 %v802_v37, %v801_v30  ;;  %1250 = vst [vmem:[%s1850_s21 + $0x40] sm:$0xff] %v1206_v38  }
 0x153   : > { %v834_v43 = vadd.f32 %v833_v41, %v803_v39  ;;  %v1304_v44 = vpop.f32.mrb[4].mxu0  ;;  %v765_v45 = vadd.f32 %v1301_v28, %v764_v40  ;;  %v1856_v46 = vpop.f32.mrb[4].mxu1 }
 0x154   : > { %v492_v47 = vpop.f32.mrb[5].mxu0  ;;  %v1858_v48 = vpop.f32.mrb[5].mxu1  ;;  %v807_v63 = vmul.f32 %v1304_v44, %v1304_v44 }
 0x155   : > { %v766_v49 = vadd.f32 %v765_v45, %v492_v47  ;;  %v805_v50 = vmul.f32 %v492_v47, %v492_v47  ;;  %v835_v51 = vadd.f32 %v834_v43, %v804_v42  ;;  %v1305_v52 = vpop.f32.mrb[6].mxu0  ;;  %v1860_v53 = vpop.f32.mrb[6].mxu1 }
 0x156   : > { %v1181_v54 = vpack.c.bf16 %v1305_v52, %v1304_v44  ;;  %v495_v55 = vpop.f32.mrb[7].mxu0  ;;  %v1221_v56 = vpack.c.bf16 %v1860_v53, %v1856_v46  ;;  %v1864_v57 = vpop.f32.mrb[7].mxu1  ;;  %v808_v2 = vmul.f32 %v1305_v52, %v1305_v52 }
 0x157   : > { %v836_v58 = vadd.f32 %v835_v51, %v805_v50  ;;  %v1176_v59 = vpack.c.bf16 %v495_v55, %v492_v47  ;;  %v767_v60 = vadd.f32 %v766_v49, %v495_v55  ;;  %v806_v61 = vmul.f32 %v495_v55, %v495_v55 }
 0x158   : > { %1245 = vst [vmem:[%s1850_s21 + $0x18] sm:$0xff] %v1181_v54   ;;  %1253 = vst [vmem:[%s1850_s21 + $0x58] sm:$0xff] %v1221_v56   ;;  %v1216_v62 = vpack.c.bf16 %v1864_v57, %v1858_v48 }
 0x159   : > { %1244 = vst [vmem:[%s1850_s21 + $0x10] sm:$0xff] %v1176_v59   ;;  %v768_v0 = vadd.f32 %v1304_v44, %v767_v60  ;;  %v837_v1 = vadd.f32 %v836_v58, %v806_v61  ;;  %v817_v61 = vmul.f32 %v1838_v27, %v1838_v27 }
 0x15a   : > { %1252 = vst [vmem:[%s1850_s21 + $0x50] sm:$0xff] %v1216_v62  }
 0x15b   : > { %v838_v3 = vadd.f32 %v837_v1, %v807_v63  ;;  %v1308_v4 = vpop.f32.mrb[8].mxu0  ;;  %v769_v5 = vadd.f32 %v1305_v52, %v768_v0  ;;  %v1872_v6 = vpop.f32.mrb[8].mxu1 }
 0x15c   : > { %v508_v7 = vpop.f32.mrb[9].mxu0  ;;  %v1874_v8 = vpop.f32.mrb[9].mxu1  ;;  %v811_v23 = vmul.f32 %v1308_v4, %v1308_v4 }
 0x15d   : > { %v770_v9 = vadd.f32 %v769_v5, %v508_v7  ;;  %v809_v10 = vmul.f32 %v508_v7, %v508_v7  ;;  %v839_v11 = vadd.f32 %v838_v3, %v808_v2  ;;  %v1309_v12 = vpop.f32.mrb[10].mxu0  ;;  %v1876_v13 = vpop.f32.mrb[10].mxu1 }
 0x15e   : > { %v1191_v14 = vpack.c.bf16 %v1309_v12, %v1308_v4  ;;  %v511_v15 = vpop.f32.mrb[11].mxu0  ;;  %v1231_v16 = vpack.c.bf16 %v1876_v13, %v1872_v6  ;;  %v1880_v17 = vpop.f32.mrb[11].mxu1  ;;  %v812_v28 = vmul.f32 %v1309_v12, %v1309_v12 }
 0x15f   : > { %v840_v18 = vadd.f32 %v839_v11, %v809_v10  ;;  %v1186_v19 = vpack.c.bf16 %v511_v15, %v508_v7  ;;  %v771_v20 = vadd.f32 %v770_v9, %v511_v15  ;;  %v810_v21 = vmul.f32 %v511_v15, %v511_v15 }
 0x160   : > { %1247 = vst [vmem:[%s1850_s21 + $0x28] sm:$0xff] %v1191_v14   ;;  %1255 = vst [vmem:[%s1850_s21 + $0x68] sm:$0xff] %v1231_v16   ;;  %v1226_v22 = vpack.c.bf16 %v1880_v17, %v1874_v8 }
 0x161   : > { %1246 = vst [vmem:[%s1850_s21 + $0x20] sm:$0xff] %v1186_v19   ;;  %v772_v24 = vadd.f32 %v1308_v4, %v771_v20  ;;  %v841_v26 = vadd.f32 %v840_v18, %v810_v21 }
 0x162   : > { %1254 = vst [vmem:[%s1850_s21 + $0x60] sm:$0xff] %v1226_v22  }
 0x163   : > { %v842_v30 = vadd.f32 %v841_v26, %v811_v23  ;;  %v1312_v31 = vpop.f32.mrb[12].mxu0  ;;  %v773_v32 = vadd.f32 %v1309_v12, %v772_v24  ;;  %v1888_v33 = vpop.f32.mrb[12].mxu1 }
 0x164   : > { %v524_v35 = vpop.f32.mrb[13].mxu0  ;;  %v1890_v36 = vpop.f32.mrb[13].mxu1  ;;  %v815_v54 = vmul.f32 %v1312_v31, %v1312_v31 }
 0x165   : > { %v774_v37 = vadd.f32 %v773_v32, %v524_v35  ;;  %v813_v38 = vmul.f32 %v524_v35, %v524_v35  ;;  %v843_v39 = vadd.f32 %v842_v30, %v812_v28  ;;  %v1313_v40 = vpop.f32.mrb[14].mxu0  ;;  %v1894_v41 = vpop.f32.mrb[14].mxu1 }
 0x166   : > { %v1201_v42 = vpack.c.bf16 %v1313_v40, %v1312_v31  ;;  %v527_v43 = vpop.f32.mrb[15].mxu0  ;;  %v1241_v44 = vpack.c.bf16 %v1894_v41, %v1888_v33  ;;  %v1898_v45 = vpop.f32.mrb[15].mxu1  ;;  %v816_v58 = vmul.f32 %v1313_v40, %v1313_v40 }
 0x167   : > { %v844_v47 = vadd.f32 %v843_v39, %v813_v38  ;;  %v1196_v49 = vpack.c.bf16 %v527_v43, %v524_v35  ;;  %v775_v50 = vadd.f32 %v774_v37, %v527_v43  ;;  %v814_v51 = vmul.f32 %v527_v43, %v527_v43 }
 0x168   : > { %1249 = vst [vmem:[%s1850_s21 + $0x38] sm:$0xff] %v1201_v42   ;;  %1257 = vst [vmem:[%s1850_s21 + $0x78] sm:$0xff] %v1241_v44   ;;  %v1236_v52 = vpack.c.bf16 %v1898_v45, %v1890_v36 }
 0x169   : > { %1248 = vst [vmem:[%s1850_s21 + $0x30] sm:$0xff] %v1196_v49   ;;  %v776_v55 = vadd.f32 %v1312_v31, %v775_v50  ;;  %v845_v56 = vadd.f32 %v844_v47, %v814_v51 }
 0x16a   : > { %1256 = vst [vmem:[%s1850_s21 + $0x70] sm:$0xff] %v1236_v52  }
 0x16b   : > { %v846_v59 = vadd.f32 %v845_v56, %v815_v54  ;;  %v777_v60 = vadd.f32 %v1313_v40, %v776_v55 }
 0x16c   : > { %1512 = shalt.err (!%p1509_p7)
}
 0x16d   : > { %s1513_s6 = scalar_lea.hbm %s1903_s28, 2048  ;;  %s1517_s29 = scalar_lea.hbm %s2074_s2, 8192 }
 0x16e   : > { %p1514_p9 = scmp.ne.s32.totalorder %s1903_s28, %s1513_s6  ;;  %p1518_p5 = scmp.lt.u32.totalorder %s1903_s28, %s2074_s2 }
 0x16f   : > { %p1519_p10 = scmp.lt.u32.totalorder %s1517_s29, %s1513_s6  ;;  %p1521_p4 = scmp.lt.u32.totalorder %s1513_s6, %s1903_s28 }
 0x170   : > { %p1515_p1 = pnand %p1514_p9, %p1753_p12 }
 0x171   : > { %p1520_p2 = por %p1519_p10, %p1518_p5 }
 0x172   : > { %p1516_p0 = pneg %p1515_p1 }
 0x173   : > { %p1522_p6 = por %p1521_p4, %p1520_p2 }
 0x175   : > { %p1523_p8 = pnand %p1522_p6, %p1516_p0 }
 0x177   : > { %1526 = shalt.err (!%p1523_p8)
}
 0x178   : > { %s1636_s13 = smov 64   ;;  %s1637_s10 = smov 4   ;;  %v778_v62 = vadd.f32 %v777_v60, %v1838_v27  ;;  %v847_v63 = vadd.f32 %v846_v59, %v816_v58  ;;  %v818_v2 = vmul.f32 %v1844_v34, %v1844_v34  ;;  %v819_v3 = vmul.f32 %v1836_v25, %v1836_v25 }
 0x179   : > { %1352 = dma.vmem_to_hbm [thread:$0]  (%p1753_p12), %s1905_s12, 2048, %s1903_s28, %s872_s11, %s1636_s13, %s1636_s13, %s1637_s10   ;;  %v820_v7 = vmul.f32 %v1840_v29, %v1840_v29  ;;  %v821_v27 = vmul.f32 %v1858_v48, %v1858_v48  ;;  %v822_v15 = vmul.f32 %v1864_v57, %v1864_v57  ;;  %v826_v24 = vmul.f32 %v1880_v17, %v1880_v17 }
 0x17a   : > { %v848_v0 = vadd.f32 %v847_v63, %v817_v61  ;;  %v779_v1 = vadd.f32 %v778_v62, %v1844_v34  ;;  %v831_v38 = vmul.f32 %v1888_v33, %v1888_v33  ;;  %v832_v40 = vmul.f32 %v1894_v41, %v1894_v41  ;;  %s876_s12 = sand.u32 1, %s1686_s19   ;;  %s1125_s28 = sshll.u32 %s1686_s19, 4 }
 0x17b   : > { %s240_s11 = scalar_lea.vmem [#allocation8], %s1804_s14  ;;  %s246_s26 = scalar_lea.vmem [#allocation10], %s1804_s14 }
 0x17c   : > { %v780_v4 = vadd.f32 %v1836_v25, %v779_v1  ;;  %v849_v5 = vadd.f32 %v848_v0, %v818_v2  ;;  %v823_v25 = vmul.f32 %v1856_v46, %v1856_v46  ;;  %s909_s9 = sshll.u32 %s240_s11, 4  ;;  %s922_s25 = sshll.u32 %s246_s26, 4  ;;  %s1996_s9 = int_to_ptr.vmem [resolvable:$true] %s909_s9  ;;  %s2003_s25 = int_to_ptr.vmem [resolvable:$true] %s922_s25 }
 0x17d   : > { %s1994_s7 = scalar_lea.hbm %s2075_s3, %s1125_s28  ;;  %s2001_s29 = scalar_lea.hbm %s2076_s4, %s1125_s28 }
 0x17e   : > { %v850_v9 = vadd.f32 %v849_v5, %v819_v3  ;;  %v781_v10 = vadd.f32 %v1840_v29, %v780_v4  ;;  %v824_v29 = vmul.f32 %v1860_v53, %v1860_v53  ;;  %s2005_s21 = scalar_lea.sflag [#allocation9], %s876_s12  ;;  %s1527_s23 = scalar_lea.vmem %s1996_s9, 16 }
 0x17f   : > { %p1528_p11 = scmp.ne.s32.totalorder %s1996_s9, %s1527_s23  ;;  %s1638_s13 = smov [#allocation8]  }
 0x180   : > { %v782_v11 = vadd.f32 %v781_v10, %v1858_v48  ;;  %v851_v12 = vadd.f32 %v850_v9, %v820_v7  ;;  %v825_v48 = vmul.f32 %v1874_v8, %v1874_v8  ;;  %s1531_s10 = sshll.u32 %s1638_s13, 4  ;;  %s1532_s10 = int_to_ptr.vmem [resolvable:$false] %s1531_s10 }
 0x181   : > { %p1529_p13 = pnand %p1528_p11, %p1753_p12  ;;  %s1533_s24 = scalar_lea.vmem %s1532_s10, 32 }
 0x182   : > { %v852_v14 = vadd.f32 %v851_v12, %v821_v27  ;;  %v783_v34 = vadd.f32 %v782_v11, %v1864_v57  ;;  %p1534_p7 = scmp.lt.s32.totalorder %s1996_s9, %s1532_s10  ;;  %p1535_p9 = scmp.lt.s32.totalorder %s1533_s24, %s1527_s23 }
 0x183   : > { %p1530_p3 = pneg %p1529_p13 }
 0x184   : > { %v784_v16 = vadd.f32 %v1856_v46, %v783_v34  ;;  %v853_v18 = vadd.f32 %v852_v14, %v822_v15  ;;  %v827_v46 = vmul.f32 %v1872_v6, %v1872_v6  ;;  %p1536_p1 = por %p1535_p9, %p1534_p7 }
 0x186   : > { %v854_v19 = vadd.f32 %v853_v18, %v823_v25  ;;  %v785_v20 = vadd.f32 %v1860_v53, %v784_v16  ;;  %v828_v53 = vmul.f32 %v1876_v13, %v1876_v13  ;;  %p1537_p0 = pnand %p1536_p1, %p1530_p3 }
 0x188   : > { %v786_v21 = vadd.f32 %v785_v20, %v1874_v8  ;;  %v855_v22 = vadd.f32 %v854_v19, %v824_v29  ;;  %v829_v8 = vmul.f32 %v1890_v36, %v1890_v36 }
 0x18a   : > { %v856_v23 = vadd.f32 %v855_v22, %v825_v48  ;;  %v787_v57 = vadd.f32 %v786_v21, %v1880_v17 }
 0x18c   : > { %v788_v26 = vadd.f32 %v1872_v6, %v787_v57  ;;  %v857_v28 = vadd.f32 %v856_v23, %v826_v24  ;;  %v830_v6 = vmul.f32 %v1898_v45, %v1898_v45 }
 0x18e   : > { %v858_v30 = vadd.f32 %v857_v28, %v827_v46  ;;  %v789_v31 = vadd.f32 %v1876_v13, %v788_v26 }
 0x190   : > { %v790_v32 = vadd.f32 %v789_v31, %v1890_v36  ;;  %v859_v35 = vadd.f32 %v858_v30, %v828_v53 }
 0x192   : > { %v860_v37 = vadd.f32 %v859_v35, %v829_v8  ;;  %v791_v17 = vadd.f32 %v790_v32, %v1898_v45 }
 0x194   : > { %v792_v13 = vadd.f32 %v1888_v33, %v791_v17  ;;  %v861_v39 = vadd.f32 %v860_v37, %v830_v6 }
 0x196   : > { %v793_v36 = vadd.f32 %v1894_v41, %v792_v13  ;;  %v862_v42 = vadd.f32 %v861_v39, %v831_v38 }
 0x198   : > { %v794_v43 = vrot.slane %v793_v36, 4  ;;  %v863_v44 = vadd.f32 %v862_v42, %v832_v40 }
 0x19a   : > { %v795_v47 = vadd.f32 %v794_v43, %v793_v36  ;;  %v864_v45 = vrot.slane %v863_v44, 4 }
 0x19c   : > { %v796_v49 = vrot.slane %v795_v47, 2  ;;  %v865_v50 = vadd.f32 %v864_v45, %v863_v44 }
 0x19e   : > { %v797_v51 = vadd.f32 %v796_v49, %v795_v47  ;;  %v866_v52 = vrot.slane %v865_v50, 2 }
 0x1a0   : > { %v798_v33 = vrot.slane %v797_v51, 1  ;;  %v867_v54 = vadd.f32 %v866_v52, %v865_v50 }
 0x1a2   : > { %v868_v41 = vrot.slane %v867_v54, 1  ;;  %v799_v55 = vadd.f32 %v798_v33, %v797_v51 }
 0x1a4   : > { %800 = vst [vmem:[%s240_s11] sm:$0x1] %v799_v55  ;;  %v869_v56 = vadd.f32 %v868_v41, %v867_v54 }
 0x1a5   : > { %1540 = shalt.err (!%p1537_p0)
}
 0x1a6   : > { %s1541_s12 = scalar_lea.hbm %s1994_s7, 16  ;;  %s1545_s6 = scalar_lea.hbm %s2075_s3, 64 }
 0x1a7   : > { %p1542_p5 = scmp.ne.s32.totalorder %s1994_s7, %s1541_s12  ;;  %p1546_p4 = scmp.lt.u32.totalorder %s1994_s7, %s2075_s3 }
 0x1a8   : > { %p1547_p6 = scmp.lt.u32.totalorder %s1545_s6, %s1541_s12  ;;  %p1549_p11 = scmp.lt.u32.totalorder %s1541_s12, %s1994_s7 }
 0x1a9   : > { %p1543_p10 = pnand %p1542_p5, %p1753_p12 }
 0x1aa   : > { %p1548_p8 = por %p1547_p6, %p1546_p4 }
 0x1ab   : > { %p1544_p2 = pneg %p1543_p10 }
 0x1ac   : > { %p1550_p13 = por %p1549_p11, %p1548_p8 }
 0x1ae   : > { %p1551_p3 = pnand %p1550_p13, %p1544_p2 }
 0x1b0   : > { %1554 = shalt.err (!%p1551_p3)
}
 0x1b1   : > { %1353 = dma.vmem_to_hbm [thread:$0]  (%p1753_p12), %s1996_s9, 16, %s1994_s7, %s2005_s21   ;;  %870 = vst [vmem:[%s246_s26] sm:$0x1] %v869_v56 }
 0x1b2   : > { %s1555_s23 = scalar_lea.vmem %s2003_s25, 16  ;;  %s1639_s13 = smov [#allocation10]  }
 0x1b3   : > { %p1556_p7 = scmp.ne.s32.totalorder %s2003_s25, %s1555_s23  ;;  %s1559_s10 = sshll.u32 %s1639_s13, 4  ;;  %s1560_s10 = int_to_ptr.vmem [resolvable:$false] %s1559_s10 }
 0x1b4   : > { %s1561_s24 = scalar_lea.vmem %s1560_s10, 32  ;;  %p1562_p0 = scmp.lt.s32.totalorder %s2003_s25, %s1560_s10 }
 0x1b5   : > { %p1557_p9 = pnand %p1556_p7, %p1753_p12  ;;  %p1563_p5 = scmp.lt.s32.totalorder %s1561_s24, %s1555_s23 }
 0x1b7   : > { %p1558_p1 = pneg %p1557_p9  ;;  %p1564_p10 = por %p1563_p5, %p1562_p0 }
 0x1b9   : > { %p1565_p2 = pnand %p1564_p10, %p1558_p1 }
 0x1bb   : > { %1568 = shalt.err (!%p1565_p2)
}
 0x1bc   : > { %s1569_s14 = scalar_lea.hbm %s2001_s29, 16  ;;  %s1573_s7 = scalar_lea.hbm %s2076_s4, 64 }
 0x1bd   : > { %p1570_p4 = scmp.ne.s32.totalorder %s2001_s29, %s1569_s14  ;;  %p1574_p11 = scmp.lt.u32.totalorder %s2001_s29, %s2076_s4 }
 0x1be   : > { %p1575_p13 = scmp.lt.u32.totalorder %s1573_s7, %s1569_s14  ;;  %p1577_p7 = scmp.lt.u32.totalorder %s1569_s14, %s2001_s29 }
 0x1bf   : > { %p1571_p6 = pnand %p1570_p4, %p1753_p12 }
 0x1c0   : > { %p1576_p3 = por %p1575_p13, %p1574_p11 }
 0x1c1   : > { %p1572_p8 = pneg %p1571_p6 }
 0x1c2   : > { %p1578_p9 = por %p1577_p7, %p1576_p3 }
 0x1c4   : > { %p1579_p1 = pnand %p1578_p9, %p1572_p8 }
 0x1c6   : > { %1582 = shalt.err (!%p1579_p1)
}
 0x1c7   : > { %1354 = dma.vmem_to_hbm [thread:$0]  (%p1753_p12), %s2003_s25, 16, %s2001_s29, %s2005_s21  }
 0x1c8 PF: > { %p1379_p0 = scmp.ge.s32.totalorder %s1629_s18, 2  ;;  %s934_s11 = sand.u32 1, %s1617_s15  }
 0x1c9   : > { %p2091_p5 = scmp.ne.s32.totalorder %s2081_s22, 0  ;;  %s935_s6 = scalar_lea.sflag [#allocation4], %s934_s11 }
 0x1cb   : > { %p1367_p10 = pnand %p1379_p0, %p2091_p5 }
 0x1cd   : > { %1608 = dma.done.wait (!%p1367_p10), %s935_s6, 2048  }
 0x1ce   : > { %1610 = vsyncadd (!%p1367_p10), %s935_s6, 4294965248  ;;  %s943_s19 = sand.u32 1, %s1055_s20  }
 0x1cf   : > { %s944_s8 = scalar_lea.sflag [#allocation9], %s943_s19 }
 0x1d0   : > { %1612 = dma.done.wait (!%p1367_p10), %s944_s8, 32  }
 0x1d1   : > { %1614 = vsyncadd (!%p1367_p10), %s944_s8, 4294967264  ;;  %p22_p12 = scmp.ge.s32.totalorder %s1720_s27, 6   ;;  %s2092_s15 = smov %s1621_s16 }
 0x1d2   : > { %s2093_s16 = smov %s1625_s17  ;;  %s2094_s17 = smov %s1749_s30 }
 0x1d3   : > { %s2095_s18 = smov %s1720_s27  ;;  %24 = sbr.rel (!%p22_p12) target bundleno = 8 (0x8), region = 109 }
 0x1da   :  { %956 = vsyncpa [#allocation3], 1 }
 0x1db   :  { %958 = vsyncpa [#allocation3 + $0x1], 1 }
 0x1dc   :  { %959 = vsyncpa [#allocation6], 1 }
 0x1dd   :  { %960 = vsyncpa [#allocation4], 1 }
 0x1de   :  { %962 = vsyncpa [#allocation4 + $0x1], 1 }
 0x1df   :  { %963 = vsyncpa [#allocation9], 1 }
 0x1e0   :  { %965 = vsyncpa [#allocation9 + $0x1], 1 }

// kernel: bottleneck_forward.5
= control target key start
LH: loop header
LB: loop body
LE: loop exit
PB: predicated region body
PF: predicated region fallthrough
CT: control target
= control target key end

     0   :  { %12 = vsyncpa [#allocation6], 0  ;;  %s8106_s0 = inlined_call_operand.hbm [shape: bf16[4,16,16,128], index: 0, kind: input, shape index: {}]   ;;  %s8107_s1 = inlined_call_operand.hbm [shape: f32[1,128], index: 1, kind: input, shape index: {}]   ;;  %s8108_s2 = inlined_call_operand.hbm [shape: f32[1,128], index: 2, kind: input, shape index: {}]   ;;  %s8109_s3 = inlined_call_operand.hbm [shape: bf16[3,3,128,128], index: 3, kind: input, shape index: {}]   ;;  %s8110_s4 = inlined_call_operand.hbm [shape: bf16[4,16,16,128], index: 4, kind: output, shape index: {0}]   ;;  %s8111_s5 = inlined_call_operand.hbm [shape: f32[4,1,128], index: 5, kind: output, shape index: {1}]   ;;  %s8112_s6 = inlined_call_operand.hbm [shape: f32[4,1,128], index: 6, kind: output, shape index: {2}]  }
   0x1   :  { %14 = vsyncpa [#allocation6 + $0x1], 0 }
   0x2   :  { %15 = vsyncpa [#allocation9], 0 }
   0x3   :  { %16 = vsyncpa [#allocation12], 0 }
   0x4   :  { %17 = vsyncpa [#allocation7], 0 }
   0x5   :  { %19 = vsyncpa [#allocation7 + $0x1], 0 }
   0x6   :  { %20 = vsyncpa [#allocation15], 0 }
   0x7   :  { %22 = vsyncpa [#allocation15 + $0x1], 0  ;;  %s6409_s21 = smov 0   ;;  %s6411_s22 = smov 0  }
   0x8   :  { %s6413_s23 = smov 0   ;;  %s6415_s24 = smov 0  }
   0x9 LB: > { %s6430_s25 = sadd.s32 4294967295, %s6359_s24   ;;  %s8116_s26 = sadd.s32 4294967294, %s6359_s24   ;;  %s6359_s24 = sphi %s6415_s24, %s8514_s24   ;;  %s6355_s23 = sphi %s6413_s23, %s8513_s23   ;;  %s6351_s22 = sphi %s6411_s22, %s8512_s22   ;;  %s6347_s21 = sphi %s6409_s21, %s8511_s21  }
   0xa   : > { %p48_p0 = scmp.ne.s32.totalorder %s6351_s22, %s6347_s21  ;;  %p8113_p1 = scmp.eq.s32.totalorder %s6430_s25, 0 }
   0xb   : > { %p141_p3 = scmp.eq.s32.totalorder %s8116_s26, 3  ;;  %p4557_p5 = scmp.ge.s32.totalorder %s6359_s24, 1 }
   0xc   : > { %p6441_p4 = por %p8113_p1, %p48_p0  ;;  %p200_p7 = scmp.lt.s32.totalorder %s6359_s24, 5 }
   0xd   : > { %p6446_p6 = por %p141_p3, %p48_p0  ;;  %s6361_s30 = smov [#allocation8]  }
   0xe   : > { %s8216_s27 = scalar_select %p6441_p4, 1, 0 }
   0xf   : > { %s8217_s28 = scalar_select %p6446_p6, 1, 0 }
  0x10   : > { %p6451_p8 = pnand %p4557_p5, %p200_p7  ;;  %s213_s7 = sshll.u32 %s6361_s30, 4  ;;  %s214_s7 = int_to_ptr.vmem [resolvable:$true] %s213_s7 }
  0x11   : > { %s6362_s8 = smov [#allocation10]   ;;  %s6363_s11 = smov [#allocation11]  }
  0x12   : > { %s8218_s29 = scalar_select %p6451_p8, 1, 0 }
  0x13   : > { %p5956_p9 = pneg %p6451_p8  ;;  %s224_s9 = sshll.u32 %s6362_s8, 4  ;;  %s6463_s9 = int_to_ptr.vmem [resolvable:$true] %s224_s9 }
  0x14   : > { %s234_s12 = sshll.u32 %s6363_s11, 4  ;;  %s6111_s15 = scalar_lea.hbm %s8107_s1, 16  ;;  %s6465_s12 = int_to_ptr.vmem [resolvable:$true] %s234_s12 }
  0x15   : > { %p6459_p10 = pnand %p5956_p9, %p8113_p1  ;;  %p6112_p11 = scmp.ne.s32.totalorder %s8107_s1, %s6111_s15 }
  0x16   : > { %p6118_p3 = scmp.lt.u32.totalorder %s6111_s15, %s8107_s1 }
  0x17   : > { %p6475_p12 = pneg %p6459_p10 }
  0x19   : > { %p6114_p13 = pnand %p6475_p12, %p6112_p11 }
  0x1b   : > { %p6115_p0 = pneg %p6114_p13 }
  0x1d   : > { %p6120_p5 = pnand %p6118_p3, %p6115_p0 }
  0x1f   : > { %6123 = shalt.err (!%p6120_p5)
}
  0x20   : > { %s6124_s30 = scalar_lea.vmem %s214_s7, 16  ;;  %s6131_s8 = scalar_lea.vmem %s214_s7, 32 }
  0x21   : > { %p6125_p7 = scmp.ne.s32.totalorder %s214_s7, %s6124_s30  ;;  %p6132_p2 = scmp.lt.s32.totalorder %s214_s7, %s214_s7 }
  0x22   : > { %p6133_p6 = scmp.lt.s32.totalorder %s6131_s8, %s6124_s30 }
  0x23   : > { %p6127_p9 = pnand %p6125_p7, %p6475_p12 }
  0x24   : > { %p6134_p4 = por %p6133_p6, %p6132_p2 }
  0x25   : > { %p6128_p1 = pneg %p6127_p9 }
  0x27   : > { %p6135_p8 = pnand %p6134_p4, %p6128_p1 }
  0x29   : > { %6138 = shalt.err (!%p6135_p8)
}
  0x2a   : > { %5959 = dma.hbm_to_vmem [thread:$0]  (!%p6459_p10), %s8107_s1, 16, %s214_s7, [#allocation9]  }
  0x2b   : > { %s6139_s16 = scalar_lea.hbm %s8108_s2, 16 }
  0x2c   : > { %p6140_p11 = scmp.ne.s32.totalorder %s8108_s2, %s6139_s16  ;;  %p6146_p1 = scmp.lt.u32.totalorder %s6139_s16, %s8108_s2 }
  0x2e   : > { %p6142_p13 = pnand %p6140_p11, %p6475_p12 }
  0x30   : > { %p6143_p2 = pneg %p6142_p13 }
  0x32   : > { %p6148_p4 = pnand %p6146_p1, %p6143_p2 }
  0x34   : > { %6151 = shalt.err (!%p6148_p4)
}
  0x35   : > { %s6152_s7 = scalar_lea.vmem %s6463_s9, 16  ;;  %s6159_s8 = scalar_lea.vmem %s6463_s9, 32 }
  0x36   : > { %p6153_p6 = scmp.ne.s32.totalorder %s6463_s9, %s6152_s7  ;;  %p6160_p3 = scmp.lt.s32.totalorder %s6463_s9, %s6463_s9 }
  0x37   : > { %p6161_p5 = scmp.lt.s32.totalorder %s6159_s8, %s6152_s7 }
  0x38   : > { %p6155_p8 = pnand %p6153_p6, %p6475_p12 }
  0x39   : > { %p6162_p7 = por %p6161_p5, %p6160_p3 }
  0x3a   : > { %p6156_p0 = pneg %p6155_p8 }
  0x3c   : > { %p6163_p9 = pnand %p6162_p7, %p6156_p0 }
  0x3e   : > { %6166 = shalt.err (!%p6163_p9)
}
  0x3f   : > { %5962 = dma.hbm_to_vmem [thread:$0]  (!%p6459_p10), %s8108_s2, 16, %s6463_s9, [#allocation9]  }
  0x40   : > { %s6167_s16 = scalar_lea.hbm %s8109_s3, 9216 }
  0x41   : > { %p6168_p11 = scmp.ne.s32.totalorder %s8109_s3, %s6167_s16  ;;  %p6174_p1 = scmp.lt.u32.totalorder %s6167_s16, %s8109_s3 }
  0x43   : > { %p6170_p13 = pnand %p6168_p11, %p6475_p12 }
  0x45   : > { %p6171_p2 = pneg %p6170_p13 }
  0x47   : > { %p6176_p4 = pnand %p6174_p1, %p6171_p2 }
  0x49   : > { %6179 = shalt.err (!%p6176_p4)
}
  0x4a   : > { %s6180_s9 = scalar_lea.vmem %s6465_s12, 9216  ;;  %p6188_p3 = scmp.lt.s32.totalorder %s6465_s12, %s6465_s12 }
  0x4b   : > { %p6181_p6 = scmp.ne.s32.totalorder %s6465_s12, %s6180_s9  ;;  %p6189_p5 = scmp.lt.s32.totalorder %s6180_s9, %s6180_s9 }
  0x4d   : > { %p6183_p8 = pnand %p6181_p6, %p6475_p12  ;;  %p6190_p7 = por %p6189_p5, %p6188_p3 }
  0x4f   : > { %p6184_p0 = pneg %p6183_p8 }
  0x51   : > { %p6191_p9 = pnand %p6190_p7, %p6184_p0 }
  0x53   : > { %6194 = shalt.err (!%p6191_p9)
}
  0x54   : > { %s6364_s7 = smov 64   ;;  %s6365_s18 = smov 4  }
  0x55   : > { %5965 = dma.hbm_to_vmem [thread:$0]  (!%p6459_p10), %s8109_s3, 9216, %s6465_s12, [#allocation12], %s6364_s7, %s6364_s7, %s6365_s18  }
  0x56   : > { %s6542_s13 = sadd.s32 1, %s6359_s24   ;;  %s35_s15 = sadd.s32 1, %s6355_s23 }
  0x57   : > { %s32_s14 = ssub.s32 %s6359_s24, %s6542_s13  ;;  %p42_p11 = scmp.ne.s32.totalorder %s6355_s23, %s6351_s22 }
  0x58   : > { %p33_p12 = scmp.eq.s32.totalorder %s32_s14, 0  ;;  %p43_p13 = scmp.eq.s32.totalorder %s6359_s24, 0 }
  0x59   : > { %p5983_p2 = scmp.lt.s32.totalorder %s6359_s24, 4  ;;  %p8221_p4 = scmp.eq.s32.totalorder %s6430_s25, 3 }
  0x5a   : > { %s6552_s16 = scalar_select %p33_p12, %s6355_s23, %s35_s15  }
  0x5b   : > { %p44_p1 = por %p43_p13, %p42_p11  ;;  %p6556_p6 = por %p8221_p4, %p42_p11 }
  0x5c   : > { %s248_s17 = sand.u32 1, %s6355_s23   ;;  %s4716_s19 = sshll.u32 %s6359_s24, 11 }
  0x5d   : > { %s4562_s12 = sshll.u32 %s248_s17, 7  ;;  %s6565_s9 = scalar_lea.hbm %s8106_s0, %s4716_s19 }
  0x5e   : > { %s252_s8 = scalar_lea.vmem [#allocation5], %s4562_s12  ;;  %p6567_p10 = pnand %p5983_p2, %p44_p1 }
  0x5f   : > { %s259_s11 = sshll.u32 %s252_s8, 4  ;;  %s6573_s15 = scalar_lea.sflag [#allocation6], %s248_s17  ;;  %s6571_s11 = int_to_ptr.vmem [resolvable:$true] %s259_s11 }
  0x60   : > { %s6195_s26 = scalar_lea.hbm %s6565_s9, 2048  ;;  %p6197_p0 = pneg %p6567_p10 }
  0x61   : > { %p6196_p8 = scmp.ne.s32.totalorder %s6565_s9, %s6195_s26  ;;  %s6200_s20 = scalar_lea.hbm %s8106_s0, 8192 }
  0x62   : > { %p6201_p7 = scmp.lt.u32.totalorder %s6565_s9, %s8106_s0  ;;  %p6202_p9 = scmp.lt.u32.totalorder %s6200_s20, %s6195_s26 }
  0x63   : > { %p6198_p3 = pnand %p6197_p0, %p6196_p8  ;;  %p6204_p11 = scmp.lt.u32.totalorder %s6195_s26, %s6565_s9 }
  0x64   : > { %p6203_p12 = por %p6202_p9, %p6201_p7 }
  0x65   : > { %p6199_p5 = pneg %p6198_p3 }
  0x66   : > { %p6205_p13 = por %p6204_p11, %p6203_p12 }
  0x68   : > { %p6206_p2 = pnand %p6205_p13, %p6199_p5 }
  0x6a   : > { %6209 = shalt.err (!%p6206_p2)
}
  0x6b   : > { %s6210_s17 = scalar_lea.vmem %s6571_s11, 2048  ;;  %s6366_s19 = smov [#allocation5]  }
  0x6c   : > { %p6211_p1 = scmp.ne.s32.totalorder %s6571_s11, %s6210_s17  ;;  %s6215_s12 = sshll.u32 %s6366_s19, 4  ;;  %s6216_s12 = int_to_ptr.vmem [resolvable:$false] %s6215_s12 }
  0x6d   : > { %s6217_s30 = scalar_lea.vmem %s6216_s12, 4096  ;;  %p6218_p3 = scmp.lt.s32.totalorder %s6571_s11, %s6216_s12 }
  0x6e   : > { %p6213_p4 = pnand %p6211_p1, %p6197_p0  ;;  %p6219_p7 = scmp.lt.s32.totalorder %s6217_s30, %s6210_s17 }
  0x70   : > { %p6214_p8 = pneg %p6213_p4  ;;  %p6220_p9 = por %p6219_p7, %p6218_p3 }
  0x72   : > { %p6221_p12 = pnand %p6220_p9, %p6214_p8 }
  0x74   : > { %6224 = shalt.err (!%p6221_p12)
}
  0x75   : > { %5969 = dma.hbm_to_vmem [thread:$0]  (!%p6567_p10), %s6565_s9, 2048, %s6571_s11, %s6573_s15, %s6364_s7, %s6364_s7, %s6365_s18  }
  0x76   : > { %p8224_p0 = scmp.ne.s32.totalorder %s8218_s29, 0 }
  0x78   : > { %271 = sbr.rel (%p8224_p0) target bundleno = 738 (0x2e2), region = 36 }
  0x7f   : > { %s6607_s26 = sand.u32 1, %s6351_s22   ;;  %p8225_p5 = scmp.ne.s32.totalorder %s8216_s27, 0 }
  0x80   : > { %s4566_s20 = sshll.u32 %s6607_s26, 7  ;;  %s274_s8 = scalar_lea.sflag [#allocation6], %s6607_s26 }
  0x81   : > { %s6613_s14 = scalar_lea.vmem [#allocation5], %s4566_s20 }
  0x82   : > { %6326 = dma.done.wait (%p8225_p5), %s274_s8, 2048  }
  0x83   : > { %6328 = vsyncadd (%p8225_p5), %s274_s8, 4294965248  ;;  %p8226_p10 = scmp.eq.s32.totalorder %s6430_s25, 0 }
  0x85   : > { %6330 = dma.done.wait (%p8226_p10), [#allocation9], 32   ;;  %p8227_p11 = pmov %p8226_p10 }
  0x86   : > { %p8228_p13 = pmov %p8226_p10 }
  0x87   : > { %6332 = vsyncadd (%p8227_p11), [#allocation9], 4294967264 }
  0x88   : > { %6334 = dma.done.wait (%p8228_p13), [#allocation12], 9216   ;;  %p8229_p2 = pmov %p8226_p10 }
  0x89   : > { %v8138_v0 = vmov 0   ;;  %v6029_v1 = vld [vmem:[#allocation11 + $0x40] sm:$0xff]   ;;  %v6031_v3 = vld [vmem:[#allocation11 + $0x48] sm:$0xff]   ;;  %v6033_v5 = vld [vmem:[#allocation11 + $0x50] sm:$0xff]   ;;  %v519_v7 = vlaneseq  ;;  %vm6368_vm0 = vmmov 1   ;;  %s7964_s27 = scalar_lea.vmem [#allocation13], %s4566_s20 }
  0x8a   : > { %6336 = vsyncadd (%p8229_p2), [#allocation12], 4294958080  ;;  %5248 = vmatprep.mubr.bf16.mxu1 %v8138_v0  ;;  %v6030_v2 = vld [vmem:[#allocation11 + $0x100] sm:$0xff]   ;;  %5232 = vmatprep.subr.bf16.mxu1 %v6029_v1  ;;  %v6032_v4 = vld [vmem:[#allocation11 + $0x108] sm:$0xff]   ;;  %vm8140_vm6 = vsmask.f32 7424 }
  0x8b   : > { %5424 = vmatprep.subr.bf16.mxu0 %v6030_v2  ;;  %5233 = vmatpush3.bf16.msra.mxu1 %v6029_v1  ;;  %v6034_v6 = vld [vmem:[#allocation11 + $0x110] sm:$0xff]   ;;  %v6035_v8 = vld [vmem:[#allocation11 + $0x58] sm:$0xff]   ;;  %v6628_v10 = vshrl.u32 %v519_v7, 7  ;;  %vm1180_vm1 = vmpackc.low %vm6368_vm0, %vm6368_vm0  ;;  %s4749_s29 = sshll.u32 %s6430_s25, 11  ;;  %s4375_s7 = sshll.u32 %s7964_s27, 4  ;;  %s7991_s7 = int_to_ptr.vmem [resolvable:$true] %s4375_s7 }
  0x8c   : > { %5425 = vmatpush3.bf16.msra.mxu0 %v6030_v2  ;;  %5234 = vmatprep.subr.bf16.mxu1 %v6031_v3  ;;  %v6036_v9 = vld [vmem:[#allocation11 + $0x118] sm:$0xff]   ;;  %v6037_v11 = vld [vmem:[#allocation11 + $0x60] sm:$0xff]   ;;  %v6631_v13 = vsel %vm1180_vm1, 65537, %v8138_v0  ;;  %v6039_v14 = vld [vmem:[#allocation11 + $0x68] sm:$0xff]   ;;  %s7989_s11 = scalar_lea.hbm %s8110_s4, %s4749_s29  ;;  %s4354_s15 = scalar_lea.sflag [#allocation7], %s6607_s26 }
  0x8d   : > { %5426 = vmatprep.subr.bf16.mxu0 %v6032_v4  ;;  %v6038_v12 = vld [vmem:[#allocation11 + $0x120] sm:$0xff]   ;;  %v6634_v15 = vadd.s32 8, %v6628_v10  ;;  %v6040_v16 = vld [vmem:[#allocation11 + $0x128] sm:$0xff]   ;;  %v6637_v18 = vld [vmem:[#allocation8] ss:$0 sm:$0xff]  ;;  %v6640_v19 = vadd.s32 24, %v6628_v10 }
  0x8e   : > { %v4751_v17 = vld [vmem:[%s6613_s14] sm:$0xff]   ;;  %v6643_v20 = vadd.s32 40, %v6628_v10  ;;  %v4894_v24 = vld [vmem:[%s6613_s14 + $0x8] sm:$0xff]   ;;  %v6649_v25 = vadd.s32 56, %v6628_v10  ;;  %v6041_v30 = vld [vmem:[#allocation11 + $0x70] sm:$0xff]   ;;  %v6655_v32 = vadd.s32 72, %v6628_v10 }
  0x8f   : > { %5235 = vmatpush3.bf16.msra.mxu1 %v6031_v3  ;;  %v4752_v21 = vunpack.c.l.bf16 %v4751_v17  ;;  %v4753_v22 = vunpack.c.h.bf16 %v4751_v17  ;;  %v6645_v23 = vld [vmem:[#allocation10] ss:$0 sm:$0xff]  ;;  %v4756_v28 = vunpack.c.l.bf16 %v4894_v24  ;;  %v4757_v29 = vunpack.c.h.bf16 %v4894_v24  ;;  %v4895_v31 = vld [vmem:[%s6613_s14 + $0x10] sm:$0xff]   ;;  %v4896_v39 = vld [vmem:[%s6613_s14 + $0x18] sm:$0xff]   ;;  %s6225_s17 = scalar_lea.vmem %s7991_s7, 2048  ;;  %s6369_s19 = smov [#allocation13]  }
  0x90   : > { %5427 = vmatpush3.bf16.msra.mxu0 %v6032_v4  ;;  %5236 = vmatprep.subr.bf16.mxu1 %v6033_v5  ;;  %v6658_v33 = vadd.s32 88, %v6628_v10  ;;  %v6042_v34 = vld [vmem:[#allocation11 + $0x130] sm:$0xff]   ;;  %v4760_v40 = vunpack.c.l.bf16 %v4895_v31  ;;  %v4761_v41 = vunpack.c.h.bf16 %v4895_v31  ;;  %v4764_v42 = vunpack.c.l.bf16 %v4896_v39  ;;  %v6043_v48 = vld [vmem:[#allocation11 + $0x78] sm:$0xff]   ;;  %v4898_v63 = vld [vmem:[%s6613_s14 + $0x28] sm:$0xff]   ;;  %p6226_p1 = scmp.ne.s32.totalorder %s7991_s7, %s6225_s17  ;;  %s6229_s12 = sshll.u32 %s6369_s19, 4  ;;  %s6230_s12 = int_to_ptr.vmem [resolvable:$false] %s6229_s12 }
  0x91   : > { %5428 = vmatprep.subr.bf16.mxu0 %v6034_v6  ;;  %v400_v26 = vmul.f32 %v4752_v21, %v6637_v18  ;;  %v401_v27 = vmul.f32 %v4753_v22, %v6637_v18  ;;  %v402_v37 = vmul.f32 %v4756_v28, %v6637_v18  ;;  %v403_v38 = vmul.f32 %v4757_v29, %v6637_v18  ;;  %v4897_v51 = vld [vmem:[%s6613_s14 + $0x20] sm:$0xff]   ;;  %v4899_v7 = vld [vmem:[%s6613_s14 + $0x30] sm:$0xff]   ;;  %v4900_v29 = vld [vmem:[%s6613_s14 + $0x38] sm:$0xff]   ;;  %s6231_s30 = scalar_lea.vmem %s6230_s12, 4096  ;;  %p6232_p3 = scmp.lt.s32.totalorder %s7991_s7, %s6230_s12 }
  0x92   : > { %v4765_v43 = vunpack.c.h.bf16 %v4896_v39  ;;  %v404_v49 = vmul.f32 %v4760_v40, %v6637_v18  ;;  %v405_v50 = vmul.f32 %v4761_v41, %v6637_v18  ;;  %v6671_v52 = vadd.s32 104, %v6628_v10  ;;  %v6044_v54 = vld [vmem:[#allocation11 + $0x138] sm:$0xff]   ;;  %p6227_p4 = pnand %p6226_p1, %p6556_p6  ;;  %p6233_p7 = scmp.lt.s32.totalorder %s6231_s30, %s6225_s17 }
  0x93   : > { %5237 = vmatpush3.bf16.msra.mxu1 %v6033_v5  ;;  %v439_v35 = vadd.f32 %v6645_v23, %v400_v26  ;;  %v440_v36 = vadd.f32 %v6645_v23, %v401_v27  ;;  %v441_v46 = vadd.f32 %v6645_v23, %v402_v37  ;;  %v442_v47 = vadd.f32 %v6645_v23, %v403_v38  ;;  %v6045_v5 = vld [vmem:[#allocation11] sm:$0xff]  }
  0x94   : > { %5429 = vmatpush3.bf16.msra.mxu0 %v6034_v6  ;;  %5238 = vmatprep.subr.bf16.mxu1 %v6035_v8  ;;  %v6674_v53 = vadd.s32 120, %v6628_v10  ;;  %v563_v56 = vand.u32 15, %v6634_v15  ;;  %v577_v57 = vand.u32 15, %v6640_v19  ;;  %v591_v58 = vand.u32 15, %v6643_v20  ;;  %p6228_p8 = pneg %p6227_p4  ;;  %p6234_p9 = por %p6233_p7, %p6232_p3 }
  0x95   : > { %5430 = vmatprep.subr.bf16.mxu0 %v6036_v9  ;;  %v471_v44 = vmax.f32 %v439_v35, 0.0  ;;  %v472_v45 = vmax.f32 %v440_v36, 0.0  ;;  %v443_v59 = vadd.f32 %v6645_v23, %v404_v49  ;;  %v444_v60 = vadd.f32 %v6645_v23, %v405_v50  ;;  %v6047_v36 = vld [vmem:[#allocation11 + $0x148] sm:$0xff]   ;;  %v6049_v49 = vld [vmem:[#allocation11 + $0x150] sm:$0xff]  }
  0x96   : > { %v406_v61 = vmul.f32 %v4764_v42, %v6637_v18  ;;  %v4768_v62 = vunpack.c.l.bf16 %v4897_v51  ;;  %v473_v1 = vmax.f32 %v441_v46, 0.0  ;;  %v474_v2 = vmax.f32 %v442_v47, 0.0  ;;  %v6048_v42 = vld [vmem:[#allocation11 + $0x8] sm:$0xff]   ;;  %p6235_p12 = pnand %p6234_p9, %p6228_p8 }
  0x97   : > { %5239 = vmatpush3.bf16.msra.mxu1 %v6035_v8  ;;  %v6676_v55 = vpack.c.bf16 %v472_v45, %v471_v44  ;;  %v407_v3 = vmul.f32 %v4765_v43, %v6637_v18  ;;  %v4769_v4 = vunpack.c.h.bf16 %v4897_v51  ;;  %v605_v8 = vand.u32 15, %v6649_v25 }
  0x98   : > { %5431 = vmatpush3.bf16.msra.mxu0 %v6036_v9  ;;  %5240 = vmatprep.subr.bf16.mxu1 %v6037_v11  ;;  %v408_v6 = vmul.f32 %v4768_v62, %v6637_v18  ;;  %v619_v9 = vand.u32 15, %v6655_v32  ;;  %v4773_v17 = vunpack.c.h.bf16 %v4898_v63  ;;  %v4776_v19 = vunpack.c.l.bf16 %v4899_v7 }
  0x99   : > { %5432 = vmatprep.subr.bf16.mxu0 %v6038_v12  ;;  %5440 = vmatprep.mubr.bf16.mxu0 %v6676_v55  ;;  %v409_v15 = vmul.f32 %v4769_v4, %v6637_v18  ;;  %vm6692_vm2 = vcmp.le.s32.totalorder %v563_v56, 14  ;;  %v633_v22 = vand.u32 15, %v6658_v33  ;;  %v6697_v24 = vpack.c.bf16 %v474_v2, %v473_v1 }
  0x9a   : > { %v445_v26 = vadd.f32 %v6645_v23, %v406_v61  ;;  %v446_v27 = vadd.f32 %v6645_v23, %v407_v3  ;;  %v4777_v28 = vunpack.c.h.bf16 %v4899_v7  ;;  %v6706_v35 = vadd.s32 136, %v6628_v10  ;;  %vm1487_vm4 = vmpackc.low %vm6692_vm2, %vm6692_vm2  ;;  %v4901_v61 = vld [vmem:[%s6613_s14 + $0x40] sm:$0xff]  }
  0x9b   : > { %5241 = vmatpush3.bf16.msra.mxu1 %v6037_v11  ;;  %v6046_v11 = vld [vmem:[#allocation11 + $0x140] sm:$0xff]   ;;  %8232 = vst [vmem:[#allocation22_spill] sm:$0xff] %v6697_v24  ;;  %v448_v31 = vadd.f32 %v6645_v23, %v409_v15  ;;  %vm6711_vm3 = vcmp.le.s32.totalorder %v577_v57, 14  ;;  %v661_v40 = vand.u32 15, %v6674_v53  ;;  %v6717_v41 = vadd.s32 152, %v6628_v10  ;;  %v6051_v57 = vld [vmem:[#allocation11 + $0x10] sm:$0xff]  }
  0x9c   : > { %5433 = vmatpush3.bf16.msra.mxu0 %v6038_v12  ;;  %5242 = vmatprep.subr.bf16.mxu1 %v6039_v14  ;;  %v475_v12 = vmax.f32 %v443_v59, 0.0  ;;  %v411_v43 = vmul.f32 %v4773_v17, %v6637_v18  ;;  %v412_v44 = vmul.f32 %v4776_v19, %v6637_v18  ;;  %v4780_v45 = vunpack.c.l.bf16 %v4900_v29  ;;  %v6050_v7 = vld [vmem:[#allocation11 + $0x158] sm:$0xff]   ;;  %vm1489_vm8 = vmpackc.low %vm6711_vm3, %vm6711_vm3 }
  0x9d   : > { %5434 = vmatprep.subr.bf16.mxu0 %v6040_v16  ;;  %v4781_v46 = vunpack.c.h.bf16 %v4900_v29  ;;  %v477_v47 = vmax.f32 %v445_v26, 0.0  ;;  %v413_v50 = vmul.f32 %v4777_v28, %v6637_v18  ;;  %v6725_v51 = vadd.s32 16, %v6628_v10  ;;  %v6054_v17 = vld [vmem:[#allocation11 + $0x18] sm:$0xff]  }
  0x9e   : > { %v480_v56 = vmax.f32 %v448_v31, 0.0  ;;  %v675_v59 = vand.u32 15, %v6706_v35  ;;  %vm6737_vm5 = vcmp.le.s32.totalorder %v591_v58, 14  ;;  %v450_v1 = vadd.f32 %v6645_v23, %v411_v43 }
  0x9f   : > { %5243 = vmatpush3.bf16.msra.mxu1 %v6039_v14  ;;  %v476_v14 = vmax.f32 %v444_v60, 0.0  ;;  %v451_v2 = vadd.f32 %v6645_v23, %v412_v44  ;;  %v414_v3 = vmul.f32 %v4780_v45, %v6637_v18  ;;  %v415_v4 = vmul.f32 %v4781_v46, %v6637_v18  ;;  %vm1491_vm10 = vmpackc.low %vm6737_vm5, %vm6737_vm5 }
  0xa0   : > { %5435 = vmatpush3.bf16.msra.mxu0 %v6040_v16  ;;  %5244 = vmatprep.subr.bf16.mxu1 %v6041_v30  ;;  %v4772_v16 = vunpack.c.l.bf16 %v4898_v63  ;;  %v556_v63 = vand.u32 15, %v6628_v10  ;;  %v452_v20 = vadd.f32 %v6645_v23, %v413_v50  ;;  %v689_v58 = vand.u32 15, %v6717_v41  ;;  %v4903_v50 = vld [vmem:[%s6613_s14 + $0x50] sm:$0xff]  }
  0xa1   : > { %5436 = vmatprep.subr.bf16.mxu0 %v6042_v34  ;;  %v6708_v37 = vpack.c.bf16 %v476_v14, %v475_v12  ;;  %v973_v12 = vshll.u32 %v6676_v55, 16  ;;  %v1519_v14 = vsel %vm1487_vm4, 65537, %v8138_v0  ;;  %v4784_v15 = vunpack.c.l.bf16 %v4901_v61 }
  0xa2   : > { %v410_v38 = vmul.f32 %v4772_v16, %v6637_v18  ;;  %v970_v19 = vshrl.u32 %v6676_v55, 16  ;;  %v4785_v26 = vunpack.c.h.bf16 %v4901_v61  ;;  %v482_v28 = vmax.f32 %v450_v1, 0.0 }
  0xa3   : > { %5245 = vmatpush3.bf16.msra.mxu1 %v6041_v30  ;;  %v447_v30 = vadd.f32 %v6645_v23, %v408_v6  ;;  %8233 = vst [vmem:[#allocation23_spill] sm:$0xff] %v6708_v37  ;;  %v570_v6 = vand.u32 15, %v6725_v51  ;;  %v483_v29 = vmax.f32 %v451_v2, 0.0  ;;  %v454_v31 = vadd.f32 %v6645_v23, %v415_v4 }
  0xa4   : > { %5437 = vmatpush3.bf16.msra.mxu0 %v6042_v34  ;;  %5246 = vmatprep.subr.bf16.mxu1 %v6043_v48  ;;  %v647_v34 = vand.u32 15, %v6671_v52  ;;  %v449_v60 = vadd.f32 %v6645_v23, %v410_v38  ;;  %vm6767_vm7 = vcmp.le.s32.totalorder %v605_v8, 14  ;;  %v8120_v38 = vshll.u32 %v6697_v24, 16 }
  0xa5   : > { %5438 = vmatprep.subr.bf16.mxu0 %v6044_v54  ;;  %v6775_v43 = vrot.slane %v970_v19, 7  ;;  %v977_v25 = vshrl.u32 %v6697_v24, 16  ;;  %v1356_v8 = vrot.slane %v973_v12, 1  ;;  %v416_v44 = vmul.f32 %v4784_v15, %v6637_v18  ;;  %vm1493_vm14 = vmpackc.low %vm6767_vm7, %vm6767_vm7 }
  0xa6   : > { %v481_v16 = vmax.f32 %v449_v60, 0.0  ;;  %v4589_v45 = vcombine.low %v6631_v13, %v1519_v14  ;;  %v417_v46 = vmul.f32 %v4785_v26, %v6637_v18  ;;  %v1358_v1 = vrot.slane %v8120_v38, 1  ;;  %v6059_v26 = vld [vmem:[#allocation11 + $0x28] sm:$0xff]  }
  0xa7   : > { %5247 = vmatpush3.bf16.msra.mxu1 %v6043_v48  ;;  %v478_v48 = vmax.f32 %v446_v27, 0.0  ;;  %v4902_v27 = vld [vmem:[%s6613_s14 + $0x48] sm:$0xff]   ;;  %vm6796_vm9 = vcmp.le.s32.totalorder %v619_v9, 14  ;;  %v1357_v4 = vor.u32 %v1356_v8, %v970_v19  ;;  %v1521_v14 = vsel %vm1489_vm8, 65537, %v8138_v0 }
  0xa8   : > { %5439 = vmatpush3.bf16.msra.mxu0 %v6044_v54  ;;  %5280 = vmatprep.subr.bf16.mxu1 %v6045_v5  ;;  %v479_v54 = vmax.f32 %v447_v30, 0.0  ;;  %v453_v30 = vadd.f32 %v6645_v23, %v414_v3  ;;  %v6787_v60 = vpack.c.bf16 %v482_v28, %v481_v16  ;;  %v6053_v3 = vld [vmem:[#allocation11 + $0x168] sm:$0xff]   ;;  %v4792_v32 = vunpack.c.l.bf16 %v4903_v50  ;;  %vm1495_vm1 = vmpackc.low %vm6796_vm9, %vm6796_vm9 }
  0xa9   : > { %5472 = vmatprep.subr.bf16.mxu0 %v6046_v11  ;;  %vm6812_vm11 = vcmp.le.s32.totalorder %v633_v22, 14  ;;  %vm6816_vm12 = vcmp.ne.s16.totalorder %v4589_v45, 0  ;;  %v456_v39 = vadd.f32 %v6645_v23, %v417_v46  ;;  %v4793_v19 = vunpack.c.h.bf16 %v4903_v50  ;;  %v4905_v50 = vld [vmem:[%s6613_s14 + $0x60] sm:$0xff]   ;;  %v6060_v9 = vld [vmem:[#allocation11 + $0x188] sm:$0xff]  }
  0xaa   : > { %5249 = vmatmul.mubr.bf16.vlgmr.msra.gmra.mrb[0].mxu1 %v6676_v55  ;;  %8241 = vst [vmem:[#allocation25_spill] sm:$0xff] %v6787_v60  ;;  %v8124_v33 = vshrl.u32 %v6708_v37, 16  ;;  %v1360_v28 = vor.u32 %v1358_v1, %v977_v25  ;;  %v420_v45 = vmul.f32 %v4792_v32, %v6637_v18  ;;  %vm6851_vm13 = vcmp.le.s32.totalorder %v647_v34, 14  ;;  %vm1497_vm2 = vmpackc.low %vm6812_vm11, %vm6812_vm11 }
  0xab   : > { %5441 = vmatmul.mubr.bf16.vlgmr.msra.gmra.mrb[0].mxu0 %v6697_v24  ;;  %5281 = vmatpush3.bf16.msra.mxu1 %v6045_v5  ;;  %v6746_v5 = vpack.c.bf16 %v478_v48, %v477_v47  ;;  %v6057_v47 = vld [vmem:[#allocation11 + $0x20] sm:$0xff]   ;;  %v4788_v48 = vunpack.c.l.bf16 %v4902_v27  ;;  %v488_v62 = vmax.f32 %v456_v39, 0.0  ;;  %vm6919_vm3 = vcmp.le.s32.totalorder %v661_v40, 14  ;;  %vm1499_vm5 = vmpackc.low %vm6851_vm13, %vm6851_vm13 }
  0xac   : > { %5473 = vmatpush3.bf16.msra.mxu0 %v6046_v11  ;;  %5252 = vmatprep.mubr.bf16.mxu1 %v6697_v24  ;;  %v6751_v11 = vpack.c.bf16 %v480_v56, %v479_v54  ;;  %v485_v54 = vmax.f32 %v453_v30, 0.0  ;;  %v486_v56 = vmax.f32 %v454_v31, 0.0  ;;  %v1523_v30 = vsel %vm1491_vm10, 65537, %v8138_v0  ;;  %v6055_v31 = vld [vmem:[#allocation11 + $0x170] sm:$0xff]   ;;  %vm1501_vm13 = vmpackc.low %vm6919_vm3, %vm6919_vm3 }
  0xad   : > { %5474 = vmatprep.subr.bf16.mxu0 %v6047_v36  ;;  %5444 = vmatprep.mubr.bf16.mxu0 %v6708_v37  ;;  %8238 = vst [vmem:[#allocation24_spill] sm:$0xff] %v6746_v5  ;;  %v418_v15 = vmul.f32 %v4788_v48, %v6637_v18  ;;  %v8117_v22 = vshll.u32 %v6746_v5, 16  ;;  %vm6934_vm4 = vcmp.le.s32.totalorder %v675_v59, 14  ;;  %vm8136_vm8 = vsmask.f32 256 }
  0xae   : > { %5282 = vmatprep.subr.bf16.mxu1 %v6048_v42  ;;  %vm1112_vm9 = vcmask 1040384   ;;  %vm6983_vm10 = vcmp.ge.s32.totalorder %v556_v63, 1  ;;  %v8267_v53 = vmov 0  ;;  %vm7067_vm3 = vcmp.le.s32.totalorder %v689_v58, 14  ;;  %v6066_v58 = vld [vmem:[#allocation11 + $0x1a0] sm:$0xff]  }
  0xaf   : > { %5283 = vmatpush3.bf16.msra.mxu1 %v6048_v42  ;;  %v6052_v42 = vld [vmem:[#allocation11 + $0x160] sm:$0xff]   ;;  %v1364_v34 = vrot.slane %v8117_v22, 1  ;;  %v7145_v41 = vrot.slane %v977_v25, 7  ;;  %v545_v55 = vadd.s32 200, %v6628_v10 }
  0xb0   : > { %5475 = vmatpush3.bf16.msra.mxu0 %v6047_v36  ;;  %5284 = vmatprep.subr.bf16.mxu1 %v6051_v57  ;;  %v484_v36 = vmax.f32 %v452_v20, 0.0  ;;  %v455_v20 = vadd.f32 %v6645_v23, %v416_v44  ;;  %v4590_v44 = vcombine.low %v6631_v13, %v1521_v14  ;;  %v8118_v14 = vshll.u32 %v6751_v11, 16 }
  0xb1   : > { %5476 = vmatprep.subr.bf16.mxu0 %v6049_v49  ;;  %v731_v51 = vand.u32 15, %v545_v55 }
  0xb2   : > { %5253 = vmatmul.mubr.bf16.gmra.mrb[4].mxu1 %v6708_v37  ;;  %v6789_v61 = vpack.c.bf16 %v484_v36, %v483_v29  ;;  %v6845_v36 = vsel %vm8140_vm6, %v1357_v4, %v1358_v1  ;;  %v487_v8 = vmax.f32 %v455_v20, 0.0  ;;  %v6056_v1 = vld [vmem:[#allocation11 + $0x178] sm:$0xff]   ;;  %v8122_v20 = vshrl.u32 %v6746_v5, 16 }
  0xb3   : > { %5445 = vmatmul.mubr.bf16.gmra.mrb[4].mxu0 %v6746_v5  ;;  %5256 = vmatprep.mubr.bf16.mxu1 %v6746_v5  ;;  %vm6874_vm15 = vcmp.ne.s16.totalorder %v4590_v44, 0 }
  0xb4   : > { %5477 = vmatpush3.bf16.msra.mxu0 %v6049_v49  ;;  %5448 = vmatprep.mubr.bf16.mxu0 %v6751_v11  ;;  %v4789_v49 = vunpack.c.h.bf16 %v4902_v27  ;;  %8242 = vst [vmem:[#allocation26_spill] sm:$0xff] %v6789_v61  ;;  %v6824_v27 = vld [vmem:[%s6613_s14 + $0x58] sm:$0xff]  }
  0xb5   : > { %5478 = vmatprep.subr.bf16.mxu0 %v6050_v7  ;;  %5285 = vmatpush3.bf16.msra.mxu1 %v6051_v57  ;;  %v8119_v57 = vshll.u32 %v6708_v37, 16  ;;  %v4797_v32 = vunpack.c.h.bf16 %v6824_v27 }
  0xb6   : > { %5286 = vmatprep.subr.bf16.mxu1 %v6054_v17  ;;  %v419_v16 = vmul.f32 %v4789_v49, %v6637_v18  ;;  %v421_v49 = vmul.f32 %v4793_v19, %v6637_v18  ;;  %v4800_v19 = vunpack.c.l.bf16 %v4905_v50 }
  0xb7   : > { %v1361_v29 = vrot.slane %v8119_v57, 1  ;;  %v8125_v57 = vshrl.u32 %v6787_v60, 16 }
  0xb8   : > { %5479 = vmatpush3.bf16.msra.mxu0 %v6050_v7  ;;  %v458_v48 = vadd.f32 %v6645_v23, %v419_v16  ;;  %v1525_v16 = vsel %vm1493_vm14, 65537, %v8138_v0  ;;  %v6891_v22 = vadd.f32 %v6645_v23, %v421_v49  ;;  %v423_v49 = vmul.f32 %v4797_v32, %v6637_v18  ;;  %vm1503_vm14 = vmpackc.low %vm6934_vm4, %vm6934_vm4 }
  0xb9   : > { %5480 = vmatprep.subr.bf16.mxu0 %v6052_v42  ;;  %5287 = vmatpush3.bf16.msra.mxu1 %v6054_v17  ;;  %v6831_v17 = vpack.c.bf16 %v486_v56, %v485_v54  ;;  %v1363_v52 = vor.u32 %v1361_v29, %v8124_v33  ;;  %v4796_v54 = vunpack.c.l.bf16 %v6824_v27  ;;  %v6061_v56 = vld [vmem:[#allocation11 + $0x30] sm:$0xff]   ;;  %v6869_v4 = vsel %vm8140_vm6, %v1360_v28, %v1361_v29  ;;  %v4906_v29 = vld [vmem:[%s6613_s14 + $0x68] sm:$0xff]   ;;  %vm7082_vm4 = vmand %vm1112_vm9, %vm8136_vm8 }
  0xba   : > { %5257 = vmatmul.mubr.bf16.gmra.mrb[8].mxu1 %v6751_v11  ;;  %5288 = vmatprep.subr.bf16.mxu1 %v6057_v47  ;;  %v4801_v28 = vunpack.c.h.bf16 %v4905_v50  ;;  %v490_v44 = vmax.f32 %v458_v48, 0.0  ;;  %v4592_v48 = vcombine.low %v6631_v13, %v1525_v16  ;;  %v4804_v32 = vunpack.c.l.bf16 %v4906_v29  ;;  %v6930_v16 = vld [vmem:[%s6613_s14 + $0x70] sm:$0xff]   ;;  %vm1505_vm9 = vmpackc.low %vm7067_vm3, %vm7067_vm3 }
  0xbb   : > { %5449 = vmatmul.mubr.bf16.gmra.mrb[8].mxu0 %v6787_v60  ;;  %5260 = vmatprep.mubr.bf16.mxu1 %v6787_v60  ;;  %v422_v50 = vmul.f32 %v4796_v54, %v6637_v18  ;;  %v492_v40 = vmax.f32 %v6891_v22, 0.0  ;;  %v462_v2 = vadd.f32 %v6645_v23, %v423_v49  ;;  %v4808_v49 = vunpack.c.l.bf16 %v6930_v16 }
  0xbc   : > { %5481 = vmatpush3.bf16.msra.mxu0 %v6052_v42  ;;  %5452 = vmatprep.mubr.bf16.mxu0 %v6789_v61  ;;  %v457_v42 = vadd.f32 %v6645_v23, %v418_v15  ;;  %v6879_v15 = vadd.f32 %v6645_v23, %v420_v45  ;;  %v6895_v45 = vsel %vm8140_vm6, %v1363_v52, %v1364_v34  ;;  %vm6968_vm7 = vcmp.ne.s16.totalorder %v4592_v48, 0 }
  0xbd   : > { %5482 = vmatprep.subr.bf16.mxu0 %v6053_v3  ;;  %5289 = vmatpush3.bf16.msra.mxu1 %v6057_v47  ;;  %v4591_v47 = vcombine.low %v6631_v13, %v1523_v30  ;;  %v6063_v30 = vld [vmem:[#allocation11 + $0x38] sm:$0xff]   ;;  %v425_v54 = vmul.f32 %v4801_v28, %v6637_v18  ;;  %v4805_v28 = vunpack.c.h.bf16 %v4906_v29  ;;  %v461_v59 = vadd.f32 %v6645_v23, %v422_v50 }
  0xbe   : > { %5290 = vmatprep.subr.bf16.mxu1 %v6059_v26  ;;  %v489_v27 = vmax.f32 %v457_v42, 0.0  ;;  %v1367_v42 = vrot.slane %v8118_v14, 1  ;;  %v6946_v14 = vld [vmem:[#allocation11 + $0x80] sm:$0xff]   ;;  %v1529_v29 = vsel %vm1497_vm2, 65537, %v8138_v0  ;;  %v8134_v48 = vshrl.u32 %v6789_v61, 16 }
  0xbf   : > { %vm6897_vm0 = vcmp.ne.s16.totalorder %v4591_v47, 0  ;;  %v424_v47 = vmul.f32 %v4800_v19, %v6637_v18  ;;  %v1527_v19 = vsel %vm1495_vm1, 65537, %v8138_v0  ;;  %v464_v50 = vadd.f32 %v6645_v23, %v425_v54 }
  0xc0   : > { %5483 = vmatpush3.bf16.msra.mxu0 %v6053_v3  ;;  %v6888_v3 = vpack.c.bf16 %v488_v62, %v487_v8  ;;  %v8121_v8 = vshll.u32 %v6787_v60, 16  ;;  %v1366_v62 = vor.u32 %v1364_v34, %v8122_v20  ;;  %v491_v34 = vmax.f32 %v6879_v15, 0.0 }
  0xc1   : > { %5484 = vmatprep.subr.bf16.mxu0 %v6055_v31  ;;  %5291 = vmatpush3.bf16.msra.mxu1 %v6059_v26  ;;  %v6058_v26 = vld [vmem:[#allocation11 + $0x180] sm:$0xff]   ;;  %v6948_v35 = vpack.c.bf16 %v490_v44, %v489_v27  ;;  %v8259_v27 = vmov 0  ;;  %v463_v44 = vadd.f32 %v6645_v23, %v424_v47  ;;  %v8132_v20 = vshll.u32 %v6831_v17, 16 }
  0xc2   : > { %5261 = vmatmul.mubr.bf16.gmra.mrb[12].mxu1 %v6789_v61  ;;  %5292 = vmatprep.subr.bf16.mxu1 %v6061_v56  ;;  %v1370_v22 = vrot.slane %v8121_v8, 1  ;;  %v6955_v38 = vsel %vm8140_vm6, %v1366_v62, %v1367_v42  ;;  %v8260_v27 = vsel %vm6968_vm7, 4294967295, %v8259_v27  ;;  %v426_v62 = vmul.f32 %v4804_v32, %v6637_v18 }
  0xc3   : > { %5453 = vmatmul.mubr.bf16.gmra.mrb[12].mxu0 %v6831_v17  ;;  %5264 = vmatprep.mubr.bf16.mxu1 %v6831_v17  ;;  %v493_v54 = vmax.f32 %v461_v59, 0.0  ;;  %v4593_v32 = vcombine.low %v6631_v13, %v1527_v19  ;;  %v494_v63 = vmax.f32 %v462_v2, 0.0  ;;  %v4594_v46 = vcombine.low %v6631_v13, %v1529_v29  ;;  %v6062_v2 = vld [vmem:[#allocation11 + $0x190] sm:$0xff]  }
  0xc4   : > { %5485 = vmatpush3.bf16.msra.mxu0 %v6055_v31  ;;  %5488 = vmatprep.mubr.msk.bf16.mxu0 %vm6816_vm12, %v6845_v36  ;;  %v8123_v31 = vshrl.u32 %v6751_v11, 16  ;;  %v1372_v19 = vor.u32 %v1370_v22, %v8125_v57  ;;  %v496_v59 = vmax.f32 %v464_v50, 0.0  ;;  %v428_v33 = vmul.f32 %v4808_v49, %v6637_v18 }
  0xc5   : > { %5486 = vmatprep.subr.bf16.mxu0 %v6056_v1  ;;  %5293 = vmatpush3.bf16.msra.mxu1 %v6061_v56  ;;  %v8126_v56 = vshll.u32 %v6789_v61, 16  ;;  %vm7024_vm11 = vcmp.ne.s16.totalorder %v4593_v32, 0  ;;  %v8133_v15 = vshrl.u32 %v6831_v17, 16  ;;  %vm7044_vm1 = vcmp.ne.s16.totalorder %v4594_v46, 0  ;;  %v6064_v32 = vld [vmem:[#allocation11 + $0x198] sm:$0xff]  }
  0xc6   : > { %5294 = vmatprep.subr.bf16.mxu1 %v6063_v30  ;;  %v1369_v8 = vor.u32 %v1367_v42, %v8123_v31  ;;  %v1531_v42 = vsel %vm1499_vm5, 65537, %v8138_v0  ;;  %v465_v31 = vadd.f32 %v6645_v23, %v426_v62  ;;  %v8263_v62 = vmov 0  ;;  %vm1179_vm5 = vmpackc.low %vm6983_vm10, %vm6983_vm10 }
  0xc7   : > { %v4595_v29 = vcombine.low %v6631_v13, %v1531_v42  ;;  %v8264_v62 = vsel %vm7024_vm11, 4294967295, %v8263_v62  ;;  %vm8309_vm8 = vsmask.f32 256 }
  0xc8   : > { %5487 = vmatpush3.bf16.msra.mxu0 %v6056_v1  ;;  %v427_v1 = vmul.f32 %v4805_v28, %v6637_v18  ;;  %v1373_v28 = vrot.slane %v8126_v56, 1  ;;  %v7022_v50 = vsel %vm8140_vm6, %v1369_v8, %v1370_v22  ;;  %v8128_v8 = vshll.u32 %v6888_v3, 16 }
  0xc9   : > { %5520 = vmatprep.subr.bf16.mxu0 %v6058_v26  ;;  %5295 = vmatpush3.bf16.msra.mxu1 %v6063_v30  ;;  %v4809_v30 = vunpack.c.h.bf16 %v6930_v16  ;;  %v495_v16 = vmax.f32 %v463_v44, 0.0  ;;  %v7019_v44 = vpack.c.bf16 %v492_v40, %v491_v34  ;;  %v497_v52 = vmax.f32 %v465_v31, 0.0 }
  0xca   : > { %5265 = vmatmul.mubr.bf16.gmra.mrb[16].mxu1 %v6888_v3  ;;  %5328 = vmatprep.subr.bf16.mxu1 %v6946_v14  ;;  %v466_v57 = vadd.f32 %v6645_v23, %v427_v1  ;;  %v1375_v56 = vor.u32 %v1373_v28, %v8134_v48  ;;  %v7032_v1 = vpack.c.bf16 %v494_v63, %v493_v54  ;;  %vm7054_vm2 = vcmp.ne.s16.totalorder %v4595_v29, 0 }
  0xcb   : > { %5489 = vmatmul.mubr.msk.bf16.vlgmr.msra.gmra.mrb[0].mxu0 %vm6874_vm15, %v6869_v4  ;;  %5268 = vmatprep.mubr.bf16.mxu1 %v6948_v35  ;;  %v429_v49 = vmul.f32 %v4809_v30, %v6637_v18  ;;  %v7035_v42 = vsel %vm8140_vm6, %v1372_v19, %v1373_v28  ;;  %v7042_v34 = vpack.c.bf16 %v496_v59, %v495_v16  ;;  %v8265_v18 = vmov 0 }
  0xcc   : > { %5521 = vmatpush3.bf16.msra.mxu0 %v6058_v26  ;;  %5492 = vmatprep.mubr.msk.bf16.mxu0 %vm6897_vm0, %v6895_v45  ;;  %v1376_v26 = vrot.slane %v8132_v20, 1  ;;  %v8266_v18 = vsel %vm7044_vm1, 4294967295, %v8265_v18  ;;  %v7049_v40 = vadd.f32 %v6645_v23, %v428_v33  ;;  %v498_v22 = vmax.f32 %v466_v57, 0.0 }
  0xcd   : > { %5522 = vmatprep.subr.bf16.mxu0 %v6060_v9  ;;  %v8268_v53 = vsel %vm7054_vm2, 4294967295, %v8267_v53  ;;  %v7061_v30 = vadd.f32 %v6645_v23, %v429_v49  ;;  %v8127_v33 = vshll.u32 %v6948_v35, 16  ;;  %v1535_v31 = vsel %vm1503_vm14, 65537, %v8138_v0 }
  0xce   : > { %v7052_v54 = vsel %vm8140_vm6, %v1375_v56, %v1376_v26  ;;  %8269 = vst [vmem:[#allocation27_spill] sm:$0xff] %v8268_v53  ;;  %v1378_v23 = vor.u32 %v1376_v26, %v8133_v15  ;;  %v1379_v56 = vrot.slane %v8128_v8, 1  ;;  %v8131_v63 = vshrl.u32 %v6888_v3, 16 }
  0xcf   : > { %v541_v19 = vadd.s32 168, %v6628_v10  ;;  %v499_v28 = vmax.f32 %v7049_v40, 0.0  ;;  %v975_v16 = vor.u32 %v973_v12, %v6775_v43  ;;  %v8129_v59 = vshll.u32 %v7019_v44, 16 }
  0xd0   : > { %5523 = vmatpush3.bf16.msra.mxu0 %v6060_v9  ;;  %v1533_v9 = vsel %vm1501_vm13, 65537, %v8138_v0  ;;  %v7099_v26 = vpack.c.bf16 %v498_v22, %v497_v52  ;;  %v4597_v29 = vcombine.low %v6631_v13, %v1535_v31  ;;  %vm7107_vm13 = vcmp.ge.s32.totalorder %v570_v6, 1 }
  0xd1   : > { %5524 = vmatprep.subr.bf16.mxu0 %v6062_v2  ;;  %v4596_v46 = vcombine.low %v6631_v13, %v1533_v9  ;;  %v703_v12 = vand.u32 15, %v541_v19  ;;  %v500_v47 = vmax.f32 %v7061_v30, 0.0  ;;  %v8130_v49 = vshrl.u32 %v6948_v35, 16  ;;  %vm1181_vm3 = vmpackc.low %vm7107_vm13, %vm7107_vm13 }
  0xd2   : > { %5269 = vmatmul.mubr.bf16.gmra.mrb[20].mxu1 %v7019_v44  ;;  %v524_v52 = vadd.s32 32, %v6628_v10  ;;  %v1211_v40 = vsel %vm1179_vm5, 65537, %v8138_v0  ;;  %v8135_v22 = vshll.u32 %v7032_v1, 16  ;;  %v543_v6 = vadd.s32 184, %v6628_v10 }
  0xd3   : > { %5493 = vmatmul.mubr.msk.bf16.gmra.mrb[4].mxu0 %vm6968_vm7, %v6955_v38  ;;  %5272 = vmatprep.mubr.bf16.mxu1 %v7032_v1  ;;  %vm7118_vm10 = vcmp.le.s32.totalorder %v703_v12, 14  ;;  %vm7123_vm14 = vcmp.ne.s16.totalorder %v4596_v46, 0  ;;  %v8278_v9 = vmov 0  ;;  %v1381_v30 = vor.u32 %v1379_v56, %v8131_v63  ;;  %v6068_v12 = vld [vmem:[#allocation11 + $0x1a8] sm:$0xff]  }
  0xd4   : > { %5496 = vmatprep.mubr.msk.bf16.mxu0 %vm7024_vm11, %v7022_v50  ;;  %5525 = vmatpush3.bf16.msra.mxu0 %v6062_v2  ;;  %v1382_v2 = vrot.slane %v8127_v33, 1  ;;  %v8279_v9 = vsel %vm7123_vm14, 4294967295, %v8278_v9  ;;  %v7131_v31 = vsel %vm7082_vm4, 0, %v975_v16  ;;  %v1537_v57 = vsel %vm1505_vm9, 65537, %v8138_v0  ;;  %vm1507_vm4 = vmpackc.low %vm7118_vm10, %vm7118_vm10 }
  0xd5   : > { %5526 = vmatprep.subr.bf16.mxu0 %v6064_v32  ;;  %8280 = vst [vmem:[#allocation28_spill] sm:$0xff] %v8279_v9  ;;  %8281 = vst [vmem:[#allocation29_spill] sm:$0xff] %v7131_v31  ;;  %v584_v19 = vand.u32 15, %v524_v52  ;;  %vm7137_vm5 = vcmp.ne.s16.totalorder %v4597_v29, 0  ;;  %v8282_v46 = vmov 0  ;;  %v717_v16 = vand.u32 15, %v543_v6 }
  0xd6   : > { %v8283_v46 = vsel %vm7137_vm5, 4294967295, %v8282_v46  ;;  %v526_v33 = vadd.s32 48, %v6628_v10  ;;  %v4573_v52 = vcombine.low %v1211_v40, %v6631_v13  ;;  %v1384_v29 = vor.u32 %v1382_v2, %v8130_v49  ;;  %v6070_v49 = vld [vmem:[#allocation11 + $0x1b0] sm:$0xff]  }
  0xd7   : > { %8284 = vst [vmem:[#allocation30_spill] sm:$0xff] %v8283_v46  ;;  %v8137_v8 = vshrl.u32 %v7019_v44, 16  ;;  %vm7156_vm9 = vcmp.ge.s32.totalorder %v584_v19, 1  ;;  %v4598_v25 = vcombine.low %v6631_v13, %v1537_v57  ;;  %v1213_v40 = vsel %vm1181_vm3, 65537, %v8138_v0 }
  0xd8   : > { %5527 = vmatpush3.bf16.msra.mxu0 %v6064_v32  ;;  %v1385_v32 = vrot.slane %v8129_v59, 1  ;;  %v1388_v6 = vrot.slane %v8135_v22, 1  ;;  %v598_v19 = vand.u32 15, %v526_v33  ;;  %v8287_v63 = vshrl.u32 %v6708_v37, 16  ;;  %vm1183_vm13 = vmpackc.low %vm7156_vm9, %vm7156_vm9 }
  0xd9   : > { %5528 = vmatprep.subr.bf16.mxu0 %v6066_v58  ;;  %v7182_v48 = vsel %vm8140_vm6, %v1378_v23, %v1379_v56  ;;  %v1539_v33 = vsel %vm1507_vm4, 65537, %v8138_v0  ;;  %vm7193_vm3 = vcmp.le.s32.totalorder %v717_v16, 14  ;;  %v7200_v23 = vsel %vm8140_vm6, %v1381_v30, %v1382_v2 }
  0xda   : > { %5273 = vmatmul.mubr.bf16.gmra.mrb[24].mxu1 %v7042_v34  ;;  %v987_v57 = vrot.slane %v8287_v63, 7  ;;  %8288 = vst [vmem:[#allocation31_spill] sm:$0xff] %v7182_v48  ;;  %8291 = vst [vmem:[#allocation32_spill] sm:$0xff] %v7200_v23  ;;  %v8292_v56 = vshrl.u32 %v6746_v5, 16  ;;  %vm7206_vm10 = vcmp.ne.s16.totalorder %v4573_v52, 0  ;;  %v8293_v15 = vmov 0 }
  0xdb   : > { %5497 = vmatmul.mubr.msk.bf16.gmra.mrb[8].mxu0 %vm7044_vm1, %v7035_v42  ;;  %5276 = vmatprep.mubr.bf16.mxu1 %v7099_v26  ;;  %v8294_v15 = vsel %vm7206_vm10, 4294967295, %v8293_v15  ;;  %v8296_v59 = vshll.u32 %v6697_v24, 16  ;;  %v4574_v20 = vcombine.low %v1213_v40, %v6631_v13  ;;  %vm7214_vm4 = vcmp.ge.s32.totalorder %v598_v19, 1 }
  0xdc   : > { %5500 = vmatprep.mubr.msk.bf16.mxu0 %vm7054_vm2, %v7052_v54  ;;  %5529 = vmatpush3.bf16.msra.mxu0 %v6066_v58  ;;  %v7197_v58 = vpack.c.bf16 %v500_v47, %v499_v28  ;;  %v7204_v22 = vrot.slane %v8292_v56, 7  ;;  %8295 = vst [vmem:[#allocation33_spill] sm:$0xff] %v8294_v15  ;;  %v7219_v47 = vsel %vm8140_vm6, %v1384_v29, %v1385_v32  ;;  %vm7221_vm9 = vcmp.ne.s16.totalorder %v4598_v25, 0 }
  0xdd   : > { %5530 = vmatprep.subr.bf16.mxu0 %v6068_v12  ;;  %v982_v16 = vor.u32 %v8296_v59, %v7145_v41  ;;  %v8299_v2 = vmov 0  ;;  %v1387_v30 = vor.u32 %v1385_v32, %v8137_v8  ;;  %v1215_v52 = vsel %vm1183_vm13, 65537, %v8138_v0  ;;  %v6072_v59 = vld [vmem:[#allocation11 + $0x1b8] sm:$0xff]   ;;  %vm8314_vm13 = vmpackc.low %vm7193_vm3, %vm7193_vm3 }
  0xde   : > { %v8300_v2 = vsel %vm7221_vm9, 4294967295, %v8299_v2  ;;  %v4599_v40 = vcombine.low %v6631_v13, %v1539_v33  ;;  %v8302_v19 = vshll.u32 %v6708_v37, 16  ;;  %v8303_v25 = vshrl.u32 %v7032_v1, 16  ;;  %v4908_v37 = vld [vmem:[%s6613_s14 + $0x78] sm:$0xff]  }
  0xdf   : > { %8301 = vst [vmem:[#allocation34_spill] sm:$0xff] %v8300_v2  ;;  %v528_v56 = vadd.s32 64, %v6628_v10  ;;  %v8304_v32 = vshll.u32 %v7042_v34, 16  ;;  %vm7246_vm6 = vcmp.le.s32.totalorder %v731_v51, 14  ;;  %vm7259_vm2 = vcmp.ne.s16.totalorder %v4574_v20, 0 }
  0xe0   : > { %5531 = vmatpush3.bf16.msra.mxu0 %v6068_v12  ;;  %v990_v29 = vor.u32 %v8302_v19, %v987_v57  ;;  %v1390_v55 = vor.u32 %v1388_v6, %v8303_v25  ;;  %v8305_v12 = vshll.u32 %v6746_v5, 16  ;;  %v547_v19 = vadd.s32 216, %v6628_v10 }
  0xe1   : > { %5532 = vmatprep.subr.bf16.mxu0 %v6070_v49  ;;  %v1391_v8 = vrot.slane %v8304_v32, 1  ;;  %v8308_v25 = vmov 0   ;;  %v7257_v32 = vsel %vm8309_vm8, %v6775_v43, %v982_v16  ;;  %v4575_v51 = vcombine.low %v1215_v52, %v6631_v13 }
  0xe2   : > { %5277 = vmatmul.mubr.bf16.gmra.mrb[28].mxu1 %v7197_v58  ;;  %v998_v0 = vor.u32 %v8305_v12, %v7204_v22  ;;  %8310 = vst [vmem:[#allocation35_spill] sm:$0xff] %v7257_v32  ;;  %v8311_v12 = vmov 0  ;;  %v1541_v5 = vsel %vm8314_vm13, 65537, %v8308_v25  ;;  %v530_v52 = vadd.s32 80, %v6628_v10  ;;  %vm1511_vm13 = vmpackc.low %vm7246_vm6, %vm7246_vm6 }
  0xe3   : > { %5501 = vmatmul.mubr.msk.bf16.gmra.mrb[12].mxu0 %vm7123_vm14, %v7182_v48  ;;  %5296 = vmatprep.mubr.bf16.mxu1 %v8308_v25  ;;  %v8312_v12 = vsel %vm7259_vm2, 4294967295, %v8311_v12  ;;  %vm8315_vm14 = vsmask.f32 7424  ;;  %vm7280_vm8 = vcmp.ne.s16.totalorder %v4599_v40, 0  ;;  %v8317_v24 = vmov 0 }
  0xe4   : > { %8313 = vst [vmem:[#allocation36_spill] sm:$0xff] %v8312_v12  ;;  %5504 = vmatprep.mubr.msk.bf16.mxu0 %vm7137_vm5, %v7200_v23  ;;  %v7274_v43 = vsel %vm8315_vm14, %v1387_v30, %v1388_v6  ;;  %5533 = vmatpush3.bf16.msra.mxu0 %v6070_v49  ;;  %v8318_v24 = vsel %vm7280_vm8, 4294967295, %v8317_v24  ;;  %vm8320_vm3 = vsmask.f32 256  ;;  %vm8321_vm14 = vmpackc.low %vm7214_vm4, %vm7214_vm4  ;;  %v612_v49 = vand.u32 15, %v528_v56  ;;  %v7297_v30 = vld [vmem:[#allocation11 + $0x1c0] sm:$0xff]  }
  0xe5   : > { %8316 = vst [vmem:[#allocation37_spill] sm:$0xff] %v7274_v43  ;;  %8319 = vst [vmem:[#allocation38_spill] sm:$0xff] %v8318_v24  ;;  %v7286_v63 = vsel %vm8320_vm3, %v7145_v41, %v990_v29  ;;  %v1217_v6 = vsel %vm8321_vm14, 65537, %v8308_v25  ;;  %5534 = vmatprep.subr.bf16.mxu0 %v6072_v59  ;;  %vm8322_vm5 = vsmask.f32 7424  ;;  %v4600_v41 = vcombine.low %v6631_v13, %v1541_v5 }
  0xe6   : > { %v7300_v40 = vsel %vm8322_vm5, %v1390_v55, %v1391_v8  ;;  %v7304_v29 = vsel %vm8320_vm3, %v987_v57, %v998_v0  ;;  %v745_v16 = vand.u32 15, %v547_v19  ;;  %vm7306_vm1 = vcmp.ne.s16.totalorder %v4575_v51, 0  ;;  %v6067_v57 = vld [vmem:[#allocation11 + $0x88] sm:$0xff]   ;;  %v6101_v19 = vld [vmem:[#allocation8] ss:$0 sm:$0xff] }
  0xe7   : > { %v8323_v28 = vmov 0  ;;  %v626_v20 = vand.u32 15, %v530_v52  ;;  %v4812_v46 = vunpack.c.l.bf16 %v4908_v37  ;;  %v4813_v23 = vunpack.c.h.bf16 %v4908_v37 }
  0xe8   : > { %v8324_v28 = vsel %vm7306_vm1, 4294967295, %v8323_v28  ;;  %v549_v56 = vadd.s32 232, %v6628_v10  ;;  %v4576_v9 = vcombine.low %v1217_v6, %v6631_v13  ;;  %v8326_v55 = vshrl.u32 %v7042_v34, 16  ;;  %5535 = vmatpush3.bf16.msra.mxu0 %v6072_v59 }
  0xe9   : > { %8325 = vst [vmem:[#allocation39_spill] sm:$0xff] %v8324_v28  ;;  %v8327_v5 = vshll.u32 %v7099_v26, 16  ;;  %v1543_v0 = vsel %vm1511_vm13, 65537, %v8308_v25  ;;  %vm7322_vm5 = vcmp.ge.s32.totalorder %v612_v49, 1  ;;  %v430_v51 = vmul.f32 %v6101_v19, %v4812_v46  ;;  %5568 = vmatprep.subr.bf16.mxu0 %v7297_v30 }
  0xea   : > { %v1393_v48 = vor.u32 %v1391_v8, %v8326_v55  ;;  %v431_v52 = vmul.f32 %v6101_v19, %v4813_v23  ;;  %v759_v8 = vand.u32 15, %v549_v56  ;;  %5297 = vmatmul.mubr.msk.bf16.vlgmr.msra.gmra.mrb[0].mxu1 %vm7206_vm10, %v7131_v31  ;;  %v8330_v33 = vshrl.u32 %v6751_v11, 16 }
  0xeb   : > { %v1394_v53 = vrot.slane %v8327_v5, 1  ;;  %vm7335_vm6 = vcmp.le.s32.totalorder %v745_v16, 14  ;;  %v532_v46 = vadd.s32 96, %v6628_v10  ;;  %5505 = vmatmul.mubr.msk.bf16.gmra.mrb[16].mxu0 %vm7221_vm9, %v7219_v47  ;;  %5329 = vmatpush3.bf16.msra.mxu1 %v6946_v14  ;;  %vm7344_vm4 = vcmp.ne.s16.totalorder %v4600_v41, 0  ;;  %v6102_v16 = vld [vmem:[#allocation10] ss:$0 sm:$0xff] }
  0xec   : > { %v7332_v6 = vrot.slane %v8330_v33, 7  ;;  %v8333_v23 = vmov 0  ;;  %vm7348_vm14 = vcmp.ge.s32.totalorder %v626_v20, 1  ;;  %v469_v55 = vadd.f32 %v6102_v16, %v430_v51  ;;  %5300 = vmatprep.mubr.msk.bf16.mxu1 %vm7259_vm2, %v7257_v32  ;;  %5508 = vmatprep.mubr.msk.bf16.mxu0 %vm7280_vm8, %v7274_v43  ;;  %v6069_v20 = vld [vmem:[#allocation11 + $0x90] sm:$0xff]   ;;  %v8498_v39 = vld [vmem:[#allocation38_spill] sm:$0xff] }
  0xed   : > { %v8334_v23 = vsel %vm7344_vm4, 4294967295, %v8333_v23  ;;  %v470_v5 = vadd.f32 %v6102_v16, %v431_v52  ;;  %v4601_v14 = vcombine.low %v6631_v13, %v1543_v0  ;;  %vm7363_vm3 = vcmp.le.s32.totalorder %v759_v8, 14  ;;  %5330 = vmatprep.subr.bf16.mxu1 %v6067_v57  ;;  %vm1189_vm9 = vmpackc.low %vm7348_vm14, %vm7348_vm14 }
  0xee   : > { %8335 = vst [vmem:[#allocation40_spill] sm:$0xff] %v8334_v23  ;;  %v551_v51 = vadd.s32 248, %v6628_v10  ;;  %vm7368_vm10 = vcmp.ne.s16.totalorder %v4576_v9, 0  ;;  %v8340_v52 = vmov 0  ;;  %v501_v0 = vmax.f32 %v469_v55, 0.0  ;;  %vm1515_vm8 = vmpackc.low %vm7363_vm3, %vm7363_vm3 }
  0xef   : > { %v8341_v52 = vsel %vm7368_vm10, 4294967295, %v8340_v52  ;;  %v502_v33 = vmax.f32 %v470_v5, 0.0  ;;  %v640_v16 = vand.u32 15, %v532_v46  ;;  %vm8343_vm13 = vsmask.f32 7424  ;;  %5331 = vmatpush3.bf16.msra.mxu1 %v6067_v57 }
  0xf0   : > { %8342 = vst [vmem:[#allocation41_spill] sm:$0xff] %v8341_v52  ;;  %v7376_v41 = vsel %vm8343_vm13, %v1393_v48, %v1394_v53  ;;  %v8345_v8 = vshll.u32 %v6751_v11, 16  ;;  %v8346_v15 = vshrl.u32 %v7099_v26, 16  ;;  %v773_v31 = vand.u32 15, %v551_v51  ;;  %vm8347_vm13 = vmpackc.low %vm7322_vm5, %vm7322_vm5  ;;  %5332 = vmatprep.subr.bf16.mxu1 %v6069_v20 }
  0xf1   : > { %8344 = vst [vmem:[#allocation42_spill] sm:$0xff] %v7376_v41  ;;  %v1219_v48 = vsel %vm8347_vm13, 65537, %v8308_v25  ;;  %v8348_v46 = vshrl.u32 %v6787_v60, 16  ;;  %v7396_v5 = vpack.c.bf16 %v502_v33, %v501_v0  ;;  %vm7402_vm14 = vcmp.ne.s16.totalorder %v4601_v14, 0  ;;  %vm8353_vm5 = vmpackc.low %vm7335_vm6, %vm7335_vm6  ;;  %v6071_v33 = vld [vmem:[#allocation11 + $0x98] sm:$0xff]  }
  0xf2   : > { %v1006_v59 = vor.u32 %v8345_v8, %v7332_v6  ;;  %v1396_v9 = vor.u32 %v1394_v53, %v8346_v15  ;;  %v534_v15 = vadd.s32 112, %v6628_v10  ;;  %v8349_v53 = vmov 0  ;;  %5301 = vmatmul.mubr.msk.bf16.gmra.mrb[4].mxu1 %vm7306_vm1, %v7286_v63 }
  0xf3   : > { %v7394_v55 = vrot.slane %v8348_v46, 7  ;;  %v8350_v53 = vsel %vm7402_vm14, 4294967295, %v8349_v53  ;;  %v8352_v57 = vshll.u32 %v7197_v58, 16  ;;  %v1545_v56 = vsel %vm8353_vm5, 65537, %v8308_v25  ;;  %5509 = vmatmul.mubr.msk.bf16.gmra.mrb[20].mxu0 %vm7344_vm4, %v7300_v40  ;;  %5304 = vmatprep.mubr.msk.bf16.mxu1 %vm7368_vm10, %v7304_v29 }
  0xf4   : > { %8351 = vst [vmem:[#allocation43_spill] sm:$0xff] %v8350_v53  ;;  %v1221_v51 = vsel %vm1189_vm9, 65537, %v8308_v25  ;;  %vm7417_vm3 = vcmp.ge.s32.totalorder %v640_v16, 1  ;;  %v654_v8 = vand.u32 15, %v534_v15  ;;  %v4577_v49 = vcombine.low %v1219_v48, %v6631_v13  ;;  %5512 = vmatprep.mubr.msk.bf16.mxu0 %vm7402_vm14, %v7376_v41  ;;  %5333 = vmatpush3.bf16.msra.mxu1 %v6069_v20  ;;  %v6073_v20 = vld [vmem:[#allocation11 + $0xa0] sm:$0xff]  }
  0xf5   : > { %v1397_v37 = vrot.slane %v8352_v57, 1  ;;  %v1547_v46 = vsel %vm1515_vm8, 65537, %v8308_v25  ;;  %vm7426_vm6 = vcmp.le.s32.totalorder %v773_v31, 14  ;;  %v536_v14 = vadd.s32 128, %v6628_v10  ;;  %vm1191_vm8 = vmpackc.low %vm7417_vm3, %vm7417_vm3  ;;  %5334 = vmatprep.subr.bf16.mxu1 %v6071_v33 }
  0xf6   : > { %v8358_v16 = vshll.u32 %v6787_v60, 16  ;;  %vm8359_vm9 = vsmask.f32 256  ;;  %v4602_v15 = vcombine.low %v6631_v13, %v1545_v56  ;;  %v4578_v19 = vcombine.low %v1221_v51, %v6631_v13  ;;  %vm1517_vm5 = vmpackc.low %vm7426_vm6, %vm7426_vm6 }
  0xf7   : > { %v7445_v31 = vsel %vm8359_vm9, %v7204_v22, %v1006_v59  ;;  %vm7452_vm13 = vcmp.ge.s32.totalorder %v654_v8, 1  ;;  %v8363_v41 = vshll.u32 %v7396_v5, 16  ;;  %v4603_v59 = vcombine.low %v6631_v13, %v1547_v46 }
  0xf8   : > { %v1014_v48 = vor.u32 %v8358_v16, %v7394_v55  ;;  %v8362_v16 = vshrl.u32 %v7197_v58, 16  ;;  %v538_v56 = vadd.s32 144, %v6628_v10  ;;  %vm7465_vm3 = vcmp.ne.s16.totalorder %v4577_v49, 0  ;;  %vm1193_vm14 = vmpackc.low %vm7452_vm13, %vm7452_vm13  ;;  %5335 = vmatpush3.bf16.msra.mxu1 %v6071_v33 }
  0xf9   : > { %v1400_v22 = vrot.slane %v8363_v41, 1  ;;  %v8364_v51 = vmov 0  ;;  %vm8367_vm9 = vsmask.f32 7424  ;;  %v8369_v8 = vshrl.u32 %v6789_v61, 16  ;;  %5336 = vmatprep.subr.bf16.mxu1 %v6073_v20 }
  0xfa   : > { %v1399_v53 = vor.u32 %v1397_v37, %v8362_v16  ;;  %v8365_v51 = vsel %vm7465_vm3, 4294967295, %v8364_v51  ;;  %v7470_v0 = vsel %vm8367_vm9, %v1396_v9, %v1397_v37  ;;  %v668_v46 = vand.u32 15, %v536_v14  ;;  %5305 = vmatmul.mubr.msk.bf16.gmra.mrb[8].mxu1 %vm7465_vm3, %v7445_v31 }
  0xfb   : > { %8366 = vst [vmem:[#allocation44_spill] sm:$0xff] %v8365_v51  ;;  %8368 = vst [vmem:[#allocation45_spill] sm:$0xff] %v7470_v0  ;;  %v1019_v41 = vrot.slane %v8369_v8, 7  ;;  %vm8370_vm6 = vsmask.f32 256  ;;  %v1223_v49 = vsel %vm1191_vm8, 65537, %v8308_v25 }
  0xfc   : > { %v7479_v57 = vsel %vm8370_vm6, %v7332_v6, %v1014_v48  ;;  %v8371_v16 = vshrl.u32 %v6831_v17, 16  ;;  %v682_v9 = vand.u32 15, %v538_v56  ;;  %vm7486_vm9 = vcmp.ne.s16.totalorder %v4602_v15, 0  ;;  %5337 = vmatpush3.bf16.msra.mxu1 %v6073_v20  ;;  %v6082_v51 = vld [vmem:[#allocation11 + $0x1e0] sm:$0xff]  }
  0xfd   : > { %v8372_v37 = vmov 0  ;;  %vm7490_vm4 = vcmp.ne.s16.totalorder %v4578_v19, 0  ;;  %v8375_v60 = vmov 0  ;;  %v1549_v6 = vsel %vm1517_vm5, 65537, %v8308_v25  ;;  %v6075_v19 = vld [vmem:[#allocation11 + $0xa8] sm:$0xff]   ;;  %5513 = vmatmul.mubr.msk.bf16.gmra.mrb[24].mxu0 %vm7486_vm9, %v7470_v0 }
  0xfe   : > { %v7484_v23 = vrot.slane %v8371_v16, 7  ;;  %v8373_v37 = vsel %vm7486_vm9, 4294967295, %v8372_v37  ;;  %v8376_v60 = vsel %vm7490_vm4, 4294967295, %v8375_v60  ;;  %vm8378_vm13 = vsmask.f32 7424  ;;  %5308 = vmatprep.mubr.msk.bf16.mxu1 %vm7490_vm4, %v7479_v57  ;;  %5338 = vmatprep.subr.bf16.mxu1 %v6075_v19 }
  0xff   : > { %8374 = vst [vmem:[#allocation46_spill] sm:$0xff] %v8373_v37  ;;  %8377 = vst [vmem:[#allocation47_spill] sm:$0xff] %v8376_v60  ;;  %v7497_v48 = vsel %vm8378_vm13, %v1399_v53, %v1400_v22  ;;  %vm7499_vm8 = vcmp.ne.s16.totalorder %v4603_v59, 0  ;;  %v8380_v8 = vmov 0  ;;  %vm1419_vm6 = vcmask 1047552  }
 0x100   : > { %8379 = vst [vmem:[#allocation48_spill] sm:$0xff] %v7497_v48  ;;  %v8381_v8 = vsel %vm7499_vm8, 4294967295, %v8380_v8  ;;  %v1225_v15 = vsel %vm1193_vm14, 65537, %v8308_v25  ;;  %v8383_v56 = vshll.u32 %v6789_v61, 16  ;;  %v4579_v33 = vcombine.low %v1223_v49, %v6631_v13  ;;  %5516 = vmatprep.mubr.msk.bf16.mxu0 %vm7499_vm8, %v7497_v48  ;;  %vm1420_vm9 = vmand %vm1419_vm6, %vm8378_vm13  ;;  %5339 = vmatpush3.bf16.msra.mxu1 %v6075_v19 }
 0x101   : > { %8382 = vst [vmem:[#allocation49_spill] sm:$0xff] %v8381_v8  ;;  %vm7510_vm5 = vcmp.ge.s32.totalorder %v668_v46, 1  ;;  %v540_v59 = vadd.s32 160, %v6628_v10  ;;  %v4604_v14 = vcombine.low %v6631_v13, %v1549_v6  ;;  %vm7525_vm14 = vcmp.ge.s32.totalorder %v682_v9, 1  ;;  %v6077_v9 = vld [vmem:[#allocation11 + $0xb0] sm:$0xff]   ;;  %v6079_v46 = vld [vmem:[#allocation11 + $0xb8] sm:$0xff]  }
 0x102   : > { %v1022_v16 = vor.u32 %v8383_v56, %v1019_v41  ;;  %v8386_v56 = vshll.u32 %v6831_v17, 16  ;;  %v542_v61 = vadd.s32 176, %v6628_v10  ;;  %v8389_v37 = vshrl.u32 %v7396_v5, 16  ;;  %vm1195_vm11 = vmpackc.low %vm7510_vm5, %vm7510_vm5  ;;  %5340 = vmatprep.subr.bf16.mxu1 %v6077_v9 }
 0x103   : > { %v4580_v6 = vcombine.low %v1225_v15, %v6631_v13  ;;  %vm8390_vm7 = vsmask.f32 256  ;;  %v8391_v8 = vshrl.u32 %v6888_v3, 16  ;;  %vm1197_vm6 = vmpackc.low %vm7525_vm14, %vm7525_vm14  ;;  %vm7550_vm13 = vcmp.ne.s16.totalorder %v4579_v33, 0 }
 0x104   : > { %v1030_v49 = vor.u32 %v8386_v56, %v7484_v23  ;;  %v1402_v0 = vor.u32 %v1400_v22, %v8389_v37  ;;  %v7543_v56 = vsel %vm8390_vm7, %v7394_v55, %v1022_v16  ;;  %v696_v22 = vand.u32 15, %v540_v59  ;;  %vm8397_vm5 = vmmov %vm8390_vm7  ;;  %5341 = vmatpush3.bf16.msra.mxu1 %v6077_v9 }
 0x105   : > { %v1035_v48 = vrot.slane %v8391_v8, 7  ;;  %vm7554_vm8 = vcmp.ne.s16.totalorder %v4604_v14, 0  ;;  %v8394_v37 = vmov 0  ;;  %v710_v55 = vand.u32 15, %v542_v61  ;;  %5309 = vmatmul.mubr.msk.bf16.gmra.mrb[12].mxu1 %vm7550_vm13, %v7543_v56  ;;  %5342 = vmatprep.subr.bf16.mxu1 %v6079_v46 }
 0x106   : > { %v8395_v37 = vsel %vm7554_vm8, 4294967295, %v8394_v37  ;;  %v7559_v15 = vsel %vm8397_vm5, %v1019_v41, %v1030_v49  ;;  %v7561_v16 = vsel %vm1420_vm9, %v1402_v0, 0  ;;  %vm7563_vm7 = vcmp.ne.s16.totalorder %v4580_v6, 0 }
 0x107   : > { %8396 = vst [vmem:[#allocation50_spill] sm:$0xff] %v8395_v37  ;;  %8398 = vst [vmem:[#allocation51_spill] sm:$0xff] %v7561_v16  ;;  %v1227_v53 = vsel %vm1195_vm11, 65537, %v8308_v25  ;;  %v8401_v33 = vshrl.u32 %v6948_v35, 16  ;;  %v1229_v14 = vsel %vm1197_vm6, 65537, %v8308_v25  ;;  %vm7574_vm9 = vcmp.ge.s32.totalorder %v696_v22, 1  ;;  %5517 = vmatmul.mubr.msk.bf16.gmra.mrb[28].mxu0 %vm7554_vm8, %v7561_v16  ;;  %5312 = vmatprep.mubr.msk.bf16.mxu1 %vm7563_vm7, %v7559_v15 }
 0x108   : > { %v544_v0 = vadd.s32 192, %v6628_v10  ;;  %v8404_v41 = vshll.u32 %v6888_v3, 16  ;;  %v4581_v49 = vcombine.low %v1227_v53, %v6631_v13  ;;  %vm7588_vm11 = vcmp.ge.s32.totalorder %v710_v55, 1  ;;  %5536 = vmatprep.mubr.msk.bf16.mxu0 %vm7259_vm2, %v7257_v32  ;;  %vm1199_vm14 = vmpackc.low %vm7574_vm9, %vm7574_vm9  ;;  %v7602_v55 = vld [vmem:[#allocation11 + $0xc0] sm:$0xff]   ;;  %5343 = vmatpush3.bf16.msra.mxu1 %v6079_v46 }
 0x109   : > { %v1043_v59 = vrot.slane %v8401_v33, 7  ;;  %v546_v22 = vadd.s32 208, %v6628_v10  ;;  %v8407_v33 = vshll.u32 %v6948_v35, 16  ;;  %v4582_v16 = vcombine.low %v1229_v14, %v6631_v13  ;;  %vm1201_vm6 = vmpackc.low %vm7588_vm11, %vm7588_vm11  ;;  %5376 = vmatprep.subr.bf16.mxu1 %v7602_v55 }
 0x10a   : > { %v1038_v19 = vor.u32 %v8404_v41, %v1035_v48  ;;  %v724_v53 = vand.u32 15, %v544_v0  ;;  %vm7611_vm8 = vcmp.ne.s16.totalorder %v4581_v49, 0  ;;  %v8410_v9 = vshrl.u32 %v7019_v44, 16  ;;  %vm8411_vm9 = vmmov %vm8397_vm5  ;;  %v6076_v49 = vld [vmem:[#allocation11 + $0x1c8] sm:$0xff]  }
 0x10b   : > { %v1046_v37 = vor.u32 %v8407_v33, %v1043_v59  ;;  %v738_v61 = vand.u32 15, %v546_v22  ;;  %vm7620_vm2 = vcmp.ne.s16.totalorder %v4582_v16, 0  ;;  %v1231_v0 = vsel %vm1199_vm14, 65537, %v8308_v25 }
 0x10c   : > { %v7609_v41 = vsel %vm8397_vm5, %v7484_v23, %v1038_v19  ;;  %v1051_v14 = vrot.slane %v8410_v9, 7  ;;  %v8414_v23 = vshrl.u32 %v7032_v1, 16  ;;  %v1233_v32 = vsel %vm1201_vm6, 65537, %v8308_v25 }
 0x10d   : > { %v7618_v12 = vsel %vm8411_vm9, %v1035_v48, %v1046_v37  ;;  %5313 = vmatmul.mubr.msk.bf16.gmra.mrb[16].mxu1 %vm7611_vm8, %v7609_v41  ;;  %vm7632_vm11 = vcmp.ge.s32.totalorder %v724_v53, 1  ;;  %v548_v37 = vadd.s32 224, %v6628_v10  ;;  %v8417_v16 = vshll.u32 %v7019_v44, 16  ;;  %v6080_v53 = vld [vmem:[#allocation11 + $0x1d8] sm:$0xff]  }
 0x10e   : > { %v1059_v19 = vrot.slane %v8414_v23, 7  ;;  %5316 = vmatprep.mubr.msk.bf16.mxu1 %vm7620_vm2, %v7618_v12  ;;  %v4583_v22 = vcombine.low %v1231_v0, %v6631_v13  ;;  %vm7646_vm14 = vcmp.ge.s32.totalorder %v738_v61, 1  ;;  %v8420_v9 = vshll.u32 %v7032_v1, 16  ;;  %vm1203_vm6 = vmpackc.low %vm7632_vm11, %vm7632_vm11  ;;  %v6078_v61 = vld [vmem:[#allocation11 + $0x1d0] sm:$0xff]  }
 0x10f   : > { %5537 = vmatmul.mubr.msk.bf16.vlgmr.msra.gmra.mrb[0].mxu0 %vm7306_vm1, %v7286_v63  ;;  %v1054_v46 = vor.u32 %v8417_v16, %v1051_v14  ;;  %v4584_v28 = vcombine.low %v1233_v32, %v6631_v13  ;;  %vm1205_vm5 = vmpackc.low %vm7646_vm14, %vm7646_vm14  ;;  %v8423_v32 = vshrl.u32 %v7042_v34, 16  ;;  %v8443_v7 = vshrl.u32 %v7396_v5, 16  ;;  %v8506_v21 = vld [vmem:[#allocation51_spill] sm:$0xff] }
 0x110   : > { %5569 = vmatpush3.bf16.msra.mxu0 %v7297_v30  ;;  %5540 = vmatprep.mubr.msk.bf16.mxu0 %vm7368_vm10, %v7304_v29  ;;  %v1062_v23 = vor.u32 %v8420_v9, %v1059_v19  ;;  %v752_v30 = vand.u32 15, %v548_v37  ;;  %vm7666_vm10 = vcmp.ne.s16.totalorder %v4583_v22, 0  ;;  %vm8424_vm1 = vmmov %vm8411_vm9  ;;  %v1235_v37 = vsel %vm1203_vm6, 65537, %v8308_v25 }
 0x111   : > { %5570 = vmatprep.subr.bf16.mxu0 %v6076_v49  ;;  %v7664_v0 = vsel %vm8411_vm9, %v1043_v59, %v1054_v46  ;;  %v1067_v9 = vrot.slane %v8423_v32, 7  ;;  %vm7675_vm11 = vcmp.ne.s16.totalorder %v4584_v28, 0  ;;  %v8427_v59 = vshrl.u32 %v7099_v26, 16  ;;  %vm8432_vm6 = vmmov %vm8411_vm9 }
 0x112   : > { %v7673_v48 = vsel %vm8424_vm1, %v1051_v14, %v1062_v23  ;;  %v1237_v22 = vsel %vm1205_vm5, 65537, %v8308_v25  ;;  %vm7686_vm14 = vcmp.ge.s32.totalorder %v752_v30, 1  ;;  %v8430_v28 = vshll.u32 %v7042_v34, 16  ;;  %vm8436_vm9 = vmmov %vm8432_vm6 }
 0x113   : > { %v1075_v46 = vrot.slane %v8427_v59, 7  ;;  %v4585_v23 = vcombine.low %v1235_v37, %v6631_v13  ;;  %v8431_v30 = vshll.u32 %v7099_v26, 16  ;;  %v4586_v59 = vcombine.low %v1237_v22, %v6631_v13  ;;  %vm1207_vm1 = vmpackc.low %vm7686_vm14, %vm7686_vm14 }
 0x114   : > { %5571 = vmatpush3.bf16.msra.mxu0 %v6076_v49  ;;  %v1070_v49 = vor.u32 %v8430_v28, %v1067_v9  ;;  %v8437_v22 = vmov 0  ;;  %v1239_v14 = vsel %vm1207_vm1, 65537, %v8308_v25  ;;  %vm8440_vm14 = vmmov %vm8432_vm6 }
 0x115   : > { %5572 = vmatprep.subr.bf16.mxu0 %v6078_v61  ;;  %5317 = vmatmul.mubr.msk.bf16.gmra.mrb[20].mxu1 %vm7666_vm10, %v7664_v0  ;;  %v1078_v32 = vor.u32 %v8431_v30, %v1075_v46  ;;  %vm7711_vm5 = vcmp.ne.s16.totalorder %v4585_v23, 0  ;;  %v4587_v23 = vcombine.low %v1239_v14, %v6631_v13 }
 0x116   : > { %5320 = vmatprep.mubr.msk.bf16.mxu1 %vm7675_vm11, %v7673_v48  ;;  %v7709_v28 = vsel %vm8432_vm6, %v1059_v19, %v1070_v49  ;;  %v6084_v19 = vld [vmem:[#allocation11 + $0x1e8] sm:$0xff]  }
 0x117   : > { %5541 = vmatmul.mubr.msk.bf16.gmra.mrb[4].mxu0 %vm7465_vm3, %v7445_v31  ;;  %v7718_v30 = vsel %vm8436_vm9, %v1067_v9, %v1078_v32  ;;  %v8439_v9 = vshll.u32 %v7197_v58, 16  ;;  %vm7743_vm1 = vcmp.ne.s16.totalorder %v4587_v23, 0 }
 0x118   : > { %5544 = vmatprep.mubr.msk.bf16.mxu0 %vm7490_vm4, %v7479_v57  ;;  %5573 = vmatpush3.bf16.msra.mxu0 %v6078_v61  ;;  %v8435_v61 = vshrl.u32 %v7197_v58, 16  ;;  %vm7720_vm4 = vcmp.ne.s16.totalorder %v4586_v59, 0  ;;  %v8441_v59 = vmov 0 }
 0x119   : > { %5574 = vmatprep.subr.bf16.mxu0 %v6080_v53  ;;  %v8438_v22 = vsel %vm7720_vm4, 4294967295, %v8437_v22  ;;  %v8442_v59 = vsel %vm7743_vm1, 4294967295, %v8441_v59 }
 0x11a   : > { %v1083_v60 = vrot.slane %v8435_v61, 7  ;;  %v6088_v61 = vld [vmem:[#allocation11 + $0x1f8] sm:$0xff]  }
 0x11c   : > { %5575 = vmatpush3.bf16.msra.mxu0 %v6080_v53  ;;  %v1086_v49 = vor.u32 %v8439_v9, %v1083_v60  ;;  %v6086_v53 = vld [vmem:[#allocation11 + $0x1f0] sm:$0xff]   ;;  %v6087_v9 = vld [vmem:[#allocation11 + $0xd8] sm:$0xff]  }
 0x11d   : > { %5576 = vmatprep.subr.bf16.mxu0 %v6082_v51  ;;  %5321 = vmatmul.mubr.msk.bf16.gmra.mrb[24].mxu1 %vm7711_vm5, %v7709_v28 }
 0x11e   : > { %5324 = vmatprep.mubr.msk.bf16.mxu1 %vm7720_vm4, %v7718_v30  ;;  %v7741_v32 = vsel %vm8440_vm14, %v1075_v46, %v1086_v49  ;;  %v6090_v46 = vld [vmem:[#allocation11 + $0x200] sm:$0xff]   ;;  %v8445_v49 = vshll.u32 %v7396_v5, 16 }
 0x11f   : > { %5545 = vmatmul.mubr.msk.bf16.gmra.mrb[8].mxu0 %vm7550_vm13, %v7543_v56 }
 0x120   : > { %5548 = vmatprep.mubr.msk.bf16.mxu0 %vm7563_vm7, %v7559_v15  ;;  %5577 = vmatpush3.bf16.msra.mxu0 %v6082_v51  ;;  %v550_v51 = vadd.s32 240, %v6628_v10  ;;  %v6085_v10 = vld [vmem:[#allocation11 + $0xd0] sm:$0xff]  }
 0x121   : > { %5578 = vmatprep.subr.bf16.mxu0 %v6084_v19 }
 0x122   : > { %v766_v14 = vand.u32 15, %v550_v51 }
 0x124   : > { %5579 = vmatpush3.bf16.msra.mxu0 %v6084_v19  ;;  %v6083_v19 = vld [vmem:[#allocation11 + $0xc8] sm:$0xff]   ;;  %vm966_vm6 = vcmp.ge.s32.totalorder %v766_v14, 1  ;;  %v8446_v14 = vmov 0 }
 0x125   : > { %5580 = vmatprep.subr.bf16.mxu0 %v6086_v53  ;;  %5325 = vmatmul.mubr.msk.bf16.gmra.mrb[28].mxu1 %vm7743_vm1, %v7741_v32  ;;  %vm1209_vm9 = vmpackc.low %vm966_vm6, %vm966_vm6 }
 0x126   : > { %5344 = vmatprep.mubr.bf16.mxu1 %v8308_v25 }
 0x127   : > { %5549 = vmatmul.mubr.msk.bf16.gmra.mrb[12].mxu0 %vm7611_vm8, %v7609_v41 }
 0x128   : > { %5552 = vmatprep.mubr.msk.bf16.mxu0 %vm7620_vm2, %v7618_v12  ;;  %5581 = vmatpush3.bf16.msra.mxu0 %v6086_v53 }
 0x129   : > { %5582 = vmatprep.subr.bf16.mxu0 %v6088_v61 }
 0x12c   : > { %5583 = vmatpush3.bf16.msra.mxu0 %v6088_v61  ;;  %v6089_v61 = vld [vmem:[#allocation11 + $0xe0] sm:$0xff]  }
 0x12d   : > { %5616 = vmatprep.subr.bf16.mxu0 %v6090_v46  ;;  %5345 = vmatmul.mubr.msk.bf16.vlgmr.msra.gmra.mrb[0].mxu1 %vm6816_vm12, %v6845_v36  ;;  %v1091_v36 = vrot.slane %v8443_v7, 7  ;;  %vm8444_vm12 = vnez %v8260_v27  ;;  %v8452_v7 = vld [vmem:[#allocation31_spill] sm:$0xff] }
 0x12e   : > { %5377 = vmatpush3.bf16.msra.mxu1 %v7602_v55  ;;  %5348 = vmatprep.mubr.msk.bf16.mxu1 %vm6874_vm15, %v6869_v4  ;;  %v1241_v55 = vsel %vm1209_vm9, 65537, %v8308_v25  ;;  %vm8448_vm9 = vnez %v8264_v62 }
 0x12f   : > { %5553 = vmatmul.mubr.msk.bf16.gmra.mrb[16].mxu0 %vm7666_vm10, %v7664_v0  ;;  %5378 = vmatprep.subr.bf16.mxu1 %v6083_v19  ;;  %v1094_v23 = vor.u32 %v8445_v49, %v1091_v36  ;;  %v4588_v53 = vcombine.low %v1241_v55, %v6631_v13  ;;  %v6093_v13 = vld [vmem:[#allocation11 + $0xf0] sm:$0xff]   ;;  %v6092_v55 = vld [vmem:[#allocation11 + $0x208] sm:$0xff]   ;;  %v6103_v49 = vld [vmem:[#allocation11 + $0x100] sm:$0xff]  }
 0x130   : > { %5556 = vmatprep.mubr.msk.bf16.mxu0 %vm7675_vm11, %v7673_v48  ;;  %v8453_v36 = vld [vmem:[#allocation28_spill] sm:$0xff] }
 0x131   : > { %v7790_v51 = vsel %vm8440_vm14, %v1083_v60, %v1094_v23  ;;  %vm7792_vm6 = vcmp.ne.s16.totalorder %v4588_v53, 0  ;;  %v6095_v60 = vld [vmem:[#allocation11 + $0xf8] sm:$0xff]   ;;  %v8457_v53 = vld [vmem:[#allocation30_spill] sm:$0xff] }
 0x132   : > { %5379 = vmatpush3.bf16.msra.mxu1 %v6083_v19  ;;  %v8447_v14 = vsel %vm7792_vm6, 4294967295, %v8446_v14  ;;  %v6091_v19 = vld [vmem:[#allocation11 + $0xe8] sm:$0xff]   ;;  %v8456_v23 = vld [vmem:[#allocation32_spill] sm:$0xff] }
 0x133   : > { %5380 = vmatprep.subr.bf16.mxu1 %v6085_v10 }
 0x135   : > { %5349 = vmatmul.mubr.msk.bf16.gmra.mrb[4].mxu1 %vm6897_vm0, %v6895_v45 }
 0x136   : > { %5352 = vmatprep.mubr.msk.bf16.mxu1 %vm8444_vm12, %v6955_v38  ;;  %5381 = vmatpush3.bf16.msra.mxu1 %v6085_v10  ;;  %v8450_v10 = vld [vmem:[#allocation27_spill] sm:$0xff] }
 0x137   : > { %5557 = vmatmul.mubr.msk.bf16.gmra.mrb[20].mxu0 %vm7711_vm5, %v7709_v28  ;;  %5382 = vmatprep.subr.bf16.mxu1 %v6087_v9  ;;  %vm8451_vm14 = vnez %v8450_v10 }
 0x138   : > { %5560 = vmatprep.mubr.msk.bf16.mxu0 %vm7720_vm4, %v7718_v30  ;;  %vm8449_vm4 = vnez %v8266_v18 }
 0x13a   : > { %5383 = vmatpush3.bf16.msra.mxu1 %v6087_v9  ;;  %v8455_v9 = vld [vmem:[#allocation22_spill] sm:$0xff] }
 0x13b   : > { %5384 = vmatprep.subr.bf16.mxu1 %v6089_v61 }
 0x13d   : > { %5353 = vmatmul.mubr.msk.bf16.gmra.mrb[8].mxu1 %vm8448_vm9, %v7022_v50 }
 0x13e   : > { %5356 = vmatprep.mubr.msk.bf16.mxu1 %vm8449_vm4, %v7035_v42  ;;  %5385 = vmatpush3.bf16.msra.mxu1 %v6089_v61  ;;  %v8459_v61 = vld [vmem:[#allocation23_spill] sm:$0xff] }
 0x13f   : > { %5561 = vmatmul.mubr.msk.bf16.gmra.mrb[24].mxu0 %vm7743_vm1, %v7741_v32  ;;  %5386 = vmatprep.subr.bf16.mxu1 %v6091_v19  ;;  %vm8454_vm1 = vnez %v8453_v36 }
 0x140   : > { %5564 = vmatprep.mubr.msk.bf16.mxu0 %vm7792_vm6, %v7790_v51  ;;  %vm8458_vm6 = vnez %v8457_v53 }
 0x142   : > { %5387 = vmatpush3.bf16.msra.mxu1 %v6091_v19  ;;  %v8461_v19 = vld [vmem:[#allocation24_spill] sm:$0xff] }
 0x143   : > { %5388 = vmatprep.subr.bf16.mxu1 %v6093_v13 }
 0x145   : > { %5357 = vmatmul.mubr.msk.bf16.gmra.mrb[12].mxu1 %vm8451_vm14, %v7052_v54  ;;  %vm8460_vm14 = vnez %v8300_v2  ;;  %v8467_v2 = vld [vmem:[#allocation43_spill] sm:$0xff] }
 0x146   : > { %5360 = vmatprep.mubr.msk.bf16.mxu1 %vm8454_vm1, %v8452_v7  ;;  %5389 = vmatpush3.bf16.msra.mxu1 %v6093_v13  ;;  %v6094_v13 = vld [vmem:[#allocation11 + $0x210] sm:$0xff]   ;;  %vm8462_vm1 = vnez %v8318_v24  ;;  %v8469_v24 = vld [vmem:[#allocation26_spill] sm:$0xff] }
 0x147   : > { %5565 = vmatmul.mubr.bf16.gmra.mrb[28].mxu0 %v8308_v25  ;;  %5390 = vmatprep.subr.bf16.mxu1 %v6095_v60 }
 0x148   : > { %5584 = vmatprep.mubr.bf16.mxu0 %v8455_v9  ;;  %v8463_v9 = vld [vmem:[#allocation40_spill] sm:$0xff] }
 0x14a   : > { %5391 = vmatpush3.bf16.msra.mxu1 %v6095_v60  ;;  %v6096_v60 = vld [vmem:[#allocation11 + $0x218] sm:$0xff]  }
 0x14b   : > { %5664 = vmatprep.subr.bf16.mxu1 %v6103_v49 }
 0x14d   : > { %5361 = vmatmul.mubr.msk.bf16.gmra.mrb[16].mxu1 %vm8458_vm6, %v8456_v23  ;;  %vm8464_vm6 = vnez %v8463_v9  ;;  %v8474_v9 = vld [vmem:[#allocation49_spill] sm:$0xff] }
 0x14e   : > { %5364 = vmatprep.mubr.msk.bf16.mxu1 %vm8460_vm14, %v7219_v47  ;;  %vm8468_vm14 = vnez %v8467_v2  ;;  %v8476_v2 = vld [vmem:[#allocation29_spill] sm:$0xff] }
 0x14f   : > { %5585 = vmatmul.mubr.bf16.vlgmr.msra.gmra.mrb[0].mxu0 %v8459_v61  ;;  %v8465_v61 = vld [vmem:[#allocation25_spill] sm:$0xff] }
 0x150   : > { %5617 = vmatpush3.bf16.msra.mxu0 %v6090_v46  ;;  %5588 = vmatprep.mubr.bf16.mxu0 %v8461_v19  ;;  %v6097_v46 = vld [vmem:[#allocation11 + $0x220] sm:$0xff]  }
 0x151   : > { %5618 = vmatprep.subr.bf16.mxu0 %v6092_v55  ;;  %v8466_v19 = vld [vmem:[#allocation42_spill] sm:$0xff] }
 0x154   : > { %5619 = vmatpush3.bf16.msra.mxu0 %v6092_v55  ;;  %v6098_v55 = vld [vmem:[#allocation11 + $0x228] sm:$0xff]  }
 0x155   : > { %5620 = vmatprep.subr.bf16.mxu0 %v6094_v13  ;;  %5365 = vmatmul.mubr.msk.bf16.gmra.mrb[20].mxu1 %vm8462_vm1, %v7274_v43  ;;  %v8470_v43 = vld [vmem:[#allocation45_spill] sm:$0xff] }
 0x156   : > { %5368 = vmatprep.mubr.msk.bf16.mxu1 %vm8464_vm6, %v7300_v40  ;;  %vm8475_vm6 = vnez %v8474_v9 }
 0x157   : > { %5589 = vmatmul.mubr.bf16.gmra.mrb[4].mxu0 %v6751_v11  ;;  %v8471_v11 = vld [vmem:[#allocation46_spill] sm:$0xff] }
 0x158   : > { %5592 = vmatprep.mubr.bf16.mxu0 %v8465_v61  ;;  %5621 = vmatpush3.bf16.msra.mxu0 %v6094_v13  ;;  %vm8472_vm1 = vnez %v8471_v11  ;;  %v6099_v13 = vld [vmem:[#allocation11 + $0x230] sm:$0xff]  }
 0x159   : > { %5622 = vmatprep.subr.bf16.mxu0 %v6096_v60  ;;  %v8473_v61 = vld [vmem:[#allocation48_spill] sm:$0xff] }
 0x15c   : > { %5623 = vmatpush3.bf16.msra.mxu0 %v6096_v60  ;;  %v6100_v60 = vld [vmem:[#allocation11 + $0x238] sm:$0xff]  }
 0x15d   : > { %5624 = vmatprep.subr.bf16.mxu0 %v6097_v46  ;;  %5369 = vmatmul.mubr.msk.bf16.gmra.mrb[24].mxu1 %vm8468_vm14, %v8466_v19 }
 0x15e   : > { %5372 = vmatprep.mubr.msk.bf16.mxu1 %vm8472_vm1, %v8470_v43 }
 0x15f   : > { %5593 = vmatmul.mubr.bf16.gmra.mrb[8].mxu0 %v8469_v24  ;;  %v8477_v24 = vld [vmem:[#allocation33_spill] sm:$0xff] }
 0x160   : > { %5596 = vmatprep.mubr.bf16.mxu0 %v6831_v17  ;;  %5625 = vmatpush3.bf16.msra.mxu0 %v6097_v46  ;;  %vm8478_vm14 = vnez %v8477_v24  ;;  %v8479_v17 = vld [vmem:[#allocation35_spill] sm:$0xff]  ;;  %v8480_v46 = vld [vmem:[#allocation36_spill] sm:$0xff] }
 0x161   : > { %5626 = vmatprep.subr.bf16.mxu0 %v6098_v55  ;;  %vm8481_vm1 = vnez %v8480_v46  ;;  %v6104_v24 = vld [vmem:[#allocation11 + $0x108] sm:$0xff]  }
 0x164   : > { %5627 = vmatpush3.bf16.msra.mxu0 %v6098_v55  ;;  %v8482_v55 = vld [vmem:[#allocation39_spill] sm:$0xff] }
 0x165   : > { %5628 = vmatprep.subr.bf16.mxu0 %v6099_v13  ;;  %5373 = vmatmul.mubr.msk.bf16.gmra.mrb[28].mxu1 %vm8475_vm6, %v8473_v61  ;;  %vm8483_vm6 = vnez %v8482_v55 }
 0x166   : > { %5392 = vmatprep.mubr.msk.bf16.mxu1 %vm8478_vm14, %v8476_v2  ;;  %v6105_v2 = vld [vmem:[#allocation11 + $0x110] sm:$0xff]  }
 0x167   : > { %5597 = vmatmul.mubr.bf16.gmra.mrb[12].mxu0 %v6888_v3 }
 0x168   : > { %5600 = vmatprep.mubr.bf16.mxu0 %v6948_v35  ;;  %5629 = vmatpush3.bf16.msra.mxu0 %v6099_v13  ;;  %v8484_v13 = vld [vmem:[#allocation41_spill] sm:$0xff] }
 0x169   : > { %5630 = vmatprep.subr.bf16.mxu0 %v6100_v60  ;;  %vm8485_vm14 = vnez %v8484_v13 }
 0x16c   : > { %5631 = vmatpush3.bf16.msra.mxu0 %v6100_v60 }
 0x16d   : > { %5393 = vmatmul.mubr.msk.bf16.vlgmr.msra.gmra.mrb[0].mxu1 %vm8481_vm1, %v8479_v17  ;;  %v8487_v17 = vld [vmem:[#allocation47_spill] sm:$0xff] }
 0x16e   : > { %5672 = vmatpush3.bf16.msra.mxu1 %v6103_v49  ;;  %5396 = vmatprep.mubr.msk.bf16.mxu1 %vm8483_vm6, %v7286_v63  ;;  %v6106_v63 = vld [vmem:[#allocation11 + $0x118] sm:$0xff]   ;;  %v6107_v49 = vld [vmem:[#allocation11 + $0x120] sm:$0xff]   ;;  %vm8488_vm1 = vnez %v8487_v17 }
 0x16f   : > { %5601 = vmatmul.mubr.bf16.gmra.mrb[16].mxu0 %v7019_v44  ;;  %5665 = vmatprep.subr.bf16.mxu1 %v6104_v24 }
 0x170   : > { %5604 = vmatprep.mubr.bf16.mxu0 %v7032_v1 }
 0x172   : > { %5673 = vmatpush3.bf16.msra.mxu1 %v6104_v24 }
 0x173   : > { %5666 = vmatprep.subr.bf16.mxu1 %v6105_v2 }
 0x175   : > { %5397 = vmatmul.mubr.msk.bf16.gmra.mrb[4].mxu1 %vm8485_vm14, %v7304_v29  ;;  %v6108_v29 = vld [vmem:[#allocation11 + $0x128] sm:$0xff]  }
 0x176   : > { %5400 = vmatprep.mubr.msk.bf16.mxu1 %vm7465_vm3, %v7445_v31  ;;  %5674 = vmatpush3.bf16.msra.mxu1 %v6105_v2  ;;  %v6109_v31 = vld [vmem:[#allocation11 + $0x130] sm:$0xff]   ;;  %vm8493_vm3 = vnez %v8447_v14 }
 0x177   : > { %5605 = vmatmul.mubr.bf16.gmra.mrb[20].mxu0 %v7042_v34  ;;  %5667 = vmatprep.subr.bf16.mxu1 %v6106_v63 }
 0x178   : > { %5608 = vmatprep.mubr.bf16.mxu0 %v7099_v26 }
 0x17a   : > { %5675 = vmatpush3.bf16.msra.mxu1 %v6106_v63 }
 0x17b   : > { %5668 = vmatprep.subr.bf16.mxu1 %v6107_v49 }
 0x17d   : > { %5401 = vmatmul.mubr.msk.bf16.gmra.mrb[8].mxu1 %vm8488_vm1, %v7479_v57  ;;  %v6110_v57 = vld [vmem:[#allocation11 + $0x138] sm:$0xff]  }
 0x17e   : > { %5404 = vmatprep.mubr.msk.bf16.mxu1 %vm7550_vm13, %v7543_v56  ;;  %5676 = vmatpush3.bf16.msra.mxu1 %v6107_v49  ;;  %vm8499_vm13 = vnez %v8498_v39 }
 0x17f   : > { %5609 = vmatmul.mubr.bf16.gmra.mrb[24].mxu0 %v7197_v58  ;;  %5669 = vmatprep.subr.bf16.mxu1 %v6108_v29 }
 0x180   : > { %5612 = vmatprep.mubr.bf16.mxu0 %v7396_v5 }
 0x182   : > { %5677 = vmatpush3.bf16.msra.mxu1 %v6108_v29 }
 0x183   : > { %5670 = vmatprep.subr.bf16.mxu1 %v6109_v31 }
 0x185   : > { %5405 = vmatmul.mubr.msk.bf16.gmra.mrb[12].mxu1 %vm7563_vm7, %v7559_v15 }
 0x186   : > { %5408 = vmatprep.mubr.msk.bf16.mxu1 %vm7611_vm8, %v7609_v41  ;;  %5678 = vmatpush3.bf16.msra.mxu1 %v6109_v31 }
 0x187   : > { %5613 = vmatmul.mubr.bf16.gmra.mrb[28].mxu0 %v8308_v25  ;;  %5671 = vmatprep.subr.bf16.mxu1 %v6110_v57 }
 0x188   : > { %5632 = vmatprep.mubr.msk.bf16.mxu0 %vm6874_vm15, %v6869_v4  ;;  %vm8489_vm15 = vnez %v8438_v22  ;;  %v8497_v4 = vld [vmem:[#allocation37_spill] sm:$0xff] }
 0x18a   : > { %5679 = vmatpush3.bf16.msra.mxu1 %v6110_v57 }
 0x18d   : > { %5409 = vmatmul.mubr.msk.bf16.gmra.mrb[16].mxu1 %vm7620_vm2, %v7618_v12  ;;  %vm8491_vm2 = vnez %v8442_v59 }
 0x18e   : > { %5412 = vmatprep.mubr.msk.bf16.mxu1 %vm7666_vm10, %v7664_v0  ;;  %vm8492_vm10 = vnez %v8453_v36 }
 0x18f   : > { %5633 = vmatmul.mubr.msk.bf16.vlgmr.msra.gmra.mrb[0].mxu0 %vm6897_vm0, %v6895_v45  ;;  %vm8490_vm0 = vnez %v8450_v10  ;;  %v8500_v45 = vld [vmem:[#allocation40_spill] sm:$0xff] }
 0x190   : > { %5636 = vmatprep.mubr.msk.bf16.mxu0 %vm8444_vm12, %v6955_v38  ;;  %v8495_v38 = vld [vmem:[#allocation34_spill] sm:$0xff]  ;;  %vm8501_vm7 = vnez %v8500_v45  ;;  %vm8505_vm12 = vnez %v8474_v9 }
 0x191   : > { %vm8496_vm8 = vnez %v8495_v38 }
 0x195   : > { %5413 = vmatmul.mubr.msk.bf16.gmra.mrb[20].mxu1 %vm7675_vm11, %v7673_v48 }
 0x196   : > { %5416 = vmatprep.mubr.msk.bf16.mxu1 %vm7711_vm5, %v7709_v28  ;;  %vm8504_vm5 = vnez %v8471_v11 }
 0x197   : > { %5637 = vmatmul.mubr.msk.bf16.gmra.mrb[4].mxu0 %vm8448_vm9, %v7022_v50 }
 0x198   : > { %5640 = vmatprep.mubr.msk.bf16.mxu0 %vm8449_vm4, %v7035_v42  ;;  %vm8494_vm4 = vnez %v8457_v53 }
 0x19d   : > { %5417 = vmatmul.mubr.msk.bf16.gmra.mrb[24].mxu1 %vm8489_vm15, %v7718_v30 }
 0x19e   : > { %5420 = vmatprep.mubr.msk.bf16.mxu1 %vm8491_vm2, %v7741_v32 }
 0x19f   : > { %5641 = vmatmul.mubr.msk.bf16.gmra.mrb[8].mxu0 %vm8490_vm0, %v7052_v54 }
 0x1a0   : > { %5644 = vmatprep.mubr.msk.bf16.mxu0 %vm8492_vm10, %v8452_v7 }
 0x1a5   : > { %5421 = vmatmul.mubr.msk.bf16.gmra.mrb[28].mxu1 %vm8493_vm3, %v7790_v51 }
 0x1a6   : > { %5456 = vmatprep.mubr.bf16.mxu1 %v6888_v3  ;;  %v8502_v3 = vld [vmem:[#allocation43_spill] sm:$0xff] }
 0x1a7   : > { %5645 = vmatmul.mubr.msk.bf16.gmra.mrb[12].mxu0 %vm8494_vm4, %v8456_v23  ;;  %vm8503_vm11 = vnez %v8502_v3 }
 0x1a8   : > { %5648 = vmatprep.mubr.msk.bf16.mxu0 %vm8496_vm8, %v7219_v47 }
 0x1ad   : > { %5457 = vmatmul.mubr.bf16.vlgmr.msra.gmra.mrb[16].mxu1 %v6948_v35  ;;  %v8507_v35 = vld [vmem:[#allocation50_spill] sm:$0xff] }
 0x1ae   : > { %5460 = vmatprep.mubr.bf16.mxu1 %v7019_v44  ;;  %vm8508_vm6 = vnez %v8507_v35 }
 0x1af   : > { %5649 = vmatmul.mubr.msk.bf16.gmra.mrb[16].mxu0 %vm8499_vm13, %v8497_v4 }
 0x1b0   : > { %5652 = vmatprep.mubr.msk.bf16.mxu0 %vm8501_vm7, %v7300_v40 }
 0x1b5   : > { %5461 = vmatmul.mubr.bf16.gmra.mrb[20].mxu1 %v7032_v1 }
 0x1b6   : > { %5464 = vmatprep.mubr.bf16.mxu1 %v7042_v34 }
 0x1b7   : > { %5653 = vmatmul.mubr.msk.bf16.gmra.mrb[20].mxu0 %vm8503_vm11, %v8466_v19 }
 0x1b8   : > { %5656 = vmatprep.mubr.msk.bf16.mxu0 %vm8504_vm5, %v8470_v43 }
 0x1bd   : > { %5465 = vmatmul.mubr.bf16.gmra.mrb[24].mxu1 %v7099_v26 }
 0x1be   : > { %5468 = vmatprep.mubr.bf16.mxu1 %v7197_v58 }
 0x1bf   : > { %5657 = vmatmul.mubr.msk.bf16.gmra.mrb[24].mxu0 %vm8505_vm12, %v8473_v61 }
 0x1c0   : > { %5660 = vmatprep.mubr.msk.bf16.mxu0 %vm8508_vm6, %v8506_v21 }
 0x1c5   : > { %5469 = vmatmul.mubr.bf16.gmra.mrb[28].mxu1 %v7396_v5 }
 0x1c7   : > { %5661 = vmatmul.mubr.bf16.gmra.mrb[28].mxu0 %v8308_v25 }
 0x240   : > { %v5394_v27 = vpop.f32.mrb[0].mxu1 }
 0x241   : > { %v2556_v44 = vpop.f32.mrb[1].mxu1 }
 0x242   : > { %v5395_v50 = vpop.f32.mrb[2].mxu1 }
 0x243   : > { %v2559_v62 = vpop.f32.mrb[3].mxu1 }
 0x248   : > { %v5398_v1 = vpop.f32.mrb[4].mxu1 }
 0x249   : > { %v2572_v42 = vpop.f32.mrb[5].mxu1 }
 0x24a   : > { %v5399_v34 = vpop.f32.mrb[6].mxu1 }
 0x24b   : > { %v2575_v18 = vpop.f32.mrb[7].mxu1 }
 0x250   : > { %v5402_v54 = vpop.f32.mrb[8].mxu1 }
 0x251   : > { %v2588_v26 = vpop.f32.mrb[9].mxu1 }
 0x252   : > { %v5403_v47 = vpop.f32.mrb[10].mxu1 }
 0x253   : > { %v2591_v58 = vpop.f32.mrb[11].mxu1 }
 0x258   : > { %v7954_v12 = vpop.f32.mrb[12].mxu1 }
 0x259   : > { %v7956_v43 = vpop.f32.mrb[13].mxu1 }
 0x25a   : > { %v7958_v40 = vpop.f32.mrb[14].mxu1 }
 0x25b   : > { %v7960_v25 = vpop.f32.mrb[15].mxu1 }
 0x262   : > { %v5634_v52 = vpop.f32.mrb[0].mxu0 }
 0x263   : > { %v5680_v5 = vadd.f32 %v5634_v52, %v5394_v27  ;;  %v3926_v56 = vpop.f32.mrb[1].mxu0 }
 0x264   : > { %v5681_v20 = vadd.f32 %v3926_v56, %v2556_v44  ;;  %v5635_v15 = vpop.f32.mrb[2].mxu0 }
 0x265   : > { %v5682_v8 = vadd.f32 %v5635_v15, %v5395_v50  ;;  %v3929_v41 = vpop.f32.mrb[3].mxu0  ;;  %v4285_v37 = vmul.f32 %v5680_v5, %v5680_v5 }
 0x266   : > { %v5683_v33 = vadd.f32 %v3929_v41, %v2559_v62  ;;  %v4283_v0 = vmul.f32 %v5681_v20, %v5681_v20 }
 0x267   : > { %v4822_v6 = vpack.c.bf16 %v5682_v8, %v5680_v5  ;;  %v4286_v14 = vmul.f32 %v5682_v8, %v5682_v8 }
 0x268   : > { %v4817_v16 = vpack.c.bf16 %v5683_v33, %v5681_v20  ;;  %v4245_v48 = vadd.f32 %v5683_v33, %v5681_v20  ;;  %v4284_v28 = vmul.f32 %v5683_v33, %v5683_v33 }
 0x269   : > { %4909 = vst [vmem:[%s7964_s27 + $0x8] sm:$0xff] %v4822_v6  }
 0x26a   : > { %4818 = vst [vmem:[%s7964_s27] sm:$0xff] %v4817_v16   ;;  %v4246_v30 = vadd.f32 %v5680_v5, %v4245_v48  ;;  %v4315_v22 = vadd.f32 %v4284_v28, %v4283_v0  ;;  %v5638_v32 = vpop.f32.mrb[4].mxu0 }
 0x26b   : > { %v5684_v59 = vadd.f32 %v5638_v32, %v5398_v1  ;;  %v3942_v51 = vpop.f32.mrb[5].mxu0 }
 0x26c   : > { %v4316_v10 = vadd.f32 %v4315_v22, %v4285_v37  ;;  %v5685_v7 = vadd.f32 %v3942_v51, %v2572_v42  ;;  %v4247_v36 = vadd.f32 %v5682_v8, %v4246_v30  ;;  %v5639_v23 = vpop.f32.mrb[6].mxu0 }
 0x26d   : > { %v5686_v53 = vadd.f32 %v5639_v23, %v5399_v34  ;;  %v3945_v9 = vpop.f32.mrb[7].mxu0  ;;  %v4289_v63 = vmul.f32 %v5684_v59, %v5684_v59 }
 0x26e   : > { %v4248_v19 = vadd.f32 %v5685_v7, %v4247_v36  ;;  %v4287_v11 = vmul.f32 %v5685_v7, %v5685_v7  ;;  %v4317_v61 = vadd.f32 %v4316_v10, %v4286_v14  ;;  %v5687_v46 = vadd.f32 %v3945_v9, %v2575_v18 }
 0x26f   : > { %v4832_v55 = vpack.c.bf16 %v5686_v53, %v5684_v59  ;;  %v4290_v38 = vmul.f32 %v5686_v53, %v5686_v53 }
 0x270   : > { %v4318_v24 = vadd.f32 %v4317_v61, %v4287_v11  ;;  %v4827_v2 = vpack.c.bf16 %v5687_v46, %v5685_v7  ;;  %v4249_v13 = vadd.f32 %v5687_v46, %v4248_v19  ;;  %v4288_v60 = vmul.f32 %v5687_v46, %v5687_v46 }
 0x271   : > { %4911 = vst [vmem:[%s7964_s27 + $0x18] sm:$0xff] %v4832_v55  }
 0x272   : > { %4910 = vst [vmem:[%s7964_s27 + $0x10] sm:$0xff] %v4827_v2   ;;  %v4250_v49 = vadd.f32 %v5684_v59, %v4249_v13  ;;  %v4319_v17 = vadd.f32 %v4318_v24, %v4288_v60  ;;  %v5642_v29 = vpop.f32.mrb[8].mxu0 }
 0x273   : > { %v5688_v31 = vadd.f32 %v5642_v29, %v5402_v54  ;;  %v3958_v57 = vpop.f32.mrb[9].mxu0 }
 0x274   : > { %v4320_v4 = vadd.f32 %v4319_v17, %v4289_v63  ;;  %v5689_v39 = vadd.f32 %v3958_v57, %v2588_v26  ;;  %v4251_v45 = vadd.f32 %v5686_v53, %v4250_v49  ;;  %v5643_v3 = vpop.f32.mrb[10].mxu0 }
 0x275   : > { %v5690_v21 = vadd.f32 %v5643_v3, %v5403_v47  ;;  %v3961_v35 = vpop.f32.mrb[11].mxu0  ;;  %v4293_v54 = vmul.f32 %v5688_v31, %v5688_v31 }
 0x276   : > { %v4252_v27 = vadd.f32 %v5689_v39, %v4251_v45  ;;  %v4291_v44 = vmul.f32 %v5689_v39, %v5689_v39  ;;  %v4321_v50 = vadd.f32 %v4320_v4, %v4290_v38  ;;  %v5691_v62 = vadd.f32 %v3961_v35, %v2591_v58 }
 0x277   : > { %v4842_v1 = vpack.c.bf16 %v5690_v21, %v5688_v31  ;;  %v4294_v47 = vmul.f32 %v5690_v21, %v5690_v21 }
 0x278   : > { %v4322_v42 = vadd.f32 %v4321_v50, %v4291_v44  ;;  %v4837_v34 = vpack.c.bf16 %v5691_v62, %v5689_v39  ;;  %v4253_v18 = vadd.f32 %v5691_v62, %v4252_v27  ;;  %v4292_v52 = vmul.f32 %v5691_v62, %v5691_v62 }
 0x279   : > { %4913 = vst [vmem:[%s7964_s27 + $0x28] sm:$0xff] %v4842_v1  }
 0x27a   : > { %4912 = vst [vmem:[%s7964_s27 + $0x20] sm:$0xff] %v4837_v34   ;;  %v4254_v5 = vadd.f32 %v5688_v31, %v4253_v18  ;;  %v4323_v56 = vadd.f32 %v4322_v42, %v4292_v52  ;;  %v5646_v26 = vpop.f32.mrb[12].mxu0 }
 0x27b   : > { %v5692_v20 = vadd.f32 %v5646_v26, %v7954_v12  ;;  %v3974_v15 = vpop.f32.mrb[13].mxu0 }
 0x27c   : > { %v4324_v8 = vadd.f32 %v4323_v56, %v4293_v54  ;;  %v5693_v41 = vadd.f32 %v3974_v15, %v7956_v43  ;;  %v4255_v58 = vadd.f32 %v5690_v21, %v4254_v5  ;;  %v5647_v33 = vpop.f32.mrb[14].mxu0 }
 0x27d   : > { %v5694_v6 = vadd.f32 %v5647_v33, %v7958_v40  ;;  %v3977_v0 = vpop.f32.mrb[15].mxu0  ;;  %v4297_v14 = vmul.f32 %v5692_v20, %v5692_v20 }
 0x27e   : > { %v4256_v16 = vadd.f32 %v5693_v41, %v4255_v58  ;;  %v4295_v48 = vmul.f32 %v5693_v41, %v5693_v41  ;;  %v4325_v28 = vadd.f32 %v4324_v8, %v4294_v47  ;;  %v5695_v37 = vadd.f32 %v3977_v0, %v7960_v25 }
 0x27f   : > { %v4852_v30 = vpack.c.bf16 %v5694_v6, %v5692_v20  ;;  %v4298_v9 = vmul.f32 %v5694_v6, %v5694_v6 }
 0x280   : > { %v4326_v22 = vadd.f32 %v4325_v28, %v4295_v48  ;;  %v4847_v12 = vpack.c.bf16 %v5695_v37, %v5693_v41  ;;  %v4257_v32 = vadd.f32 %v5695_v37, %v4256_v16  ;;  %v4296_v59 = vmul.f32 %v5695_v37, %v5695_v37  ;;  %v5458_v51 = vpop.f32.mrb[16].mxu1 }
 0x281   : > { %4915 = vst [vmem:[%s7964_s27 + $0x38] sm:$0xff] %v4852_v30   ;;  %v2894_v36 = vpop.f32.mrb[17].mxu1 }
 0x282   : > { %4914 = vst [vmem:[%s7964_s27 + $0x30] sm:$0xff] %v4847_v12   ;;  %v4258_v43 = vadd.f32 %v5692_v20, %v4257_v32  ;;  %v4327_v10 = vadd.f32 %v4326_v22, %v4296_v59  ;;  %v5650_v7 = vpop.f32.mrb[16].mxu0  ;;  %v5459_v53 = vpop.f32.mrb[18].mxu1 }
 0x283   : > { %v5696_v40 = vadd.f32 %v5650_v7, %v5458_v51  ;;  %v3990_v23 = vpop.f32.mrb[17].mxu0  ;;  %v2897_v46 = vpop.f32.mrb[19].mxu1 }
 0x284   : > { %v4328_v19 = vadd.f32 %v4327_v10, %v4297_v14  ;;  %v5697_v25 = vadd.f32 %v3990_v23, %v2894_v36  ;;  %v4259_v11 = vadd.f32 %v5694_v6, %v4258_v43  ;;  %v5651_v61 = vpop.f32.mrb[18].mxu0 }
 0x285   : > { %v5698_v55 = vadd.f32 %v5651_v61, %v5459_v53  ;;  %v3993_v24 = vpop.f32.mrb[19].mxu0  ;;  %v4301_v4 = vmul.f32 %v5696_v40, %v5696_v40 }
 0x286   : > { %v4260_v2 = vadd.f32 %v5697_v25, %v4259_v11  ;;  %v4299_v13 = vmul.f32 %v5697_v25, %v5697_v25  ;;  %v4329_v60 = vadd.f32 %v4328_v19, %v4298_v9  ;;  %v5699_v63 = vadd.f32 %v3993_v24, %v2897_v46 }
 0x287   : > { %v4862_v49 = vpack.c.bf16 %v5698_v55, %v5696_v40  ;;  %v4302_v50 = vmul.f32 %v5698_v55, %v5698_v55 }
 0x288   : > { %v4330_v17 = vadd.f32 %v4329_v60, %v4299_v13  ;;  %v4857_v29 = vpack.c.bf16 %v5699_v63, %v5697_v25  ;;  %v4261_v31 = vadd.f32 %v5699_v63, %v4260_v2  ;;  %v4300_v57 = vmul.f32 %v5699_v63, %v5699_v63  ;;  %v5462_v38 = vpop.f32.mrb[20].mxu1 }
 0x289   : > { %4917 = vst [vmem:[%s7964_s27 + $0x48] sm:$0xff] %v4862_v49   ;;  %v2910_v21 = vpop.f32.mrb[21].mxu1 }
 0x28a   : > { %4916 = vst [vmem:[%s7964_s27 + $0x40] sm:$0xff] %v4857_v29   ;;  %v4262_v39 = vadd.f32 %v5696_v40, %v4261_v31  ;;  %v4331_v45 = vadd.f32 %v4330_v17, %v4300_v57  ;;  %v5654_v3 = vpop.f32.mrb[20].mxu0  ;;  %v5463_v44 = vpop.f32.mrb[22].mxu1 }
 0x28b   : > { %v5700_v35 = vadd.f32 %v5654_v3, %v5462_v38  ;;  %v4006_v27 = vpop.f32.mrb[21].mxu0  ;;  %v2913_v18 = vpop.f32.mrb[23].mxu1 }
 0x28c   : > { %v4332_v62 = vadd.f32 %v4331_v45, %v4301_v4  ;;  %v5701_v1 = vadd.f32 %v4006_v27, %v2910_v21  ;;  %v4263_v42 = vadd.f32 %v5698_v55, %v4262_v39  ;;  %v5655_v34 = vpop.f32.mrb[22].mxu0 }
 0x28d   : > { %v5702_v52 = vadd.f32 %v5655_v34, %v5463_v44  ;;  %v4009_v54 = vpop.f32.mrb[23].mxu0  ;;  %v4305_v6 = vmul.f32 %v5700_v35, %v5700_v35 }
 0x28e   : > { %v4264_v5 = vadd.f32 %v5701_v1, %v4263_v42  ;;  %v4303_v56 = vmul.f32 %v5701_v1, %v5701_v1  ;;  %v4333_v26 = vadd.f32 %v4332_v62, %v4302_v50  ;;  %v5703_v20 = vadd.f32 %v4009_v54, %v2913_v18 }
 0x28f   : > { %v4872_v15 = vpack.c.bf16 %v5702_v52, %v5700_v35  ;;  %v4306_v12 = vmul.f32 %v5702_v52, %v5702_v52 }
 0x290   : > { %v4334_v47 = vadd.f32 %v4333_v26, %v4303_v56  ;;  %v4867_v8 = vpack.c.bf16 %v5703_v20, %v5701_v1  ;;  %v4265_v41 = vadd.f32 %v5703_v20, %v4264_v5  ;;  %v4304_v58 = vmul.f32 %v5703_v20, %v5703_v20  ;;  %v5466_v33 = vpop.f32.mrb[24].mxu1 }
 0x291   : > { %4919 = vst [vmem:[%s7964_s27 + $0x58] sm:$0xff] %v4872_v15   ;;  %v2926_v28 = vpop.f32.mrb[25].mxu1 }
 0x292   : > { %4918 = vst [vmem:[%s7964_s27 + $0x50] sm:$0xff] %v4867_v8   ;;  %v4266_v0 = vadd.f32 %v5700_v35, %v4265_v41  ;;  %v4335_v16 = vadd.f32 %v4334_v47, %v4304_v58  ;;  %v5658_v48 = vpop.f32.mrb[24].mxu0  ;;  %v5467_v22 = vpop.f32.mrb[26].mxu1 }
 0x293   : > { %v5704_v37 = vadd.f32 %v5658_v48, %v5466_v33  ;;  %v4022_v30 = vpop.f32.mrb[25].mxu0  ;;  %v2929_v43 = vpop.f32.mrb[27].mxu1 }
 0x294   : > { %v4336_v32 = vadd.f32 %v4335_v16, %v4305_v6  ;;  %v5705_v59 = vadd.f32 %v4022_v30, %v2926_v28  ;;  %v4267_v51 = vadd.f32 %v5702_v52, %v4266_v0  ;;  %v5659_v14 = vpop.f32.mrb[26].mxu0 }
 0x295   : > { %v5706_v10 = vadd.f32 %v5659_v14, %v5467_v22  ;;  %v4025_v7 = vpop.f32.mrb[27].mxu0  ;;  %v4309_v55 = vmul.f32 %v5704_v37, %v5704_v37 }
 0x296   : > { %v4268_v36 = vadd.f32 %v5705_v59, %v4267_v51  ;;  %v4307_v40 = vmul.f32 %v5705_v59, %v5705_v59  ;;  %v4337_v23 = vadd.f32 %v4336_v32, %v4306_v12  ;;  %v5707_v53 = vadd.f32 %v4025_v7, %v2929_v43 }
 0x297   : > { %v4882_v9 = vpack.c.bf16 %v5706_v10, %v5704_v37  ;;  %v4310_v29 = vmul.f32 %v5706_v10, %v5706_v10 }
 0x298   : > { %v4338_v19 = vadd.f32 %v4337_v23, %v4307_v40  ;;  %v4877_v25 = vpack.c.bf16 %v5707_v53, %v5705_v59  ;;  %v4269_v11 = vadd.f32 %v5707_v53, %v4268_v36  ;;  %v4308_v61 = vmul.f32 %v5707_v53, %v5707_v53  ;;  %v5470_v46 = vpop.f32.mrb[28].mxu1 }
 0x299   : > { %4921 = vst [vmem:[%s7964_s27 + $0x68] sm:$0xff] %v4882_v9   ;;  %v2942_v60 = vpop.f32.mrb[29].mxu1 }
 0x29a   : > { %4920 = vst [vmem:[%s7964_s27 + $0x60] sm:$0xff] %v4877_v25   ;;  %v4270_v24 = vadd.f32 %v5704_v37, %v4269_v11  ;;  %v4339_v2 = vadd.f32 %v4338_v19, %v4308_v61  ;;  %v5662_v13 = vpop.f32.mrb[28].mxu0  ;;  %v5471_v17 = vpop.f32.mrb[30].mxu1 }
 0x29b   : > { %v5708_v63 = vadd.f32 %v5662_v13, %v5470_v46  ;;  %v4038_v49 = vpop.f32.mrb[29].mxu0  ;;  %v2945_v39 = vpop.f32.mrb[31].mxu1 }
 0x29c   : > { %v4340_v31 = vadd.f32 %v4339_v2, %v4309_v55  ;;  %v5709_v57 = vadd.f32 %v4038_v49, %v2942_v60  ;;  %v4271_v38 = vadd.f32 %v5706_v10, %v4270_v24  ;;  %v5663_v4 = vpop.f32.mrb[30].mxu0 }
 0x29d   : > { %v5710_v45 = vadd.f32 %v5663_v4, %v5471_v17  ;;  %v4041_v3 = vpop.f32.mrb[31].mxu0  ;;  %v4313_v18 = vmul.f32 %v5708_v63, %v5708_v63 }
 0x29e   : > { %v4272_v21 = vadd.f32 %v5709_v57, %v4271_v38  ;;  %v4311_v35 = vmul.f32 %v5709_v57, %v5709_v57  ;;  %v4341_v27 = vadd.f32 %v4340_v31, %v4310_v29  ;;  %v5711_v44 = vadd.f32 %v4041_v3, %v2945_v39 }
 0x29f   : > { %v4892_v50 = vpack.c.bf16 %v5710_v45, %v5708_v63 }
 0x2a0   : > { %v4342_v62 = vadd.f32 %v4341_v27, %v4311_v35  ;;  %v4887_v1 = vpack.c.bf16 %v5711_v44, %v5709_v57  ;;  %v4273_v42 = vadd.f32 %v5711_v44, %v4272_v21  ;;  %v4312_v34 = vmul.f32 %v5711_v44, %v5711_v44 }
 0x2a1   : > { %4923 = vst [vmem:[%s7964_s27 + $0x78] sm:$0xff] %v4892_v50  }
 0x2a2   : > { %4922 = vst [vmem:[%s7964_s27 + $0x70] sm:$0xff] %v4887_v1   ;;  %v4274_v52 = vadd.f32 %v5708_v63, %v4273_v42  ;;  %v4343_v54 = vadd.f32 %v4342_v62, %v4312_v34 }
 0x2a3   : > { %6238 = shalt.err (!%p6235_p12)
}
 0x2a4   : > { %s6239_s20 = scalar_lea.hbm %s7989_s11, 2048  ;;  %s6243_s27 = scalar_lea.hbm %s8110_s4, 8192 }
 0x2a5   : > { %p6240_p0 = scmp.ne.s32.totalorder %s7989_s11, %s6239_s20  ;;  %p6244_p11 = scmp.lt.u32.totalorder %s7989_s11, %s8110_s4 }
 0x2a6   : > { %p6245_p13 = scmp.lt.u32.totalorder %s6243_s27, %s6239_s20  ;;  %p6247_p1 = scmp.lt.u32.totalorder %s6239_s20, %s7989_s11 }
 0x2a7   : > { %p6241_p5 = pnand %p6240_p0, %p6556_p6 }
 0x2a8   : > { %p6246_p2 = por %p6245_p13, %p6244_p11 }
 0x2a9   : > { %p6242_p10 = pneg %p6241_p5 }
 0x2aa   : > { %p6248_p4 = por %p6247_p1, %p6246_p2 }
 0x2ac   : > { %p6249_p8 = pnand %p6248_p4, %p6242_p10 }
 0x2ae   : > { %6252 = shalt.err (!%p6249_p8)
}
 0x2af   : > { %s6370_s9 = smov 64   ;;  %s6371_s17 = smov 4   ;;  %v4314_v5 = vmul.f32 %v5710_v45, %v5710_v45  ;;  %v4275_v56 = vadd.f32 %v5710_v45, %v4274_v52  ;;  %v4344_v26 = vadd.f32 %v4343_v54, %v4313_v18 }
 0x2b0   : > { %5950 = dma.vmem_to_hbm [thread:$0]  (%p6556_p6), %s7991_s7, 2048, %s7989_s11, %s4354_s15, %s6370_s9, %s6370_s9, %s6371_s17  }
 0x2b1   : > { %v4276_v20 = vrot.slane %v4275_v56, 4  ;;  %v4345_v15 = vadd.f32 %v4344_v26, %v4314_v5  ;;  %s4358_s19 = sand.u32 1, %s6430_s25   ;;  %s4712_s12 = sshll.u32 %s6430_s25, 4 }
 0x2b2   : > { %s319_s30 = scalar_lea.vmem [#allocation14], %s6607_s26  ;;  %s325_s7 = scalar_lea.vmem [#allocation16], %s6607_s26 }
 0x2b3   : > { %v4277_v47 = vadd.f32 %v4276_v20, %v4275_v56  ;;  %v4346_v8 = vrot.slane %v4345_v15, 4  ;;  %s4391_s20 = sshll.u32 %s319_s30, 4  ;;  %s4404_s11 = sshll.u32 %s325_s7, 4  ;;  %s8030_s20 = int_to_ptr.vmem [resolvable:$true] %s4391_s20  ;;  %s8037_s11 = int_to_ptr.vmem [resolvable:$true] %s4404_s11 }
 0x2b4   : > { %s8028_s14 = scalar_lea.hbm %s8111_s5, %s4712_s12  ;;  %s8035_s29 = scalar_lea.hbm %s8112_s6, %s4712_s12 }
 0x2b5   : > { %v4278_v41 = vrot.slane %v4277_v47, 2  ;;  %v4347_v58 = vadd.f32 %v4346_v8, %v4345_v15  ;;  %s8039_s18 = scalar_lea.sflag [#allocation15], %s4358_s19  ;;  %s6253_s9 = scalar_lea.vmem %s8030_s20, 16 }
 0x2b6   : > { %p6254_p3 = scmp.ne.s32.totalorder %s8030_s20, %s6253_s9  ;;  %s6372_s17 = smov [#allocation14]  }
 0x2b7   : > { %v4348_v33 = vrot.slane %v4347_v58, 2  ;;  %v4279_v6 = vadd.f32 %v4278_v41, %v4277_v47  ;;  %s6257_s15 = sshll.u32 %s6372_s17, 4  ;;  %s6258_s15 = int_to_ptr.vmem [resolvable:$false] %s6257_s15 }
 0x2b8   : > { %p6255_p7 = pnand %p6254_p3, %p6556_p6  ;;  %s6259_s8 = scalar_lea.vmem %s6258_s15, 32 }
 0x2b9   : > { %v4280_v0 = vrot.slane %v4279_v6, 1  ;;  %v4349_v16 = vadd.f32 %v4348_v33, %v4347_v58  ;;  %p6260_p12 = scmp.lt.s32.totalorder %s8030_s20, %s6258_s15  ;;  %p6261_p0 = scmp.lt.s32.totalorder %s6259_s8, %s6253_s9 }
 0x2ba   : > { %p6256_p9 = pneg %p6255_p7 }
 0x2bb   : > { %v4281_v48 = vadd.f32 %v4280_v0, %v4279_v6  ;;  %v4350_v28 = vrot.slane %v4349_v16, 1  ;;  %p6262_p5 = por %p6261_p0, %p6260_p12 }
 0x2bd   : > { %4282 = vst [vmem:[%s319_s30] sm:$0x1] %v4281_v48  ;;  %v4351_v37 = vadd.f32 %v4350_v28, %v4349_v16  ;;  %p6263_p10 = pnand %p6262_p5, %p6256_p9 }
 0x2bf   : > { %6266 = shalt.err (!%p6263_p10)
}
 0x2c0   : > { %s6267_s19 = scalar_lea.hbm %s8028_s14, 16  ;;  %s6271_s25 = scalar_lea.hbm %s8111_s5, 64 }
 0x2c1   : > { %p6268_p11 = scmp.ne.s32.totalorder %s8028_s14, %s6267_s19  ;;  %p6272_p1 = scmp.lt.u32.totalorder %s8028_s14, %s8111_s5 }
 0x2c2   : > { %p6273_p4 = scmp.lt.u32.totalorder %s6271_s25, %s6267_s19  ;;  %p6275_p3 = scmp.lt.u32.totalorder %s6267_s19, %s8028_s14 }
 0x2c3   : > { %p6269_p13 = pnand %p6268_p11, %p6556_p6 }
 0x2c4   : > { %p6274_p8 = por %p6273_p4, %p6272_p1 }
 0x2c5   : > { %p6270_p2 = pneg %p6269_p13 }
 0x2c6   : > { %p6276_p7 = por %p6275_p3, %p6274_p8 }
 0x2c8   : > { %p6277_p9 = pnand %p6276_p7, %p6270_p2 }
 0x2ca   : > { %6280 = shalt.err (!%p6277_p9)
}
 0x2cb   : > { %5951 = dma.vmem_to_hbm [thread:$0]  (%p6556_p6), %s8030_s20, 16, %s8028_s14, %s8039_s18   ;;  %4352 = vst [vmem:[%s325_s7] sm:$0x1] %v4351_v37 }
 0x2cc   : > { %s6281_s9 = scalar_lea.vmem %s8037_s11, 16  ;;  %s6373_s15 = smov [#allocation16]  }
 0x2cd   : > { %p6282_p12 = scmp.ne.s32.totalorder %s8037_s11, %s6281_s9  ;;  %s6285_s8 = sshll.u32 %s6373_s15, 4  ;;  %s6286_s8 = int_to_ptr.vmem [resolvable:$false] %s6285_s8 }
 0x2ce   : > { %s6287_s19 = scalar_lea.vmem %s6286_s8, 32  ;;  %p6288_p10 = scmp.lt.s32.totalorder %s8037_s11, %s6286_s8 }
 0x2cf   : > { %p6283_p0 = pnand %p6282_p12, %p6556_p6  ;;  %p6289_p11 = scmp.lt.s32.totalorder %s6287_s19, %s6281_s9 }
 0x2d1   : > { %p6284_p5 = pneg %p6283_p0  ;;  %p6290_p13 = por %p6289_p11, %p6288_p10 }
 0x2d3   : > { %p6291_p2 = pnand %p6290_p13, %p6284_p5 }
 0x2d5   : > { %6294 = shalt.err (!%p6291_p2)
}
 0x2d6   : > { %s6295_s26 = scalar_lea.hbm %s8035_s29, 16  ;;  %s6299_s14 = scalar_lea.hbm %s8112_s6, 64 }
 0x2d7   : > { %p6296_p1 = scmp.ne.s32.totalorder %s8035_s29, %s6295_s26  ;;  %p6300_p3 = scmp.lt.u32.totalorder %s8035_s29, %s8112_s6 }
 0x2d8   : > { %p6301_p7 = scmp.lt.u32.totalorder %s6299_s14, %s6295_s26  ;;  %p6303_p12 = scmp.lt.u32.totalorder %s6295_s26, %s8035_s29 }
 0x2d9   : > { %p6297_p4 = pnand %p6296_p1, %p6556_p6 }
 0x2da   : > { %p6302_p9 = por %p6301_p7, %p6300_p3 }
 0x2db   : > { %p6298_p8 = pneg %p6297_p4 }
 0x2dc   : > { %p6304_p0 = por %p6303_p12, %p6302_p9 }
 0x2de   : > { %p6305_p5 = pnand %p6304_p0, %p6298_p8 }
 0x2e0   : > { %6308 = shalt.err (!%p6305_p5)
}
 0x2e1   : > { %5952 = dma.vmem_to_hbm [thread:$0]  (%p6556_p6), %s8037_s11, 16, %s8035_s29, %s8039_s18  }
 0x2e2 PF: > { %p5987_p10 = scmp.ge.s32.totalorder %s6359_s24, 2  ;;  %s4416_s25 = sand.u32 1, %s6347_s21  }
 0x2e3   : > { %p8509_p11 = scmp.ne.s32.totalorder %s8217_s28, 0  ;;  %s4417_s27 = scalar_lea.sflag [#allocation7], %s4416_s25 }
 0x2e5   : > { %p5971_p13 = pnand %p5987_p10, %p8509_p11 }
 0x2e7   : > { %6338 = dma.done.wait (!%p5971_p13), %s4417_s27, 2048  }
 0x2e8   : > { %6340 = vsyncadd (!%p5971_p13), %s4417_s27, 4294965248  ;;  %s8510_s17 = sadd.s32 4294967294, %s6359_s24  }
 0x2e9   : > { %s4425_s9 = sand.u32 1, %s8510_s17  }
 0x2ea   : > { %s4426_s15 = scalar_lea.sflag [#allocation15], %s4425_s9 }
 0x2eb   : > { %6342 = dma.done.wait (!%p5971_p13), %s4426_s15, 32  }
 0x2ec   : > { %6344 = vsyncadd (!%p5971_p13), %s4426_s15, 4294967264  ;;  %p25_p6 = scmp.ge.s32.totalorder %s6542_s13, 6   ;;  %s8511_s21 = smov %s6351_s22 }
 0x2ed   : > { %s8512_s22 = smov %s6355_s23  ;;  %s8513_s23 = smov %s6552_s16 }
 0x2ee   : > { %s8514_s24 = smov %s6542_s13  ;;  %27 = sbr.rel (!%p25_p6) target bundleno = 9 (0x9), region = 133 }
 0x2f5   :  { %4438 = vsyncpa [#allocation6], 1 }
 0x2f6   :  { %4440 = vsyncpa [#allocation6 + $0x1], 1 }
 0x2f7   :  { %4441 = vsyncpa [#allocation9], 1 }
 0x2f8   :  { %4442 = vsyncpa [#allocation12], 1 }
 0x2f9   :  { %4443 = vsyncpa [#allocation7], 1 }
 0x2fa   :  { %4445 = vsyncpa [#allocation7 + $0x1], 1 }
 0x2fb   :  { %4446 = vsyncpa [#allocation15], 1 }
 0x2fc   :  { %4448 = vsyncpa [#allocation15 + $0x1], 1 }

</bundles_post_ra>
